<compile_context>
chip_gen: v7x
topology: tpu7x:2x2x1
jax: 0.10.0
libtpu: 0.0.40
codegen_flags: <defaults>
</compile_context>

<pallas_src>
import math

import jax
import jax.numpy as jnp
from jax.experimental import pallas as pl
from jax.experimental.pallas import tpu as pltpu

# ---- static model configuration (small shapes consistent with the module) ----
D_MODEL = 3            # d_input: must be 3 (PE buffer is (1, 3, 3))
N_HEAD = 3
HEAD_DIM = D_MODEL // N_HEAD          # == 1
FFN = 32               # dim_feedforward ("hidden_size"), kept small
N_LAYERS = 2
LN_EPS = 1e-5
SEQ = 8
BATCH = 2              # must be <= 3 (PE n_feature = 3, indexed by dim 1 of x)
PACK_COLS = FFN        # lane width of the packed parameter slab (widest row = FFN)

assert D_MODEL == 3 and N_HEAD == 3 and HEAD_DIM == 1 and BATCH <= 3


# ----------------------------------------------------------------------------
# Packed-parameter layout: one (rows, 32) f32 slab, static row offsets.
# ----------------------------------------------------------------------------
def _build_layout():
    layout = {}
    off = 0

    def add(name, rows, cols):
        nonlocal off
        layout[name] = (off, rows, cols)
        off += rows

    for l in range(N_LAYERS):
        add(f"ipw{l}", D_MODEL, 3 * D_MODEL)   # in_proj weight (E, 3E), pre-transposed
        add(f"ipb{l}", 1, 3 * D_MODEL)         # in_proj bias
        add(f"opw{l}", D_MODEL, D_MODEL)       # out_proj weight (E, E), pre-transposed
        add(f"opb{l}", 1, D_MODEL)
        add(f"l1w{l}", D_MODEL, FFN)           # linear1 (E, H), pre-transposed
        add(f"l1b{l}", 1, FFN)
        add(f"l2w{l}", FFN, D_MODEL)           # linear2 (H, E), pre-transposed
        add(f"l2b{l}", 1, D_MODEL)
        add(f"n1w{l}", 1, D_MODEL)
        add(f"n1b{l}", 1, D_MODEL)
        add(f"n2w{l}", 1, D_MODEL)
        add(f"n2b{l}", 1, D_MODEL)
    add("dec", 1, D_MODEL + 1)                 # [dec_w0, dec_w1, dec_w2, dec_b]
    add("pe", BATCH, D_MODEL)                  # PE rows for the batch indices used
    return layout, off


_LAYOUT, _TOTAL_ROWS = _build_layout()
_PACKED_ROWS = _TOTAL_ROWS + (-_TOTAL_ROWS) % 8     # pad rows to an (8,128)-tile multiple


def pack_params(params, pe):
    """Pack every weight/bias + the PE rows into one (rows, 32) f32 slab.

    Runs once at init so the hot forward pass issues exactly two input DMAs."""
    assert pe.shape == (BATCH, D_MODEL)
    blocks = []
    for l in range(N_LAYERS):
        blocks += [
            (f"ipw{l}", params["in_proj_w_t"][l]),
            (f"ipb{l}", params["in_proj_b"][l][None, :]),
            (f"opw{l}", params["out_proj_w_t"][l]),
            (f"opb{l}", params["out_proj_b"][l][None, :]),
            (f"l1w{l}", params["lin1_w_t"][l]),
            (f"l1b{l}", params["lin1_b"][l][None, :]),
            (f"l2w{l}", params["lin2_w_t"][l]),
            (f"l2b{l}", params["lin2_b"][l][None, :]),
            (f"n1w{l}", params["norm1_w"][l][None, :]),
            (f"n1b{l}", params["norm1_b"][l][None, :]),
            (f"n2w{l}", params["norm2_w"][l][None, :]),
            (f"n2b{l}", params["norm2_b"][l][None, :]),
        ]
    dec_row = jnp.concatenate([params["dec_w_t"][:, 0], params["dec_b"][0]])[None, :]
    blocks += [("dec", dec_row), ("pe", jnp.asarray(pe, jnp.float32))]

    rows, off = [], 0
    for name, b in blocks:
        b = jnp.asarray(b, jnp.float32)
        exp_off, exp_r, exp_c = _LAYOUT[name]
        assert (off, b.shape[0], b.shape[1]) == (exp_off, exp_r, exp_c), name
        rows.append(jnp.pad(b, ((0, 0), (0, PACK_COLS - b.shape[1]))))
        off += b.shape[0]
    packed = jnp.concatenate(rows, axis=0)
    return jnp.pad(packed, ((0, _PACKED_ROWS - packed.shape[0]), (0, 0)))


def _unpack(pk):
    """Static-offset slices of the packed slab (works on the in-kernel loaded value)."""
    return {name: pk[off:off + r, 0:c] for name, (off, r, c) in _LAYOUT.items()}


# ----------------------------------------------------------------------------
# Shared forward math (traced inside the Pallas kernel and by the XLA reference).
# ----------------------------------------------------------------------------
def _fma_matmul(a, w):
    """(M, K) @ (K, N) as K broadcast-FMAs on the VPU; never lowers to the MXU."""
    acc = a[:, 0:1] * w[0:1, :]
    for k in range(1, a.shape[1]):
        acc = acc + a[:, k:k + 1] * w[k:k + 1, :]
    return acc


def _layer_norm3(v, w, b):
    """LayerNorm over the width-3 feature axis via explicit slice-and-add (no XLU reduce)."""
    mu = (v[:, 0:1] + v[:, 1:2] + v[:, 2:3]) * (1.0 / 3.0)
    d0 = v[:, 0:1] - mu
    d1 = v[:, 1:2] - mu
    d2 = v[:, 2:3] - mu
    var = (d0 * d0 + d1 * d1 + d2 * d2) * (1.0 / 3.0)
    inv = jax.lax.rsqrt(var + LN_EPS)
    return (v - mu) * inv * w + b


def _forward_math(x2, p):
    """x2: (S, N*E) f32 (the (S,N,E) input flattened over its last two dims).
    p: dict of parameter blocks from `_unpack`.  Returns (S, 1) f32."""
    S, N, E = SEQ, BATCH, D_MODEL
    sqrt_d = math.sqrt(D_MODEL)
    pe = p["pe"]                                                      # (N, E)

    # PositionalEncoder (dropout == identity) + fuse the batch axis:
    #   xf[n*S + i, :] == x[i, n, :] * sqrt(E) + pe[n, :]
    xf = jnp.concatenate(
        [x2[:, n * E:(n + 1) * E] * sqrt_d + pe[n:n + 1, :] for n in range(N)],
        axis=0)                                                       # (N*S, E)

    for l in range(N_LAYERS):
        # --- multi-head self attention (post-LN encoder layer) ---
        qkv = _fma_matmul(xf, p[f"ipw{l}"]) + p[f"ipb{l}"]            # (N*S, 3E)
        attn_blocks = []
        for n in range(N):                # softmax is per batch -> keep this tiny loop
            blk = qkv[n * S:(n + 1) * S, :]                           # (S, 3E), 8-aligned
            q = blk[:, 0:E]                                           # (S, E)
            if HEAD_DIM != 1:             # scale == 1/sqrt(1) == 1 here; skip the mul
                q = q * (1.0 / math.sqrt(HEAD_DIM))
            kv_t = blk[:, E:3 * E].T                                  # (2E, S): seq on lanes
            k_t = kv_t[0:E, :]                                        # (E, S)
            v_t = kv_t[E:2 * E, :]                                    # (E, S)
            # head_dim == 1: per-head scores are rank-1 outer products. Stack the 3
            # heads along sublanes so a single softmax covers all of them.
            scores = jnp.concatenate(
                [q[:, h:h + 1] * k_t[h:h + 1, :] for h in range(N_HEAD)], axis=0)  # (3S,S)
            m = jnp.max(scores, axis=-1, keepdims=True)
            e = jnp.exp(scores - m)
            pattn = e / jnp.sum(e, axis=-1, keepdims=True)            # (3S, S)
            heads = [jnp.sum(pattn[h * S:(h + 1) * S, :] * v_t[h:h + 1, :],
                             axis=-1, keepdims=True) for h in range(N_HEAD)]  # (S,1) each
            attn_blocks.append(jnp.concatenate(heads, axis=1))        # (S, E)
        attn = jnp.concatenate(attn_blocks, axis=0)                   # (N*S, E)
        attn = _fma_matmul(attn, p[f"opw{l}"]) + p[f"opb{l}"]         # out_proj, fused

        h1 = _layer_norm3(xf + attn, p[f"n1w{l}"], p[f"n1b{l}"])

        # --- feed-forward (relu) ---
        ff = _fma_matmul(h1, p[f"l1w{l}"]) + p[f"l1b{l}"]             # (N*S, FFN)
        ff = jnp.maximum(ff, 0.0)
        ff = _fma_matmul(ff, p[f"l2w{l}"]) + p[f"l2b{l}"]             # (N*S, E)
        xf = _layer_norm3(h1 + ff, p[f"n2w{l}"], p[f"n2b{l}"])

    # mean over dim=-2 (the batch axis), then Linear(E, 1)
    pooled = xf[0:S, :]
    for n in range(1, N):
        pooled = pooled + xf[n * S:(n + 1) * S, :]
    pooled = pooled * (1.0 / N)                                       # (S, E)
    dec = p["dec"]                                                    # (1, 4): [w0,w1,w2,b]
    out = (pooled[:, 0:1] * dec[:, 0:1] + pooled[:, 1:2] * dec[:, 1:2]
           + pooled[:, 2:3] * dec[:, 2:3] + dec[:, 3:4])              # (S, 1)
    return out


# ----------------------------------------------------------------------------
# Pallas kernel + wrapper.
# ----------------------------------------------------------------------------
def _transformer_kernel(x_ref, pk_ref, out_ref):
    """x_ref: (S, N*E) VMEM, pk_ref: packed params (rows, 32) VMEM, out_ref: (S, 1)."""
    p = _unpack(pk_ref[...])
    out = _forward_math(x_ref[...], p)
    out_ref[...] = out.astype(out_ref.dtype)   # (S,1): one masked vst, fine at this size


@jax.jit
def transformer_forward(x, packed):
    """x: (S, N, E) float32 (PyTorch seq-first layout). Returns (S, 1) float32."""
    assert x.shape == (SEQ, BATCH, D_MODEL), x.shape
    assert packed.shape == (_PACKED_ROWS, PACK_COLS), packed.shape
    x2 = x.reshape(SEQ, BATCH * D_MODEL)   # contiguous reshape: free bitcast, no transpose
    return pl.pallas_call(
        _transformer_kernel,
        out_shape=jax.ShapeDtypeStruct((SEQ, 1), jnp.float32),
        # Single-shot latency-bound kernel: whole-array VMEM blocks, no grid/pipelining,
        # exactly 2 input DMAs (activations + packed parameters).
        in_specs=[pl.BlockSpec(memory_space=pltpu.MemorySpace.VMEM),
                  pl.BlockSpec(memory_space=pltpu.MemorySpace.VMEM)],
        out_specs=pl.BlockSpec(memory_space=pltpu.MemorySpace.VMEM),
    )(x2, packed)


# ----------------------------------------------------------------------------
# Parameter / PE construction and references.
# ----------------------------------------------------------------------------
def build_pe(n_feature=3, d_model=3):
    """Exact replica of PositionalEncoder's buffer (n_feature, d_model)."""
    pe = [[0.0] * d_model for _ in range(n_feature)]
    for pos in range(n_feature):
        for i in range(0, d_model, 2):
            pe[pos][i] = math.sin(pos / 10000 ** (2 * i / d_model))
            if i + 1 < d_model:
                pe[pos][i + 1] = math.cos(pos / 10000 ** ((2 * i + 1) / d_model))
    return jnp.asarray(pe, jnp.float32)


def init_params(key):
    """Deterministic synthetic parameters (shapes dictated by the nn.Module).
    All weight matrices stored pre-transposed to (in, out) so kernels do y = x @ W_t."""
    E, H, L = D_MODEL, FFN, N_LAYERS
    ks = jax.random.split(key, 8)

    def w(k, shape, scale=0.3):
        return (scale * jax.random.normal(k, shape)).astype(jnp.float32)

    return {
        "in_proj_w_t": w(ks[0], (L, E, 3 * E)),
        "in_proj_b": w(ks[1], (L, 3 * E), 0.1),
        "out_proj_w_t": w(ks[2], (L, E, E)),
        "out_proj_b": jnp.zeros((L, E), jnp.float32),
        "lin1_w_t": w(ks[3], (L, E, H)),
        "lin1_b": w(ks[4], (L, H), 0.1),
        "lin2_w_t": w(ks[5], (L, H, E)),
        "lin2_b": jnp.zeros((L, E), jnp.float32),
        "norm1_w": jnp.ones((L, E), jnp.float32),
        "norm1_b": jnp.zeros((L, E), jnp.float32),
        "norm2_w": jnp.ones((L, E), jnp.float32),
        "norm2_b": jnp.zeros((L, E), jnp.float32),
        "dec_w_t": w(ks[6], (E, 1)),
        "dec_b": w(ks[7], (1, 1), 0.1),
    }


def reference_dense(x, pe, params):
    """Independent XLA reference using standard attention math (validates both the
    parameter packing and the restructured in-kernel math)."""
    S, N, E = x.shape
    h = x * math.sqrt(E) + pe[None, :, :]          # PE indexed by the batch axis

    def ln(v, w, b):
        mu = v.mean(-1, keepdims=True)
        var = ((v - mu) ** 2).mean(-1, keepdims=True)
        return (v - mu) / jnp.sqrt(var + LN_EPS) * w + b

    scale = 1.0 / math.sqrt(HEAD_DIM)
    for l in range(N_LAYERS):
        qkv = jnp.einsum("sne,ef->snf", h, params["in_proj_w_t"][l]) + params["in_proj_b"][l]
        q, k, v = jnp.split(qkv, 3, axis=-1)       # (S, N, E); head_dim==1 -> head h == channel h
        scores = jnp.einsum("snh,tnh->nhst", q, k) * scale
        pattn = jax.nn.softmax(scores, axis=-1)
        o = jnp.einsum("nhst,tnh->snh", pattn, v)
        attn = jnp.einsum("sne,ef->snf", o, params["out_proj_w_t"][l]) + params["out_proj_b"][l]
        h = ln(h + attn, params["norm1_w"][l], params["norm1_b"][l])
        ff = jax.nn.relu(jnp.einsum("sne,eh->snh", h, params["lin1_w_t"][l]) + params["lin1_b"][l])
        ff = jnp.einsum("snh,he->sne", ff, params["lin2_w_t"][l]) + params["lin2_b"][l]
        h = ln(h + ff, params["norm2_w"][l], params["norm2_b"][l])
    pooled = h.mean(axis=1)                        # mean over dim=-2 (the batch axis)
    return pooled @ params["dec_w_t"] + params["dec_b"]


if __name__ == "__main__":
    key = jax.random.PRNGKey(0)
    kx, kp = jax.random.split(key)

    x = jax.random.normal(kx, (SEQ, BATCH, D_MODEL), dtype=jnp.float32)   # (S, N, E)
    params = init_params(kp)
    pe = build_pe()[:BATCH]                  # PyTorch: self.pe[:, :x.size(1)]
    packed = pack_params(params, pe)         # one-time packing -> 2 DMAs per forward

    out = jax.block_until_ready(transformer_forward(x, packed))

    # Reference 1: identical math traced by plain XLA from the packed slab.
    ref_packed = jax.jit(
        lambda xx, pk: _forward_math(xx.reshape(SEQ, BATCH * D_MODEL), _unpack(pk))
    )(x, packed)
    # Reference 2: independent standard-attention formulation on the raw params.
    ref_dense = jax.jit(reference_dense)(x, pe, params)

    assert out.shape == (SEQ, 1), out.shape
    assert bool(jnp.all(jnp.isfinite(out)))
    assert bool(jnp.allclose(out, ref_packed, atol=1e-3, rtol=1e-3)), (out, ref_packed)
    assert bool(jnp.allclose(out, ref_dense, atol=1e-3, rtol=1e-3)), (out, ref_dense)

    print("KERNEL_OK")
</pallas_src>

<mosaic_0001>
module attributes {stable_mosaic.version = 11 : i64} {
  func.func @_transformer_kernel(%arg0: memref<8x6xf32, #tpu.memory_space<vmem>>, %arg1: memref<104x32xf32, #tpu.memory_space<vmem>>, %arg2: memref<8x1xf32, #tpu.memory_space<vmem>>) attributes {dimension_semantics = [], scalar_prefetch = 0 : i64, scratch_operands = 0 : i64, tpu.core_type = #tpu.core_type<tc>} {
    %c0 = arith.constant 0 : index
    %c0_0 = arith.constant 0 : index
    %0 = vector.load %arg1[%c0, %c0_0] : memref<104x32xf32, #tpu.memory_space<vmem>>, vector<104x32xf32>
    %1 = vector.extract_strided_slice %0 {offsets = [0, 0], sizes = [3, 9], strides = [1, 1]} : vector<104x32xf32> to vector<3x9xf32>
    %2 = vector.extract_strided_slice %0 {offsets = [3, 0], sizes = [1, 9], strides = [1, 1]} : vector<104x32xf32> to vector<1x9xf32>
    %3 = vector.extract_strided_slice %0 {offsets = [4, 0], sizes = [3, 3], strides = [1, 1]} : vector<104x32xf32> to vector<3x3xf32>
    %4 = vector.extract_strided_slice %0 {offsets = [7, 0], sizes = [1, 3], strides = [1, 1]} : vector<104x32xf32> to vector<1x3xf32>
    %5 = vector.extract_strided_slice %0 {offsets = [8, 0], sizes = [3, 32], strides = [1, 1]} : vector<104x32xf32> to vector<3x32xf32>
    %6 = vector.extract_strided_slice %0 {offsets = [11, 0], sizes = [1, 32], strides = [1, 1]} : vector<104x32xf32> to vector<1x32xf32>
    %7 = vector.extract_strided_slice %0 {offsets = [12, 0], sizes = [32, 3], strides = [1, 1]} : vector<104x32xf32> to vector<32x3xf32>
    %8 = vector.extract_strided_slice %0 {offsets = [44, 0], sizes = [1, 3], strides = [1, 1]} : vector<104x32xf32> to vector<1x3xf32>
    %9 = vector.extract_strided_slice %0 {offsets = [45, 0], sizes = [1, 3], strides = [1, 1]} : vector<104x32xf32> to vector<1x3xf32>
    %10 = vector.extract_strided_slice %0 {offsets = [46, 0], sizes = [1, 3], strides = [1, 1]} : vector<104x32xf32> to vector<1x3xf32>
    %11 = vector.extract_strided_slice %0 {offsets = [47, 0], sizes = [1, 3], strides = [1, 1]} : vector<104x32xf32> to vector<1x3xf32>
    %12 = vector.extract_strided_slice %0 {offsets = [48, 0], sizes = [1, 3], strides = [1, 1]} : vector<104x32xf32> to vector<1x3xf32>
    %13 = vector.extract_strided_slice %0 {offsets = [49, 0], sizes = [3, 9], strides = [1, 1]} : vector<104x32xf32> to vector<3x9xf32>
    %14 = vector.extract_strided_slice %0 {offsets = [52, 0], sizes = [1, 9], strides = [1, 1]} : vector<104x32xf32> to vector<1x9xf32>
    %15 = vector.extract_strided_slice %0 {offsets = [53, 0], sizes = [3, 3], strides = [1, 1]} : vector<104x32xf32> to vector<3x3xf32>
    %16 = vector.extract_strided_slice %0 {offsets = [56, 0], sizes = [1, 3], strides = [1, 1]} : vector<104x32xf32> to vector<1x3xf32>
    %17 = vector.extract_strided_slice %0 {offsets = [57, 0], sizes = [3, 32], strides = [1, 1]} : vector<104x32xf32> to vector<3x32xf32>
    %18 = vector.extract_strided_slice %0 {offsets = [60, 0], sizes = [1, 32], strides = [1, 1]} : vector<104x32xf32> to vector<1x32xf32>
    %19 = vector.extract_strided_slice %0 {offsets = [61, 0], sizes = [32, 3], strides = [1, 1]} : vector<104x32xf32> to vector<32x3xf32>
    %20 = vector.extract_strided_slice %0 {offsets = [93, 0], sizes = [1, 3], strides = [1, 1]} : vector<104x32xf32> to vector<1x3xf32>
    %21 = vector.extract_strided_slice %0 {offsets = [94, 0], sizes = [1, 3], strides = [1, 1]} : vector<104x32xf32> to vector<1x3xf32>
    %22 = vector.extract_strided_slice %0 {offsets = [95, 0], sizes = [1, 3], strides = [1, 1]} : vector<104x32xf32> to vector<1x3xf32>
    %23 = vector.extract_strided_slice %0 {offsets = [96, 0], sizes = [1, 3], strides = [1, 1]} : vector<104x32xf32> to vector<1x3xf32>
    %24 = vector.extract_strided_slice %0 {offsets = [97, 0], sizes = [1, 3], strides = [1, 1]} : vector<104x32xf32> to vector<1x3xf32>
    %25 = vector.extract_strided_slice %0 {offsets = [98, 0], sizes = [1, 4], strides = [1, 1]} : vector<104x32xf32> to vector<1x4xf32>
    %26 = vector.extract_strided_slice %0 {offsets = [99, 0], sizes = [2, 3], strides = [1, 1]} : vector<104x32xf32> to vector<2x3xf32>
    %c0_1 = arith.constant 0 : index
    %c0_2 = arith.constant 0 : index
    %27 = vector.load %arg0[%c0_1, %c0_2] : memref<8x6xf32, #tpu.memory_space<vmem>>, vector<8x6xf32>
    %28 = vector.extract_strided_slice %27 {offsets = [0, 0], sizes = [8, 3], strides = [1, 1]} : vector<8x6xf32> to vector<8x3xf32>
    %cst = arith.constant 1.73205078 : f32
    %29 = vector.broadcast %cst : f32 to vector<8x3xf32>
    %30 = arith.mulf %28, %29 : vector<8x3xf32>
    %31 = vector.extract_strided_slice %26 {offsets = [0, 0], sizes = [1, 3], strides = [1, 1]} : vector<2x3xf32> to vector<1x3xf32>
    %32 = vector.broadcast %31 : vector<1x3xf32> to vector<8x3xf32>
    %33 = arith.addf %30, %32 : vector<8x3xf32>
    %34 = vector.extract_strided_slice %27 {offsets = [0, 3], sizes = [8, 3], strides = [1, 1]} : vector<8x6xf32> to vector<8x3xf32>
    %cst_3 = arith.constant 1.73205078 : f32
    %35 = vector.broadcast %cst_3 : f32 to vector<8x3xf32>
    %36 = arith.mulf %34, %35 : vector<8x3xf32>
    %37 = vector.extract_strided_slice %26 {offsets = [1, 0], sizes = [1, 3], strides = [1, 1]} : vector<2x3xf32> to vector<1x3xf32>
    %38 = vector.broadcast %37 : vector<1x3xf32> to vector<8x3xf32>
    %39 = arith.addf %36, %38 : vector<8x3xf32>
    %40 = tpu.concatenate %33, %39 in 0 : vector<8x3xf32>, vector<8x3xf32> -> vector<16x3xf32>
    %41 = vector.extract_strided_slice %40 {offsets = [0, 0], sizes = [16, 1], strides = [1, 1]} : vector<16x3xf32> to vector<16x1xf32>
    %42 = vector.extract_strided_slice %1 {offsets = [0, 0], sizes = [1, 9], strides = [1, 1]} : vector<3x9xf32> to vector<1x9xf32>
    %43 = vector.broadcast %41 : vector<16x1xf32> to vector<16x9xf32>
    %44 = vector.broadcast %42 : vector<1x9xf32> to vector<16x9xf32>
    %45 = arith.mulf %43, %44 : vector<16x9xf32>
    %46 = vector.extract_strided_slice %40 {offsets = [0, 1], sizes = [16, 1], strides = [1, 1]} : vector<16x3xf32> to vector<16x1xf32>
    %47 = vector.extract_strided_slice %1 {offsets = [1, 0], sizes = [1, 9], strides = [1, 1]} : vector<3x9xf32> to vector<1x9xf32>
    %48 = vector.broadcast %46 : vector<16x1xf32> to vector<16x9xf32>
    %49 = vector.broadcast %47 : vector<1x9xf32> to vector<16x9xf32>
    %50 = arith.mulf %48, %49 : vector<16x9xf32>
    %51 = arith.addf %45, %50 : vector<16x9xf32>
    %52 = vector.extract_strided_slice %40 {offsets = [0, 2], sizes = [16, 1], strides = [1, 1]} : vector<16x3xf32> to vector<16x1xf32>
    %53 = vector.extract_strided_slice %1 {offsets = [2, 0], sizes = [1, 9], strides = [1, 1]} : vector<3x9xf32> to vector<1x9xf32>
    %54 = vector.broadcast %52 : vector<16x1xf32> to vector<16x9xf32>
    %55 = vector.broadcast %53 : vector<1x9xf32> to vector<16x9xf32>
    %56 = arith.mulf %54, %55 : vector<16x9xf32>
    %57 = arith.addf %51, %56 : vector<16x9xf32>
    %58 = vector.broadcast %2 : vector<1x9xf32> to vector<16x9xf32>
    %59 = arith.addf %57, %58 : vector<16x9xf32>
    %60 = vector.extract_strided_slice %59 {offsets = [0, 0], sizes = [8, 9], strides = [1, 1]} : vector<16x9xf32> to vector<8x9xf32>
    %61 = vector.extract_strided_slice %60 {offsets = [0, 0], sizes = [8, 3], strides = [1, 1]} : vector<8x9xf32> to vector<8x3xf32>
    %62 = vector.extract_strided_slice %60 {offsets = [0, 3], sizes = [8, 6], strides = [1, 1]} : vector<8x9xf32> to vector<8x6xf32>
    %63 = tpu.transpose %62, [1, 0] : vector<8x6xf32> -> vector<6x8xf32>
    %64 = vector.extract_strided_slice %63 {offsets = [0, 0], sizes = [3, 8], strides = [1, 1]} : vector<6x8xf32> to vector<3x8xf32>
    %65 = vector.extract_strided_slice %63 {offsets = [3, 0], sizes = [3, 8], strides = [1, 1]} : vector<6x8xf32> to vector<3x8xf32>
    %66 = vector.extract_strided_slice %61 {offsets = [0, 0], sizes = [8, 1], strides = [1, 1]} : vector<8x3xf32> to vector<8x1xf32>
    %67 = vector.extract_strided_slice %64 {offsets = [0, 0], sizes = [1, 8], strides = [1, 1]} : vector<3x8xf32> to vector<1x8xf32>
    %68 = vector.broadcast %66 : vector<8x1xf32> to vector<8x8xf32>
    %69 = vector.broadcast %67 : vector<1x8xf32> to vector<8x8xf32>
    %70 = arith.mulf %68, %69 : vector<8x8xf32>
    %71 = vector.extract_strided_slice %61 {offsets = [0, 1], sizes = [8, 1], strides = [1, 1]} : vector<8x3xf32> to vector<8x1xf32>
    %72 = vector.extract_strided_slice %64 {offsets = [1, 0], sizes = [1, 8], strides = [1, 1]} : vector<3x8xf32> to vector<1x8xf32>
    %73 = vector.broadcast %71 : vector<8x1xf32> to vector<8x8xf32>
    %74 = vector.broadcast %72 : vector<1x8xf32> to vector<8x8xf32>
    %75 = arith.mulf %73, %74 : vector<8x8xf32>
    %76 = vector.extract_strided_slice %61 {offsets = [0, 2], sizes = [8, 1], strides = [1, 1]} : vector<8x3xf32> to vector<8x1xf32>
    %77 = vector.extract_strided_slice %64 {offsets = [2, 0], sizes = [1, 8], strides = [1, 1]} : vector<3x8xf32> to vector<1x8xf32>
    %78 = vector.broadcast %76 : vector<8x1xf32> to vector<8x8xf32>
    %79 = vector.broadcast %77 : vector<1x8xf32> to vector<8x8xf32>
    %80 = arith.mulf %78, %79 : vector<8x8xf32>
    %81 = tpu.concatenate %70, %75, %80 in 0 : vector<8x8xf32>, vector<8x8xf32>, vector<8x8xf32> -> vector<24x8xf32>
    %cst_4 = arith.constant dense<0xFF800000> : vector<24xf32>
    %82 = vector.multi_reduction <maximumf>, %81, %cst_4 [1] : vector<24x8xf32> to vector<24xf32>
    %83 = vector.shape_cast %82 : vector<24xf32> to vector<24x1xf32>
    %84 = vector.broadcast %83 : vector<24x1xf32> to vector<24x8xf32>
    %85 = arith.subf %81, %84 : vector<24x8xf32>
    %86 = math.exp %85 : vector<24x8xf32>
    %cst_5 = arith.constant dense<0.000000e+00> : vector<24xf32>
    %87 = vector.multi_reduction <add>, %86, %cst_5 [1] : vector<24x8xf32> to vector<24xf32>
    %88 = vector.shape_cast %87 : vector<24xf32> to vector<24x1xf32>
    %89 = vector.broadcast %88 : vector<24x1xf32> to vector<24x8xf32>
    %90 = arith.divf %86, %89 : vector<24x8xf32>
    %91 = vector.extract_strided_slice %90 {offsets = [0, 0], sizes = [8, 8], strides = [1, 1]} : vector<24x8xf32> to vector<8x8xf32>
    %92 = vector.extract_strided_slice %65 {offsets = [0, 0], sizes = [1, 8], strides = [1, 1]} : vector<3x8xf32> to vector<1x8xf32>
    %93 = vector.broadcast %92 : vector<1x8xf32> to vector<8x8xf32>
    %94 = arith.mulf %91, %93 : vector<8x8xf32>
    %cst_6 = arith.constant dense<0.000000e+00> : vector<8xf32>
    %95 = vector.multi_reduction <add>, %94, %cst_6 [1] : vector<8x8xf32> to vector<8xf32>
    %96 = vector.shape_cast %95 : vector<8xf32> to vector<8x1xf32>
    %97 = vector.extract_strided_slice %90 {offsets = [8, 0], sizes = [8, 8], strides = [1, 1]} : vector<24x8xf32> to vector<8x8xf32>
    %98 = vector.extract_strided_slice %65 {offsets = [1, 0], sizes = [1, 8], strides = [1, 1]} : vector<3x8xf32> to vector<1x8xf32>
    %99 = vector.broadcast %98 : vector<1x8xf32> to vector<8x8xf32>
    %100 = arith.mulf %97, %99 : vector<8x8xf32>
    %cst_7 = arith.constant dense<0.000000e+00> : vector<8xf32>
    %101 = vector.multi_reduction <add>, %100, %cst_7 [1] : vector<8x8xf32> to vector<8xf32>
    %102 = vector.shape_cast %101 : vector<8xf32> to vector<8x1xf32>
    %103 = vector.extract_strided_slice %90 {offsets = [16, 0], sizes = [8, 8], strides = [1, 1]} : vector<24x8xf32> to vector<8x8xf32>
    %104 = vector.extract_strided_slice %65 {offsets = [2, 0], sizes = [1, 8], strides = [1, 1]} : vector<3x8xf32> to vector<1x8xf32>
    %105 = vector.broadcast %104 : vector<1x8xf32> to vector<8x8xf32>
    %106 = arith.mulf %103, %105 : vector<8x8xf32>
    %cst_8 = arith.constant dense<0.000000e+00> : vector<8xf32>
    %107 = vector.multi_reduction <add>, %106, %cst_8 [1] : vector<8x8xf32> to vector<8xf32>
    %108 = vector.shape_cast %107 : vector<8xf32> to vector<8x1xf32>
    %109 = tpu.concatenate %96, %102, %108 in 1 : vector<8x1xf32>, vector<8x1xf32>, vector<8x1xf32> -> vector<8x3xf32>
    %110 = vector.extract_strided_slice %59 {offsets = [8, 0], sizes = [8, 9], strides = [1, 1]} : vector<16x9xf32> to vector<8x9xf32>
    %111 = vector.extract_strided_slice %110 {offsets = [0, 0], sizes = [8, 3], strides = [1, 1]} : vector<8x9xf32> to vector<8x3xf32>
    %112 = vector.extract_strided_slice %110 {offsets = [0, 3], sizes = [8, 6], strides = [1, 1]} : vector<8x9xf32> to vector<8x6xf32>
    %113 = tpu.transpose %112, [1, 0] : vector<8x6xf32> -> vector<6x8xf32>
    %114 = vector.extract_strided_slice %113 {offsets = [0, 0], sizes = [3, 8], strides = [1, 1]} : vector<6x8xf32> to vector<3x8xf32>
    %115 = vector.extract_strided_slice %113 {offsets = [3, 0], sizes = [3, 8], strides = [1, 1]} : vector<6x8xf32> to vector<3x8xf32>
    %116 = vector.extract_strided_slice %111 {offsets = [0, 0], sizes = [8, 1], strides = [1, 1]} : vector<8x3xf32> to vector<8x1xf32>
    %117 = vector.extract_strided_slice %114 {offsets = [0, 0], sizes = [1, 8], strides = [1, 1]} : vector<3x8xf32> to vector<1x8xf32>
    %118 = vector.broadcast %116 : vector<8x1xf32> to vector<8x8xf32>
    %119 = vector.broadcast %117 : vector<1x8xf32> to vector<8x8xf32>
    %120 = arith.mulf %118, %119 : vector<8x8xf32>
    %121 = vector.extract_strided_slice %111 {offsets = [0, 1], sizes = [8, 1], strides = [1, 1]} : vector<8x3xf32> to vector<8x1xf32>
    %122 = vector.extract_strided_slice %114 {offsets = [1, 0], sizes = [1, 8], strides = [1, 1]} : vector<3x8xf32> to vector<1x8xf32>
    %123 = vector.broadcast %121 : vector<8x1xf32> to vector<8x8xf32>
    %124 = vector.broadcast %122 : vector<1x8xf32> to vector<8x8xf32>
    %125 = arith.mulf %123, %124 : vector<8x8xf32>
    %126 = vector.extract_strided_slice %111 {offsets = [0, 2], sizes = [8, 1], strides = [1, 1]} : vector<8x3xf32> to vector<8x1xf32>
    %127 = vector.extract_strided_slice %114 {offsets = [2, 0], sizes = [1, 8], strides = [1, 1]} : vector<3x8xf32> to vector<1x8xf32>
    %128 = vector.broadcast %126 : vector<8x1xf32> to vector<8x8xf32>
    %129 = vector.broadcast %127 : vector<1x8xf32> to vector<8x8xf32>
    %130 = arith.mulf %128, %129 : vector<8x8xf32>
    %131 = tpu.concatenate %120, %125, %130 in 0 : vector<8x8xf32>, vector<8x8xf32>, vector<8x8xf32> -> vector<24x8xf32>
    %cst_9 = arith.constant dense<0xFF800000> : vector<24xf32>
    %132 = vector.multi_reduction <maximumf>, %131, %cst_9 [1] : vector<24x8xf32> to vector<24xf32>
    %133 = vector.shape_cast %132 : vector<24xf32> to vector<24x1xf32>
    %134 = vector.broadcast %133 : vector<24x1xf32> to vector<24x8xf32>
    %135 = arith.subf %131, %134 : vector<24x8xf32>
    %136 = math.exp %135 : vector<24x8xf32>
    %cst_10 = arith.constant dense<0.000000e+00> : vector<24xf32>
    %137 = vector.multi_reduction <add>, %136, %cst_10 [1] : vector<24x8xf32> to vector<24xf32>
    %138 = vector.shape_cast %137 : vector<24xf32> to vector<24x1xf32>
    %139 = vector.broadcast %138 : vector<24x1xf32> to vector<24x8xf32>
    %140 = arith.divf %136, %139 : vector<24x8xf32>
    %141 = vector.extract_strided_slice %140 {offsets = [0, 0], sizes = [8, 8], strides = [1, 1]} : vector<24x8xf32> to vector<8x8xf32>
    %142 = vector.extract_strided_slice %115 {offsets = [0, 0], sizes = [1, 8], strides = [1, 1]} : vector<3x8xf32> to vector<1x8xf32>
    %143 = vector.broadcast %142 : vector<1x8xf32> to vector<8x8xf32>
    %144 = arith.mulf %141, %143 : vector<8x8xf32>
    %cst_11 = arith.constant dense<0.000000e+00> : vector<8xf32>
    %145 = vector.multi_reduction <add>, %144, %cst_11 [1] : vector<8x8xf32> to vector<8xf32>
    %146 = vector.shape_cast %145 : vector<8xf32> to vector<8x1xf32>
    %147 = vector.extract_strided_slice %140 {offsets = [8, 0], sizes = [8, 8], strides = [1, 1]} : vector<24x8xf32> to vector<8x8xf32>
    %148 = vector.extract_strided_slice %115 {offsets = [1, 0], sizes = [1, 8], strides = [1, 1]} : vector<3x8xf32> to vector<1x8xf32>
    %149 = vector.broadcast %148 : vector<1x8xf32> to vector<8x8xf32>
    %150 = arith.mulf %147, %149 : vector<8x8xf32>
    %cst_12 = arith.constant dense<0.000000e+00> : vector<8xf32>
    %151 = vector.multi_reduction <add>, %150, %cst_12 [1] : vector<8x8xf32> to vector<8xf32>
    %152 = vector.shape_cast %151 : vector<8xf32> to vector<8x1xf32>
    %153 = vector.extract_strided_slice %140 {offsets = [16, 0], sizes = [8, 8], strides = [1, 1]} : vector<24x8xf32> to vector<8x8xf32>
    %154 = vector.extract_strided_slice %115 {offsets = [2, 0], sizes = [1, 8], strides = [1, 1]} : vector<3x8xf32> to vector<1x8xf32>
    %155 = vector.broadcast %154 : vector<1x8xf32> to vector<8x8xf32>
    %156 = arith.mulf %153, %155 : vector<8x8xf32>
    %cst_13 = arith.constant dense<0.000000e+00> : vector<8xf32>
    %157 = vector.multi_reduction <add>, %156, %cst_13 [1] : vector<8x8xf32> to vector<8xf32>
    %158 = vector.shape_cast %157 : vector<8xf32> to vector<8x1xf32>
    %159 = tpu.concatenate %146, %152, %158 in 1 : vector<8x1xf32>, vector<8x1xf32>, vector<8x1xf32> -> vector<8x3xf32>
    %160 = tpu.concatenate %109, %159 in 0 : vector<8x3xf32>, vector<8x3xf32> -> vector<16x3xf32>
    %161 = vector.extract_strided_slice %160 {offsets = [0, 0], sizes = [16, 1], strides = [1, 1]} : vector<16x3xf32> to vector<16x1xf32>
    %162 = vector.extract_strided_slice %3 {offsets = [0, 0], sizes = [1, 3], strides = [1, 1]} : vector<3x3xf32> to vector<1x3xf32>
    %163 = vector.broadcast %161 : vector<16x1xf32> to vector<16x3xf32>
    %164 = vector.broadcast %162 : vector<1x3xf32> to vector<16x3xf32>
    %165 = arith.mulf %163, %164 : vector<16x3xf32>
    %166 = vector.extract_strided_slice %160 {offsets = [0, 1], sizes = [16, 1], strides = [1, 1]} : vector<16x3xf32> to vector<16x1xf32>
    %167 = vector.extract_strided_slice %3 {offsets = [1, 0], sizes = [1, 3], strides = [1, 1]} : vector<3x3xf32> to vector<1x3xf32>
    %168 = vector.broadcast %166 : vector<16x1xf32> to vector<16x3xf32>
    %169 = vector.broadcast %167 : vector<1x3xf32> to vector<16x3xf32>
    %170 = arith.mulf %168, %169 : vector<16x3xf32>
    %171 = arith.addf %165, %170 : vector<16x3xf32>
    %172 = vector.extract_strided_slice %160 {offsets = [0, 2], sizes = [16, 1], strides = [1, 1]} : vector<16x3xf32> to vector<16x1xf32>
    %173 = vector.extract_strided_slice %3 {offsets = [2, 0], sizes = [1, 3], strides = [1, 1]} : vector<3x3xf32> to vector<1x3xf32>
    %174 = vector.broadcast %172 : vector<16x1xf32> to vector<16x3xf32>
    %175 = vector.broadcast %173 : vector<1x3xf32> to vector<16x3xf32>
    %176 = arith.mulf %174, %175 : vector<16x3xf32>
    %177 = arith.addf %171, %176 : vector<16x3xf32>
    %178 = vector.broadcast %4 : vector<1x3xf32> to vector<16x3xf32>
    %179 = arith.addf %177, %178 : vector<16x3xf32>
    %180 = arith.addf %40, %179 : vector<16x3xf32>
    %181 = vector.extract_strided_slice %180 {offsets = [0, 0], sizes = [16, 1], strides = [1, 1]} : vector<16x3xf32> to vector<16x1xf32>
    %182 = vector.extract_strided_slice %180 {offsets = [0, 1], sizes = [16, 1], strides = [1, 1]} : vector<16x3xf32> to vector<16x1xf32>
    %183 = arith.addf %181, %182 : vector<16x1xf32>
    %184 = vector.extract_strided_slice %180 {offsets = [0, 2], sizes = [16, 1], strides = [1, 1]} : vector<16x3xf32> to vector<16x1xf32>
    %185 = arith.addf %183, %184 : vector<16x1xf32>
    %cst_14 = arith.constant 0.333333343 : f32
    %186 = vector.broadcast %cst_14 : f32 to vector<16x1xf32>
    %187 = arith.mulf %185, %186 : vector<16x1xf32>
    %188 = vector.extract_strided_slice %180 {offsets = [0, 0], sizes = [16, 1], strides = [1, 1]} : vector<16x3xf32> to vector<16x1xf32>
    %189 = arith.subf %188, %187 : vector<16x1xf32>
    %190 = vector.extract_strided_slice %180 {offsets = [0, 1], sizes = [16, 1], strides = [1, 1]} : vector<16x3xf32> to vector<16x1xf32>
    %191 = arith.subf %190, %187 : vector<16x1xf32>
    %192 = vector.extract_strided_slice %180 {offsets = [0, 2], sizes = [16, 1], strides = [1, 1]} : vector<16x3xf32> to vector<16x1xf32>
    %193 = arith.subf %192, %187 : vector<16x1xf32>
    %194 = arith.mulf %189, %189 : vector<16x1xf32>
    %195 = arith.mulf %191, %191 : vector<16x1xf32>
    %196 = arith.addf %194, %195 : vector<16x1xf32>
    %197 = arith.mulf %193, %193 : vector<16x1xf32>
    %198 = arith.addf %196, %197 : vector<16x1xf32>
    %cst_15 = arith.constant 0.333333343 : f32
    %199 = vector.broadcast %cst_15 : f32 to vector<16x1xf32>
    %200 = arith.mulf %198, %199 : vector<16x1xf32>
    %cst_16 = arith.constant 9.99999974E-6 : f32
    %201 = vector.broadcast %cst_16 : f32 to vector<16x1xf32>
    %202 = arith.addf %200, %201 : vector<16x1xf32>
    %203 = math.rsqrt %202 : vector<16x1xf32>
    %204 = vector.broadcast %187 : vector<16x1xf32> to vector<16x3xf32>
    %205 = arith.subf %180, %204 : vector<16x3xf32>
    %206 = vector.broadcast %203 : vector<16x1xf32> to vector<16x3xf32>
    %207 = arith.mulf %205, %206 : vector<16x3xf32>
    %208 = vector.broadcast %9 : vector<1x3xf32> to vector<16x3xf32>
    %209 = arith.mulf %207, %208 : vector<16x3xf32>
    %210 = vector.broadcast %10 : vector<1x3xf32> to vector<16x3xf32>
    %211 = arith.addf %209, %210 : vector<16x3xf32>
    %212 = vector.extract_strided_slice %211 {offsets = [0, 0], sizes = [16, 1], strides = [1, 1]} : vector<16x3xf32> to vector<16x1xf32>
    %213 = vector.extract_strided_slice %5 {offsets = [0, 0], sizes = [1, 32], strides = [1, 1]} : vector<3x32xf32> to vector<1x32xf32>
    %214 = vector.broadcast %212 : vector<16x1xf32> to vector<16x32xf32>
    %215 = vector.broadcast %213 : vector<1x32xf32> to vector<16x32xf32>
    %216 = arith.mulf %214, %215 : vector<16x32xf32>
    %217 = vector.extract_strided_slice %211 {offsets = [0, 1], sizes = [16, 1], strides = [1, 1]} : vector<16x3xf32> to vector<16x1xf32>
    %218 = vector.extract_strided_slice %5 {offsets = [1, 0], sizes = [1, 32], strides = [1, 1]} : vector<3x32xf32> to vector<1x32xf32>
    %219 = vector.broadcast %217 : vector<16x1xf32> to vector<16x32xf32>
    %220 = vector.broadcast %218 : vector<1x32xf32> to vector<16x32xf32>
    %221 = arith.mulf %219, %220 : vector<16x32xf32>
    %222 = arith.addf %216, %221 : vector<16x32xf32>
    %223 = vector.extract_strided_slice %211 {offsets = [0, 2], sizes = [16, 1], strides = [1, 1]} : vector<16x3xf32> to vector<16x1xf32>
    %224 = vector.extract_strided_slice %5 {offsets = [2, 0], sizes = [1, 32], strides = [1, 1]} : vector<3x32xf32> to vector<1x32xf32>
    %225 = vector.broadcast %223 : vector<16x1xf32> to vector<16x32xf32>
    %226 = vector.broadcast %224 : vector<1x32xf32> to vector<16x32xf32>
    %227 = arith.mulf %225, %226 : vector<16x32xf32>
    %228 = arith.addf %222, %227 : vector<16x32xf32>
    %229 = vector.broadcast %6 : vector<1x32xf32> to vector<16x32xf32>
    %230 = arith.addf %228, %229 : vector<16x32xf32>
    %cst_17 = arith.constant 0.000000e+00 : f32
    %231 = vector.broadcast %cst_17 : f32 to vector<16x32xf32>
    %232 = arith.maximumf %230, %231 : vector<16x32xf32>
    %233 = vector.extract_strided_slice %232 {offsets = [0, 0], sizes = [16, 1], strides = [1, 1]} : vector<16x32xf32> to vector<16x1xf32>
    %234 = vector.extract_strided_slice %7 {offsets = [0, 0], sizes = [1, 3], strides = [1, 1]} : vector<32x3xf32> to vector<1x3xf32>
    %235 = vector.broadcast %233 : vector<16x1xf32> to vector<16x3xf32>
    %236 = vector.broadcast %234 : vector<1x3xf32> to vector<16x3xf32>
    %237 = arith.mulf %235, %236 : vector<16x3xf32>
    %238 = vector.extract_strided_slice %232 {offsets = [0, 1], sizes = [16, 1], strides = [1, 1]} : vector<16x32xf32> to vector<16x1xf32>
    %239 = vector.extract_strided_slice %7 {offsets = [1, 0], sizes = [1, 3], strides = [1, 1]} : vector<32x3xf32> to vector<1x3xf32>
    %240 = vector.broadcast %238 : vector<16x1xf32> to vector<16x3xf32>
    %241 = vector.broadcast %239 : vector<1x3xf32> to vector<16x3xf32>
    %242 = arith.mulf %240, %241 : vector<16x3xf32>
    %243 = arith.addf %237, %242 : vector<16x3xf32>
    %244 = vector.extract_strided_slice %232 {offsets = [0, 2], sizes = [16, 1], strides = [1, 1]} : vector<16x32xf32> to vector<16x1xf32>
    %245 = vector.extract_strided_slice %7 {offsets = [2, 0], sizes = [1, 3], strides = [1, 1]} : vector<32x3xf32> to vector<1x3xf32>
    %246 = vector.broadcast %244 : vector<16x1xf32> to vector<16x3xf32>
    %247 = vector.broadcast %245 : vector<1x3xf32> to vector<16x3xf32>
    %248 = arith.mulf %246, %247 : vector<16x3xf32>
    %249 = arith.addf %243, %248 : vector<16x3xf32>
    %250 = vector.extract_strided_slice %232 {offsets = [0, 3], sizes = [16, 1], strides = [1, 1]} : vector<16x32xf32> to vector<16x1xf32>
    %251 = vector.extract_strided_slice %7 {offsets = [3, 0], sizes = [1, 3], strides = [1, 1]} : vector<32x3xf32> to vector<1x3xf32>
    %252 = vector.broadcast %250 : vector<16x1xf32> to vector<16x3xf32>
    %253 = vector.broadcast %251 : vector<1x3xf32> to vector<16x3xf32>
    %254 = arith.mulf %252, %253 : vector<16x3xf32>
    %255 = arith.addf %249, %254 : vector<16x3xf32>
    %256 = vector.extract_strided_slice %232 {offsets = [0, 4], sizes = [16, 1], strides = [1, 1]} : vector<16x32xf32> to vector<16x1xf32>
    %257 = vector.extract_strided_slice %7 {offsets = [4, 0], sizes = [1, 3], strides = [1, 1]} : vector<32x3xf32> to vector<1x3xf32>
    %258 = vector.broadcast %256 : vector<16x1xf32> to vector<16x3xf32>
    %259 = vector.broadcast %257 : vector<1x3xf32> to vector<16x3xf32>
    %260 = arith.mulf %258, %259 : vector<16x3xf32>
    %261 = arith.addf %255, %260 : vector<16x3xf32>
    %262 = vector.extract_strided_slice %232 {offsets = [0, 5], sizes = [16, 1], strides = [1, 1]} : vector<16x32xf32> to vector<16x1xf32>
    %263 = vector.extract_strided_slice %7 {offsets = [5, 0], sizes = [1, 3], strides = [1, 1]} : vector<32x3xf32> to vector<1x3xf32>
    %264 = vector.broadcast %262 : vector<16x1xf32> to vector<16x3xf32>
    %265 = vector.broadcast %263 : vector<1x3xf32> to vector<16x3xf32>
    %266 = arith.mulf %264, %265 : vector<16x3xf32>
    %267 = arith.addf %261, %266 : vector<16x3xf32>
    %268 = vector.extract_strided_slice %232 {offsets = [0, 6], sizes = [16, 1], strides = [1, 1]} : vector<16x32xf32> to vector<16x1xf32>
    %269 = vector.extract_strided_slice %7 {offsets = [6, 0], sizes = [1, 3], strides = [1, 1]} : vector<32x3xf32> to vector<1x3xf32>
    %270 = vector.broadcast %268 : vector<16x1xf32> to vector<16x3xf32>
    %271 = vector.broadcast %269 : vector<1x3xf32> to vector<16x3xf32>
    %272 = arith.mulf %270, %271 : vector<16x3xf32>
    %273 = arith.addf %267, %272 : vector<16x3xf32>
    %274 = vector.extract_strided_slice %232 {offsets = [0, 7], sizes = [16, 1], strides = [1, 1]} : vector<16x32xf32> to vector<16x1xf32>
    %275 = vector.extract_strided_slice %7 {offsets = [7, 0], sizes = [1, 3], strides = [1, 1]} : vector<32x3xf32> to vector<1x3xf32>
    %276 = vector.broadcast %274 : vector<16x1xf32> to vector<16x3xf32>
    %277 = vector.broadcast %275 : vector<1x3xf32> to vector<16x3xf32>
    %278 = arith.mulf %276, %277 : vector<16x3xf32>
    %279 = arith.addf %273, %278 : vector<16x3xf32>
    %280 = vector.extract_strided_slice %232 {offsets = [0, 8], sizes = [16, 1], strides = [1, 1]} : vector<16x32xf32> to vector<16x1xf32>
    %281 = vector.extract_strided_slice %7 {offsets = [8, 0], sizes = [1, 3], strides = [1, 1]} : vector<32x3xf32> to vector<1x3xf32>
    %282 = vector.broadcast %280 : vector<16x1xf32> to vector<16x3xf32>
    %283 = vector.broadcast %281 : vector<1x3xf32> to vector<16x3xf32>
    %284 = arith.mulf %282, %283 : vector<16x3xf32>
    %285 = arith.addf %279, %284 : vector<16x3xf32>
    %286 = vector.extract_strided_slice %232 {offsets = [0, 9], sizes = [16, 1], strides = [1, 1]} : vector<16x32xf32> to vector<16x1xf32>
    %287 = vector.extract_strided_slice %7 {offsets = [9, 0], sizes = [1, 3], strides = [1, 1]} : vector<32x3xf32> to vector<1x3xf32>
    %288 = vector.broadcast %286 : vector<16x1xf32> to vector<16x3xf32>
    %289 = vector.broadcast %287 : vector<1x3xf32> to vector<16x3xf32>
    %290 = arith.mulf %288, %289 : vector<16x3xf32>
    %291 = arith.addf %285, %290 : vector<16x3xf32>
    %292 = vector.extract_strided_slice %232 {offsets = [0, 10], sizes = [16, 1], strides = [1, 1]} : vector<16x32xf32> to vector<16x1xf32>
    %293 = vector.extract_strided_slice %7 {offsets = [10, 0], sizes = [1, 3], strides = [1, 1]} : vector<32x3xf32> to vector<1x3xf32>
    %294 = vector.broadcast %292 : vector<16x1xf32> to vector<16x3xf32>
    %295 = vector.broadcast %293 : vector<1x3xf32> to vector<16x3xf32>
    %296 = arith.mulf %294, %295 : vector<16x3xf32>
    %297 = arith.addf %291, %296 : vector<16x3xf32>
    %298 = vector.extract_strided_slice %232 {offsets = [0, 11], sizes = [16, 1], strides = [1, 1]} : vector<16x32xf32> to vector<16x1xf32>
    %299 = vector.extract_strided_slice %7 {offsets = [11, 0], sizes = [1, 3], strides = [1, 1]} : vector<32x3xf32> to vector<1x3xf32>
    %300 = vector.broadcast %298 : vector<16x1xf32> to vector<16x3xf32>
    %301 = vector.broadcast %299 : vector<1x3xf32> to vector<16x3xf32>
    %302 = arith.mulf %300, %301 : vector<16x3xf32>
    %303 = arith.addf %297, %302 : vector<16x3xf32>
    %304 = vector.extract_strided_slice %232 {offsets = [0, 12], sizes = [16, 1], strides = [1, 1]} : vector<16x32xf32> to vector<16x1xf32>
    %305 = vector.extract_strided_slice %7 {offsets = [12, 0], sizes = [1, 3], strides = [1, 1]} : vector<32x3xf32> to vector<1x3xf32>
    %306 = vector.broadcast %304 : vector<16x1xf32> to vector<16x3xf32>
    %307 = vector.broadcast %305 : vector<1x3xf32> to vector<16x3xf32>
    %308 = arith.mulf %306, %307 : vector<16x3xf32>
    %309 = arith.addf %303, %308 : vector<16x3xf32>
    %310 = vector.extract_strided_slice %232 {offsets = [0, 13], sizes = [16, 1], strides = [1, 1]} : vector<16x32xf32> to vector<16x1xf32>
    %311 = vector.extract_strided_slice %7 {offsets = [13, 0], sizes = [1, 3], strides = [1, 1]} : vector<32x3xf32> to vector<1x3xf32>
    %312 = vector.broadcast %310 : vector<16x1xf32> to vector<16x3xf32>
    %313 = vector.broadcast %311 : vector<1x3xf32> to vector<16x3xf32>
    %314 = arith.mulf %312, %313 : vector<16x3xf32>
    %315 = arith.addf %309, %314 : vector<16x3xf32>
    %316 = vector.extract_strided_slice %232 {offsets = [0, 14], sizes = [16, 1], strides = [1, 1]} : vector<16x32xf32> to vector<16x1xf32>
    %317 = vector.extract_strided_slice %7 {offsets = [14, 0], sizes = [1, 3], strides = [1, 1]} : vector<32x3xf32> to vector<1x3xf32>
    %318 = vector.broadcast %316 : vector<16x1xf32> to vector<16x3xf32>
    %319 = vector.broadcast %317 : vector<1x3xf32> to vector<16x3xf32>
    %320 = arith.mulf %318, %319 : vector<16x3xf32>
    %321 = arith.addf %315, %320 : vector<16x3xf32>
    %322 = vector.extract_strided_slice %232 {offsets = [0, 15], sizes = [16, 1], strides = [1, 1]} : vector<16x32xf32> to vector<16x1xf32>
    %323 = vector.extract_strided_slice %7 {offsets = [15, 0], sizes = [1, 3], strides = [1, 1]} : vector<32x3xf32> to vector<1x3xf32>
    %324 = vector.broadcast %322 : vector<16x1xf32> to vector<16x3xf32>
    %325 = vector.broadcast %323 : vector<1x3xf32> to vector<16x3xf32>
    %326 = arith.mulf %324, %325 : vector<16x3xf32>
    %327 = arith.addf %321, %326 : vector<16x3xf32>
    %328 = vector.extract_strided_slice %232 {offsets = [0, 16], sizes = [16, 1], strides = [1, 1]} : vector<16x32xf32> to vector<16x1xf32>
    %329 = vector.extract_strided_slice %7 {offsets = [16, 0], sizes = [1, 3], strides = [1, 1]} : vector<32x3xf32> to vector<1x3xf32>
    %330 = vector.broadcast %328 : vector<16x1xf32> to vector<16x3xf32>
    %331 = vector.broadcast %329 : vector<1x3xf32> to vector<16x3xf32>
    %332 = arith.mulf %330, %331 : vector<16x3xf32>
    %333 = arith.addf %327, %332 : vector<16x3xf32>
    %334 = vector.extract_strided_slice %232 {offsets = [0, 17], sizes = [16, 1], strides = [1, 1]} : vector<16x32xf32> to vector<16x1xf32>
    %335 = vector.extract_strided_slice %7 {offsets = [17, 0], sizes = [1, 3], strides = [1, 1]} : vector<32x3xf32> to vector<1x3xf32>
    %336 = vector.broadcast %334 : vector<16x1xf32> to vector<16x3xf32>
    %337 = vector.broadcast %335 : vector<1x3xf32> to vector<16x3xf32>
    %338 = arith.mulf %336, %337 : vector<16x3xf32>
    %339 = arith.addf %333, %338 : vector<16x3xf32>
    %340 = vector.extract_strided_slice %232 {offsets = [0, 18], sizes = [16, 1], strides = [1, 1]} : vector<16x32xf32> to vector<16x1xf32>
    %341 = vector.extract_strided_slice %7 {offsets = [18, 0], sizes = [1, 3], strides = [1, 1]} : vector<32x3xf32> to vector<1x3xf32>
    %342 = vector.broadcast %340 : vector<16x1xf32> to vector<16x3xf32>
    %343 = vector.broadcast %341 : vector<1x3xf32> to vector<16x3xf32>
    %344 = arith.mulf %342, %343 : vector<16x3xf32>
    %345 = arith.addf %339, %344 : vector<16x3xf32>
    %346 = vector.extract_strided_slice %232 {offsets = [0, 19], sizes = [16, 1], strides = [1, 1]} : vector<16x32xf32> to vector<16x1xf32>
    %347 = vector.extract_strided_slice %7 {offsets = [19, 0], sizes = [1, 3], strides = [1, 1]} : vector<32x3xf32> to vector<1x3xf32>
    %348 = vector.broadcast %346 : vector<16x1xf32> to vector<16x3xf32>
    %349 = vector.broadcast %347 : vector<1x3xf32> to vector<16x3xf32>
    %350 = arith.mulf %348, %349 : vector<16x3xf32>
    %351 = arith.addf %345, %350 : vector<16x3xf32>
    %352 = vector.extract_strided_slice %232 {offsets = [0, 20], sizes = [16, 1], strides = [1, 1]} : vector<16x32xf32> to vector<16x1xf32>
    %353 = vector.extract_strided_slice %7 {offsets = [20, 0], sizes = [1, 3], strides = [1, 1]} : vector<32x3xf32> to vector<1x3xf32>
    %354 = vector.broadcast %352 : vector<16x1xf32> to vector<16x3xf32>
    %355 = vector.broadcast %353 : vector<1x3xf32> to vector<16x3xf32>
    %356 = arith.mulf %354, %355 : vector<16x3xf32>
    %357 = arith.addf %351, %356 : vector<16x3xf32>
    %358 = vector.extract_strided_slice %232 {offsets = [0, 21], sizes = [16, 1], strides = [1, 1]} : vector<16x32xf32> to vector<16x1xf32>
    %359 = vector.extract_strided_slice %7 {offsets = [21, 0], sizes = [1, 3], strides = [1, 1]} : vector<32x3xf32> to vector<1x3xf32>
    %360 = vector.broadcast %358 : vector<16x1xf32> to vector<16x3xf32>
    %361 = vector.broadcast %359 : vector<1x3xf32> to vector<16x3xf32>
    %362 = arith.mulf %360, %361 : vector<16x3xf32>
    %363 = arith.addf %357, %362 : vector<16x3xf32>
    %364 = vector.extract_strided_slice %232 {offsets = [0, 22], sizes = [16, 1], strides = [1, 1]} : vector<16x32xf32> to vector<16x1xf32>
    %365 = vector.extract_strided_slice %7 {offsets = [22, 0], sizes = [1, 3], strides = [1, 1]} : vector<32x3xf32> to vector<1x3xf32>
    %366 = vector.broadcast %364 : vector<16x1xf32> to vector<16x3xf32>
    %367 = vector.broadcast %365 : vector<1x3xf32> to vector<16x3xf32>
    %368 = arith.mulf %366, %367 : vector<16x3xf32>
    %369 = arith.addf %363, %368 : vector<16x3xf32>
    %370 = vector.extract_strided_slice %232 {offsets = [0, 23], sizes = [16, 1], strides = [1, 1]} : vector<16x32xf32> to vector<16x1xf32>
    %371 = vector.extract_strided_slice %7 {offsets = [23, 0], sizes = [1, 3], strides = [1, 1]} : vector<32x3xf32> to vector<1x3xf32>
    %372 = vector.broadcast %370 : vector<16x1xf32> to vector<16x3xf32>
    %373 = vector.broadcast %371 : vector<1x3xf32> to vector<16x3xf32>
    %374 = arith.mulf %372, %373 : vector<16x3xf32>
    %375 = arith.addf %369, %374 : vector<16x3xf32>
    %376 = vector.extract_strided_slice %232 {offsets = [0, 24], sizes = [16, 1], strides = [1, 1]} : vector<16x32xf32> to vector<16x1xf32>
    %377 = vector.extract_strided_slice %7 {offsets = [24, 0], sizes = [1, 3], strides = [1, 1]} : vector<32x3xf32> to vector<1x3xf32>
    %378 = vector.broadcast %376 : vector<16x1xf32> to vector<16x3xf32>
    %379 = vector.broadcast %377 : vector<1x3xf32> to vector<16x3xf32>
    %380 = arith.mulf %378, %379 : vector<16x3xf32>
    %381 = arith.addf %375, %380 : vector<16x3xf32>
    %382 = vector.extract_strided_slice %232 {offsets = [0, 25], sizes = [16, 1], strides = [1, 1]} : vector<16x32xf32> to vector<16x1xf32>
    %383 = vector.extract_strided_slice %7 {offsets = [25, 0], sizes = [1, 3], strides = [1, 1]} : vector<32x3xf32> to vector<1x3xf32>
    %384 = vector.broadcast %382 : vector<16x1xf32> to vector<16x3xf32>
    %385 = vector.broadcast %383 : vector<1x3xf32> to vector<16x3xf32>
    %386 = arith.mulf %384, %385 : vector<16x3xf32>
    %387 = arith.addf %381, %386 : vector<16x3xf32>
    %388 = vector.extract_strided_slice %232 {offsets = [0, 26], sizes = [16, 1], strides = [1, 1]} : vector<16x32xf32> to vector<16x1xf32>
    %389 = vector.extract_strided_slice %7 {offsets = [26, 0], sizes = [1, 3], strides = [1, 1]} : vector<32x3xf32> to vector<1x3xf32>
    %390 = vector.broadcast %388 : vector<16x1xf32> to vector<16x3xf32>
    %391 = vector.broadcast %389 : vector<1x3xf32> to vector<16x3xf32>
    %392 = arith.mulf %390, %391 : vector<16x3xf32>
    %393 = arith.addf %387, %392 : vector<16x3xf32>
    %394 = vector.extract_strided_slice %232 {offsets = [0, 27], sizes = [16, 1], strides = [1, 1]} : vector<16x32xf32> to vector<16x1xf32>
    %395 = vector.extract_strided_slice %7 {offsets = [27, 0], sizes = [1, 3], strides = [1, 1]} : vector<32x3xf32> to vector<1x3xf32>
    %396 = vector.broadcast %394 : vector<16x1xf32> to vector<16x3xf32>
    %397 = vector.broadcast %395 : vector<1x3xf32> to vector<16x3xf32>
    %398 = arith.mulf %396, %397 : vector<16x3xf32>
    %399 = arith.addf %393, %398 : vector<16x3xf32>
    %400 = vector.extract_strided_slice %232 {offsets = [0, 28], sizes = [16, 1], strides = [1, 1]} : vector<16x32xf32> to vector<16x1xf32>
    %401 = vector.extract_strided_slice %7 {offsets = [28, 0], sizes = [1, 3], strides = [1, 1]} : vector<32x3xf32> to vector<1x3xf32>
    %402 = vector.broadcast %400 : vector<16x1xf32> to vector<16x3xf32>
    %403 = vector.broadcast %401 : vector<1x3xf32> to vector<16x3xf32>
    %404 = arith.mulf %402, %403 : vector<16x3xf32>
    %405 = arith.addf %399, %404 : vector<16x3xf32>
    %406 = vector.extract_strided_slice %232 {offsets = [0, 29], sizes = [16, 1], strides = [1, 1]} : vector<16x32xf32> to vector<16x1xf32>
    %407 = vector.extract_strided_slice %7 {offsets = [29, 0], sizes = [1, 3], strides = [1, 1]} : vector<32x3xf32> to vector<1x3xf32>
    %408 = vector.broadcast %406 : vector<16x1xf32> to vector<16x3xf32>
    %409 = vector.broadcast %407 : vector<1x3xf32> to vector<16x3xf32>
    %410 = arith.mulf %408, %409 : vector<16x3xf32>
    %411 = arith.addf %405, %410 : vector<16x3xf32>
    %412 = vector.extract_strided_slice %232 {offsets = [0, 30], sizes = [16, 1], strides = [1, 1]} : vector<16x32xf32> to vector<16x1xf32>
    %413 = vector.extract_strided_slice %7 {offsets = [30, 0], sizes = [1, 3], strides = [1, 1]} : vector<32x3xf32> to vector<1x3xf32>
    %414 = vector.broadcast %412 : vector<16x1xf32> to vector<16x3xf32>
    %415 = vector.broadcast %413 : vector<1x3xf32> to vector<16x3xf32>
    %416 = arith.mulf %414, %415 : vector<16x3xf32>
    %417 = arith.addf %411, %416 : vector<16x3xf32>
    %418 = vector.extract_strided_slice %232 {offsets = [0, 31], sizes = [16, 1], strides = [1, 1]} : vector<16x32xf32> to vector<16x1xf32>
    %419 = vector.extract_strided_slice %7 {offsets = [31, 0], sizes = [1, 3], strides = [1, 1]} : vector<32x3xf32> to vector<1x3xf32>
    %420 = vector.broadcast %418 : vector<16x1xf32> to vector<16x3xf32>
    %421 = vector.broadcast %419 : vector<1x3xf32> to vector<16x3xf32>
    %422 = arith.mulf %420, %421 : vector<16x3xf32>
    %423 = arith.addf %417, %422 : vector<16x3xf32>
    %424 = vector.broadcast %8 : vector<1x3xf32> to vector<16x3xf32>
    %425 = arith.addf %423, %424 : vector<16x3xf32>
    %426 = arith.addf %211, %425 : vector<16x3xf32>
    %427 = vector.extract_strided_slice %426 {offsets = [0, 0], sizes = [16, 1], strides = [1, 1]} : vector<16x3xf32> to vector<16x1xf32>
    %428 = vector.extract_strided_slice %426 {offsets = [0, 1], sizes = [16, 1], strides = [1, 1]} : vector<16x3xf32> to vector<16x1xf32>
    %429 = arith.addf %427, %428 : vector<16x1xf32>
    %430 = vector.extract_strided_slice %426 {offsets = [0, 2], sizes = [16, 1], strides = [1, 1]} : vector<16x3xf32> to vector<16x1xf32>
    %431 = arith.addf %429, %430 : vector<16x1xf32>
    %cst_18 = arith.constant 0.333333343 : f32
    %432 = vector.broadcast %cst_18 : f32 to vector<16x1xf32>
    %433 = arith.mulf %431, %432 : vector<16x1xf32>
    %434 = vector.extract_strided_slice %426 {offsets = [0, 0], sizes = [16, 1], strides = [1, 1]} : vector<16x3xf32> to vector<16x1xf32>
    %435 = arith.subf %434, %433 : vector<16x1xf32>
    %436 = vector.extract_strided_slice %426 {offsets = [0, 1], sizes = [16, 1], strides = [1, 1]} : vector<16x3xf32> to vector<16x1xf32>
    %437 = arith.subf %436, %433 : vector<16x1xf32>
    %438 = vector.extract_strided_slice %426 {offsets = [0, 2], sizes = [16, 1], strides = [1, 1]} : vector<16x3xf32> to vector<16x1xf32>
    %439 = arith.subf %438, %433 : vector<16x1xf32>
    %440 = arith.mulf %435, %435 : vector<16x1xf32>
    %441 = arith.mulf %437, %437 : vector<16x1xf32>
    %442 = arith.addf %440, %441 : vector<16x1xf32>
    %443 = arith.mulf %439, %439 : vector<16x1xf32>
    %444 = arith.addf %442, %443 : vector<16x1xf32>
    %cst_19 = arith.constant 0.333333343 : f32
    %445 = vector.broadcast %cst_19 : f32 to vector<16x1xf32>
    %446 = arith.mulf %444, %445 : vector<16x1xf32>
    %cst_20 = arith.constant 9.99999974E-6 : f32
    %447 = vector.broadcast %cst_20 : f32 to vector<16x1xf32>
    %448 = arith.addf %446, %447 : vector<16x1xf32>
    %449 = math.rsqrt %448 : vector<16x1xf32>
    %450 = vector.broadcast %433 : vector<16x1xf32> to vector<16x3xf32>
    %451 = arith.subf %426, %450 : vector<16x3xf32>
    %452 = vector.broadcast %449 : vector<16x1xf32> to vector<16x3xf32>
    %453 = arith.mulf %451, %452 : vector<16x3xf32>
    %454 = vector.broadcast %11 : vector<1x3xf32> to vector<16x3xf32>
    %455 = arith.mulf %453, %454 : vector<16x3xf32>
    %456 = vector.broadcast %12 : vector<1x3xf32> to vector<16x3xf32>
    %457 = arith.addf %455, %456 : vector<16x3xf32>
    %458 = vector.extract_strided_slice %457 {offsets = [0, 0], sizes = [16, 1], strides = [1, 1]} : vector<16x3xf32> to vector<16x1xf32>
    %459 = vector.extract_strided_slice %13 {offsets = [0, 0], sizes = [1, 9], strides = [1, 1]} : vector<3x9xf32> to vector<1x9xf32>
    %460 = vector.broadcast %458 : vector<16x1xf32> to vector<16x9xf32>
    %461 = vector.broadcast %459 : vector<1x9xf32> to vector<16x9xf32>
    %462 = arith.mulf %460, %461 : vector<16x9xf32>
    %463 = vector.extract_strided_slice %457 {offsets = [0, 1], sizes = [16, 1], strides = [1, 1]} : vector<16x3xf32> to vector<16x1xf32>
    %464 = vector.extract_strided_slice %13 {offsets = [1, 0], sizes = [1, 9], strides = [1, 1]} : vector<3x9xf32> to vector<1x9xf32>
    %465 = vector.broadcast %463 : vector<16x1xf32> to vector<16x9xf32>
    %466 = vector.broadcast %464 : vector<1x9xf32> to vector<16x9xf32>
    %467 = arith.mulf %465, %466 : vector<16x9xf32>
    %468 = arith.addf %462, %467 : vector<16x9xf32>
    %469 = vector.extract_strided_slice %457 {offsets = [0, 2], sizes = [16, 1], strides = [1, 1]} : vector<16x3xf32> to vector<16x1xf32>
    %470 = vector.extract_strided_slice %13 {offsets = [2, 0], sizes = [1, 9], strides = [1, 1]} : vector<3x9xf32> to vector<1x9xf32>
    %471 = vector.broadcast %469 : vector<16x1xf32> to vector<16x9xf32>
    %472 = vector.broadcast %470 : vector<1x9xf32> to vector<16x9xf32>
    %473 = arith.mulf %471, %472 : vector<16x9xf32>
    %474 = arith.addf %468, %473 : vector<16x9xf32>
    %475 = vector.broadcast %14 : vector<1x9xf32> to vector<16x9xf32>
    %476 = arith.addf %474, %475 : vector<16x9xf32>
    %477 = vector.extract_strided_slice %476 {offsets = [0, 0], sizes = [8, 9], strides = [1, 1]} : vector<16x9xf32> to vector<8x9xf32>
    %478 = vector.extract_strided_slice %477 {offsets = [0, 0], sizes = [8, 3], strides = [1, 1]} : vector<8x9xf32> to vector<8x3xf32>
    %479 = vector.extract_strided_slice %477 {offsets = [0, 3], sizes = [8, 6], strides = [1, 1]} : vector<8x9xf32> to vector<8x6xf32>
    %480 = tpu.transpose %479, [1, 0] : vector<8x6xf32> -> vector<6x8xf32>
    %481 = vector.extract_strided_slice %480 {offsets = [0, 0], sizes = [3, 8], strides = [1, 1]} : vector<6x8xf32> to vector<3x8xf32>
    %482 = vector.extract_strided_slice %480 {offsets = [3, 0], sizes = [3, 8], strides = [1, 1]} : vector<6x8xf32> to vector<3x8xf32>
    %483 = vector.extract_strided_slice %478 {offsets = [0, 0], sizes = [8, 1], strides = [1, 1]} : vector<8x3xf32> to vector<8x1xf32>
    %484 = vector.extract_strided_slice %481 {offsets = [0, 0], sizes = [1, 8], strides = [1, 1]} : vector<3x8xf32> to vector<1x8xf32>
    %485 = vector.broadcast %483 : vector<8x1xf32> to vector<8x8xf32>
    %486 = vector.broadcast %484 : vector<1x8xf32> to vector<8x8xf32>
    %487 = arith.mulf %485, %486 : vector<8x8xf32>
    %488 = vector.extract_strided_slice %478 {offsets = [0, 1], sizes = [8, 1], strides = [1, 1]} : vector<8x3xf32> to vector<8x1xf32>
    %489 = vector.extract_strided_slice %481 {offsets = [1, 0], sizes = [1, 8], strides = [1, 1]} : vector<3x8xf32> to vector<1x8xf32>
    %490 = vector.broadcast %488 : vector<8x1xf32> to vector<8x8xf32>
    %491 = vector.broadcast %489 : vector<1x8xf32> to vector<8x8xf32>
    %492 = arith.mulf %490, %491 : vector<8x8xf32>
    %493 = vector.extract_strided_slice %478 {offsets = [0, 2], sizes = [8, 1], strides = [1, 1]} : vector<8x3xf32> to vector<8x1xf32>
    %494 = vector.extract_strided_slice %481 {offsets = [2, 0], sizes = [1, 8], strides = [1, 1]} : vector<3x8xf32> to vector<1x8xf32>
    %495 = vector.broadcast %493 : vector<8x1xf32> to vector<8x8xf32>
    %496 = vector.broadcast %494 : vector<1x8xf32> to vector<8x8xf32>
    %497 = arith.mulf %495, %496 : vector<8x8xf32>
    %498 = tpu.concatenate %487, %492, %497 in 0 : vector<8x8xf32>, vector<8x8xf32>, vector<8x8xf32> -> vector<24x8xf32>
    %cst_21 = arith.constant dense<0xFF800000> : vector<24xf32>
    %499 = vector.multi_reduction <maximumf>, %498, %cst_21 [1] : vector<24x8xf32> to vector<24xf32>
    %500 = vector.shape_cast %499 : vector<24xf32> to vector<24x1xf32>
    %501 = vector.broadcast %500 : vector<24x1xf32> to vector<24x8xf32>
    %502 = arith.subf %498, %501 : vector<24x8xf32>
    %503 = math.exp %502 : vector<24x8xf32>
    %cst_22 = arith.constant dense<0.000000e+00> : vector<24xf32>
    %504 = vector.multi_reduction <add>, %503, %cst_22 [1] : vector<24x8xf32> to vector<24xf32>
    %505 = vector.shape_cast %504 : vector<24xf32> to vector<24x1xf32>
    %506 = vector.broadcast %505 : vector<24x1xf32> to vector<24x8xf32>
    %507 = arith.divf %503, %506 : vector<24x8xf32>
    %508 = vector.extract_strided_slice %507 {offsets = [0, 0], sizes = [8, 8], strides = [1, 1]} : vector<24x8xf32> to vector<8x8xf32>
    %509 = vector.extract_strided_slice %482 {offsets = [0, 0], sizes = [1, 8], strides = [1, 1]} : vector<3x8xf32> to vector<1x8xf32>
    %510 = vector.broadcast %509 : vector<1x8xf32> to vector<8x8xf32>
    %511 = arith.mulf %508, %510 : vector<8x8xf32>
    %cst_23 = arith.constant dense<0.000000e+00> : vector<8xf32>
    %512 = vector.multi_reduction <add>, %511, %cst_23 [1] : vector<8x8xf32> to vector<8xf32>
    %513 = vector.shape_cast %512 : vector<8xf32> to vector<8x1xf32>
    %514 = vector.extract_strided_slice %507 {offsets = [8, 0], sizes = [8, 8], strides = [1, 1]} : vector<24x8xf32> to vector<8x8xf32>
    %515 = vector.extract_strided_slice %482 {offsets = [1, 0], sizes = [1, 8], strides = [1, 1]} : vector<3x8xf32> to vector<1x8xf32>
    %516 = vector.broadcast %515 : vector<1x8xf32> to vector<8x8xf32>
    %517 = arith.mulf %514, %516 : vector<8x8xf32>
    %cst_24 = arith.constant dense<0.000000e+00> : vector<8xf32>
    %518 = vector.multi_reduction <add>, %517, %cst_24 [1] : vector<8x8xf32> to vector<8xf32>
    %519 = vector.shape_cast %518 : vector<8xf32> to vector<8x1xf32>
    %520 = vector.extract_strided_slice %507 {offsets = [16, 0], sizes = [8, 8], strides = [1, 1]} : vector<24x8xf32> to vector<8x8xf32>
    %521 = vector.extract_strided_slice %482 {offsets = [2, 0], sizes = [1, 8], strides = [1, 1]} : vector<3x8xf32> to vector<1x8xf32>
    %522 = vector.broadcast %521 : vector<1x8xf32> to vector<8x8xf32>
    %523 = arith.mulf %520, %522 : vector<8x8xf32>
    %cst_25 = arith.constant dense<0.000000e+00> : vector<8xf32>
    %524 = vector.multi_reduction <add>, %523, %cst_25 [1] : vector<8x8xf32> to vector<8xf32>
    %525 = vector.shape_cast %524 : vector<8xf32> to vector<8x1xf32>
    %526 = tpu.concatenate %513, %519, %525 in 1 : vector<8x1xf32>, vector<8x1xf32>, vector<8x1xf32> -> vector<8x3xf32>
    %527 = vector.extract_strided_slice %476 {offsets = [8, 0], sizes = [8, 9], strides = [1, 1]} : vector<16x9xf32> to vector<8x9xf32>
    %528 = vector.extract_strided_slice %527 {offsets = [0, 0], sizes = [8, 3], strides = [1, 1]} : vector<8x9xf32> to vector<8x3xf32>
    %529 = vector.extract_strided_slice %527 {offsets = [0, 3], sizes = [8, 6], strides = [1, 1]} : vector<8x9xf32> to vector<8x6xf32>
    %530 = tpu.transpose %529, [1, 0] : vector<8x6xf32> -> vector<6x8xf32>
    %531 = vector.extract_strided_slice %530 {offsets = [0, 0], sizes = [3, 8], strides = [1, 1]} : vector<6x8xf32> to vector<3x8xf32>
    %532 = vector.extract_strided_slice %530 {offsets = [3, 0], sizes = [3, 8], strides = [1, 1]} : vector<6x8xf32> to vector<3x8xf32>
    %533 = vector.extract_strided_slice %528 {offsets = [0, 0], sizes = [8, 1], strides = [1, 1]} : vector<8x3xf32> to vector<8x1xf32>
    %534 = vector.extract_strided_slice %531 {offsets = [0, 0], sizes = [1, 8], strides = [1, 1]} : vector<3x8xf32> to vector<1x8xf32>
    %535 = vector.broadcast %533 : vector<8x1xf32> to vector<8x8xf32>
    %536 = vector.broadcast %534 : vector<1x8xf32> to vector<8x8xf32>
    %537 = arith.mulf %535, %536 : vector<8x8xf32>
    %538 = vector.extract_strided_slice %528 {offsets = [0, 1], sizes = [8, 1], strides = [1, 1]} : vector<8x3xf32> to vector<8x1xf32>
    %539 = vector.extract_strided_slice %531 {offsets = [1, 0], sizes = [1, 8], strides = [1, 1]} : vector<3x8xf32> to vector<1x8xf32>
    %540 = vector.broadcast %538 : vector<8x1xf32> to vector<8x8xf32>
    %541 = vector.broadcast %539 : vector<1x8xf32> to vector<8x8xf32>
    %542 = arith.mulf %540, %541 : vector<8x8xf32>
    %543 = vector.extract_strided_slice %528 {offsets = [0, 2], sizes = [8, 1], strides = [1, 1]} : vector<8x3xf32> to vector<8x1xf32>
    %544 = vector.extract_strided_slice %531 {offsets = [2, 0], sizes = [1, 8], strides = [1, 1]} : vector<3x8xf32> to vector<1x8xf32>
    %545 = vector.broadcast %543 : vector<8x1xf32> to vector<8x8xf32>
    %546 = vector.broadcast %544 : vector<1x8xf32> to vector<8x8xf32>
    %547 = arith.mulf %545, %546 : vector<8x8xf32>
    %548 = tpu.concatenate %537, %542, %547 in 0 : vector<8x8xf32>, vector<8x8xf32>, vector<8x8xf32> -> vector<24x8xf32>
    %cst_26 = arith.constant dense<0xFF800000> : vector<24xf32>
    %549 = vector.multi_reduction <maximumf>, %548, %cst_26 [1] : vector<24x8xf32> to vector<24xf32>
    %550 = vector.shape_cast %549 : vector<24xf32> to vector<24x1xf32>
    %551 = vector.broadcast %550 : vector<24x1xf32> to vector<24x8xf32>
    %552 = arith.subf %548, %551 : vector<24x8xf32>
    %553 = math.exp %552 : vector<24x8xf32>
    %cst_27 = arith.constant dense<0.000000e+00> : vector<24xf32>
    %554 = vector.multi_reduction <add>, %553, %cst_27 [1] : vector<24x8xf32> to vector<24xf32>
    %555 = vector.shape_cast %554 : vector<24xf32> to vector<24x1xf32>
    %556 = vector.broadcast %555 : vector<24x1xf32> to vector<24x8xf32>
    %557 = arith.divf %553, %556 : vector<24x8xf32>
    %558 = vector.extract_strided_slice %557 {offsets = [0, 0], sizes = [8, 8], strides = [1, 1]} : vector<24x8xf32> to vector<8x8xf32>
    %559 = vector.extract_strided_slice %532 {offsets = [0, 0], sizes = [1, 8], strides = [1, 1]} : vector<3x8xf32> to vector<1x8xf32>
    %560 = vector.broadcast %559 : vector<1x8xf32> to vector<8x8xf32>
    %561 = arith.mulf %558, %560 : vector<8x8xf32>
    %cst_28 = arith.constant dense<0.000000e+00> : vector<8xf32>
    %562 = vector.multi_reduction <add>, %561, %cst_28 [1] : vector<8x8xf32> to vector<8xf32>
    %563 = vector.shape_cast %562 : vector<8xf32> to vector<8x1xf32>
    %564 = vector.extract_strided_slice %557 {offsets = [8, 0], sizes = [8, 8], strides = [1, 1]} : vector<24x8xf32> to vector<8x8xf32>
    %565 = vector.extract_strided_slice %532 {offsets = [1, 0], sizes = [1, 8], strides = [1, 1]} : vector<3x8xf32> to vector<1x8xf32>
    %566 = vector.broadcast %565 : vector<1x8xf32> to vector<8x8xf32>
    %567 = arith.mulf %564, %566 : vector<8x8xf32>
    %cst_29 = arith.constant dense<0.000000e+00> : vector<8xf32>
    %568 = vector.multi_reduction <add>, %567, %cst_29 [1] : vector<8x8xf32> to vector<8xf32>
    %569 = vector.shape_cast %568 : vector<8xf32> to vector<8x1xf32>
    %570 = vector.extract_strided_slice %557 {offsets = [16, 0], sizes = [8, 8], strides = [1, 1]} : vector<24x8xf32> to vector<8x8xf32>
    %571 = vector.extract_strided_slice %532 {offsets = [2, 0], sizes = [1, 8], strides = [1, 1]} : vector<3x8xf32> to vector<1x8xf32>
    %572 = vector.broadcast %571 : vector<1x8xf32> to vector<8x8xf32>
    %573 = arith.mulf %570, %572 : vector<8x8xf32>
    %cst_30 = arith.constant dense<0.000000e+00> : vector<8xf32>
    %574 = vector.multi_reduction <add>, %573, %cst_30 [1] : vector<8x8xf32> to vector<8xf32>
    %575 = vector.shape_cast %574 : vector<8xf32> to vector<8x1xf32>
    %576 = tpu.concatenate %563, %569, %575 in 1 : vector<8x1xf32>, vector<8x1xf32>, vector<8x1xf32> -> vector<8x3xf32>
    %577 = tpu.concatenate %526, %576 in 0 : vector<8x3xf32>, vector<8x3xf32> -> vector<16x3xf32>
    %578 = vector.extract_strided_slice %577 {offsets = [0, 0], sizes = [16, 1], strides = [1, 1]} : vector<16x3xf32> to vector<16x1xf32>
    %579 = vector.extract_strided_slice %15 {offsets = [0, 0], sizes = [1, 3], strides = [1, 1]} : vector<3x3xf32> to vector<1x3xf32>
    %580 = vector.broadcast %578 : vector<16x1xf32> to vector<16x3xf32>
    %581 = vector.broadcast %579 : vector<1x3xf32> to vector<16x3xf32>
    %582 = arith.mulf %580, %581 : vector<16x3xf32>
    %583 = vector.extract_strided_slice %577 {offsets = [0, 1], sizes = [16, 1], strides = [1, 1]} : vector<16x3xf32> to vector<16x1xf32>
    %584 = vector.extract_strided_slice %15 {offsets = [1, 0], sizes = [1, 3], strides = [1, 1]} : vector<3x3xf32> to vector<1x3xf32>
    %585 = vector.broadcast %583 : vector<16x1xf32> to vector<16x3xf32>
    %586 = vector.broadcast %584 : vector<1x3xf32> to vector<16x3xf32>
    %587 = arith.mulf %585, %586 : vector<16x3xf32>
    %588 = arith.addf %582, %587 : vector<16x3xf32>
    %589 = vector.extract_strided_slice %577 {offsets = [0, 2], sizes = [16, 1], strides = [1, 1]} : vector<16x3xf32> to vector<16x1xf32>
    %590 = vector.extract_strided_slice %15 {offsets = [2, 0], sizes = [1, 3], strides = [1, 1]} : vector<3x3xf32> to vector<1x3xf32>
    %591 = vector.broadcast %589 : vector<16x1xf32> to vector<16x3xf32>
    %592 = vector.broadcast %590 : vector<1x3xf32> to vector<16x3xf32>
    %593 = arith.mulf %591, %592 : vector<16x3xf32>
    %594 = arith.addf %588, %593 : vector<16x3xf32>
    %595 = vector.broadcast %16 : vector<1x3xf32> to vector<16x3xf32>
    %596 = arith.addf %594, %595 : vector<16x3xf32>
    %597 = arith.addf %457, %596 : vector<16x3xf32>
    %598 = vector.extract_strided_slice %597 {offsets = [0, 0], sizes = [16, 1], strides = [1, 1]} : vector<16x3xf32> to vector<16x1xf32>
    %599 = vector.extract_strided_slice %597 {offsets = [0, 1], sizes = [16, 1], strides = [1, 1]} : vector<16x3xf32> to vector<16x1xf32>
    %600 = arith.addf %598, %599 : vector<16x1xf32>
    %601 = vector.extract_strided_slice %597 {offsets = [0, 2], sizes = [16, 1], strides = [1, 1]} : vector<16x3xf32> to vector<16x1xf32>
    %602 = arith.addf %600, %601 : vector<16x1xf32>
    %cst_31 = arith.constant 0.333333343 : f32
    %603 = vector.broadcast %cst_31 : f32 to vector<16x1xf32>
    %604 = arith.mulf %602, %603 : vector<16x1xf32>
    %605 = vector.extract_strided_slice %597 {offsets = [0, 0], sizes = [16, 1], strides = [1, 1]} : vector<16x3xf32> to vector<16x1xf32>
    %606 = arith.subf %605, %604 : vector<16x1xf32>
    %607 = vector.extract_strided_slice %597 {offsets = [0, 1], sizes = [16, 1], strides = [1, 1]} : vector<16x3xf32> to vector<16x1xf32>
    %608 = arith.subf %607, %604 : vector<16x1xf32>
    %609 = vector.extract_strided_slice %597 {offsets = [0, 2], sizes = [16, 1], strides = [1, 1]} : vector<16x3xf32> to vector<16x1xf32>
    %610 = arith.subf %609, %604 : vector<16x1xf32>
    %611 = arith.mulf %606, %606 : vector<16x1xf32>
    %612 = arith.mulf %608, %608 : vector<16x1xf32>
    %613 = arith.addf %611, %612 : vector<16x1xf32>
    %614 = arith.mulf %610, %610 : vector<16x1xf32>
    %615 = arith.addf %613, %614 : vector<16x1xf32>
    %cst_32 = arith.constant 0.333333343 : f32
    %616 = vector.broadcast %cst_32 : f32 to vector<16x1xf32>
    %617 = arith.mulf %615, %616 : vector<16x1xf32>
    %cst_33 = arith.constant 9.99999974E-6 : f32
    %618 = vector.broadcast %cst_33 : f32 to vector<16x1xf32>
    %619 = arith.addf %617, %618 : vector<16x1xf32>
    %620 = math.rsqrt %619 : vector<16x1xf32>
    %621 = vector.broadcast %604 : vector<16x1xf32> to vector<16x3xf32>
    %622 = arith.subf %597, %621 : vector<16x3xf32>
    %623 = vector.broadcast %620 : vector<16x1xf32> to vector<16x3xf32>
    %624 = arith.mulf %622, %623 : vector<16x3xf32>
    %625 = vector.broadcast %21 : vector<1x3xf32> to vector<16x3xf32>
    %626 = arith.mulf %624, %625 : vector<16x3xf32>
    %627 = vector.broadcast %22 : vector<1x3xf32> to vector<16x3xf32>
    %628 = arith.addf %626, %627 : vector<16x3xf32>
    %629 = vector.extract_strided_slice %628 {offsets = [0, 0], sizes = [16, 1], strides = [1, 1]} : vector<16x3xf32> to vector<16x1xf32>
    %630 = vector.extract_strided_slice %17 {offsets = [0, 0], sizes = [1, 32], strides = [1, 1]} : vector<3x32xf32> to vector<1x32xf32>
    %631 = vector.broadcast %629 : vector<16x1xf32> to vector<16x32xf32>
    %632 = vector.broadcast %630 : vector<1x32xf32> to vector<16x32xf32>
    %633 = arith.mulf %631, %632 : vector<16x32xf32>
    %634 = vector.extract_strided_slice %628 {offsets = [0, 1], sizes = [16, 1], strides = [1, 1]} : vector<16x3xf32> to vector<16x1xf32>
    %635 = vector.extract_strided_slice %17 {offsets = [1, 0], sizes = [1, 32], strides = [1, 1]} : vector<3x32xf32> to vector<1x32xf32>
    %636 = vector.broadcast %634 : vector<16x1xf32> to vector<16x32xf32>
    %637 = vector.broadcast %635 : vector<1x32xf32> to vector<16x32xf32>
    %638 = arith.mulf %636, %637 : vector<16x32xf32>
    %639 = arith.addf %633, %638 : vector<16x32xf32>
    %640 = vector.extract_strided_slice %628 {offsets = [0, 2], sizes = [16, 1], strides = [1, 1]} : vector<16x3xf32> to vector<16x1xf32>
    %641 = vector.extract_strided_slice %17 {offsets = [2, 0], sizes = [1, 32], strides = [1, 1]} : vector<3x32xf32> to vector<1x32xf32>
    %642 = vector.broadcast %640 : vector<16x1xf32> to vector<16x32xf32>
    %643 = vector.broadcast %641 : vector<1x32xf32> to vector<16x32xf32>
    %644 = arith.mulf %642, %643 : vector<16x32xf32>
    %645 = arith.addf %639, %644 : vector<16x32xf32>
    %646 = vector.broadcast %18 : vector<1x32xf32> to vector<16x32xf32>
    %647 = arith.addf %645, %646 : vector<16x32xf32>
    %cst_34 = arith.constant 0.000000e+00 : f32
    %648 = vector.broadcast %cst_34 : f32 to vector<16x32xf32>
    %649 = arith.maximumf %647, %648 : vector<16x32xf32>
    %650 = vector.extract_strided_slice %649 {offsets = [0, 0], sizes = [16, 1], strides = [1, 1]} : vector<16x32xf32> to vector<16x1xf32>
    %651 = vector.extract_strided_slice %19 {offsets = [0, 0], sizes = [1, 3], strides = [1, 1]} : vector<32x3xf32> to vector<1x3xf32>
    %652 = vector.broadcast %650 : vector<16x1xf32> to vector<16x3xf32>
    %653 = vector.broadcast %651 : vector<1x3xf32> to vector<16x3xf32>
    %654 = arith.mulf %652, %653 : vector<16x3xf32>
    %655 = vector.extract_strided_slice %649 {offsets = [0, 1], sizes = [16, 1], strides = [1, 1]} : vector<16x32xf32> to vector<16x1xf32>
    %656 = vector.extract_strided_slice %19 {offsets = [1, 0], sizes = [1, 3], strides = [1, 1]} : vector<32x3xf32> to vector<1x3xf32>
    %657 = vector.broadcast %655 : vector<16x1xf32> to vector<16x3xf32>
    %658 = vector.broadcast %656 : vector<1x3xf32> to vector<16x3xf32>
    %659 = arith.mulf %657, %658 : vector<16x3xf32>
    %660 = arith.addf %654, %659 : vector<16x3xf32>
    %661 = vector.extract_strided_slice %649 {offsets = [0, 2], sizes = [16, 1], strides = [1, 1]} : vector<16x32xf32> to vector<16x1xf32>
    %662 = vector.extract_strided_slice %19 {offsets = [2, 0], sizes = [1, 3], strides = [1, 1]} : vector<32x3xf32> to vector<1x3xf32>
    %663 = vector.broadcast %661 : vector<16x1xf32> to vector<16x3xf32>
    %664 = vector.broadcast %662 : vector<1x3xf32> to vector<16x3xf32>
    %665 = arith.mulf %663, %664 : vector<16x3xf32>
    %666 = arith.addf %660, %665 : vector<16x3xf32>
    %667 = vector.extract_strided_slice %649 {offsets = [0, 3], sizes = [16, 1], strides = [1, 1]} : vector<16x32xf32> to vector<16x1xf32>
    %668 = vector.extract_strided_slice %19 {offsets = [3, 0], sizes = [1, 3], strides = [1, 1]} : vector<32x3xf32> to vector<1x3xf32>
    %669 = vector.broadcast %667 : vector<16x1xf32> to vector<16x3xf32>
    %670 = vector.broadcast %668 : vector<1x3xf32> to vector<16x3xf32>
    %671 = arith.mulf %669, %670 : vector<16x3xf32>
    %672 = arith.addf %666, %671 : vector<16x3xf32>
    %673 = vector.extract_strided_slice %649 {offsets = [0, 4], sizes = [16, 1], strides = [1, 1]} : vector<16x32xf32> to vector<16x1xf32>
    %674 = vector.extract_strided_slice %19 {offsets = [4, 0], sizes = [1, 3], strides = [1, 1]} : vector<32x3xf32> to vector<1x3xf32>
    %675 = vector.broadcast %673 : vector<16x1xf32> to vector<16x3xf32>
    %676 = vector.broadcast %674 : vector<1x3xf32> to vector<16x3xf32>
    %677 = arith.mulf %675, %676 : vector<16x3xf32>
    %678 = arith.addf %672, %677 : vector<16x3xf32>
    %679 = vector.extract_strided_slice %649 {offsets = [0, 5], sizes = [16, 1], strides = [1, 1]} : vector<16x32xf32> to vector<16x1xf32>
    %680 = vector.extract_strided_slice %19 {offsets = [5, 0], sizes = [1, 3], strides = [1, 1]} : vector<32x3xf32> to vector<1x3xf32>
    %681 = vector.broadcast %679 : vector<16x1xf32> to vector<16x3xf32>
    %682 = vector.broadcast %680 : vector<1x3xf32> to vector<16x3xf32>
    %683 = arith.mulf %681, %682 : vector<16x3xf32>
    %684 = arith.addf %678, %683 : vector<16x3xf32>
    %685 = vector.extract_strided_slice %649 {offsets = [0, 6], sizes = [16, 1], strides = [1, 1]} : vector<16x32xf32> to vector<16x1xf32>
    %686 = vector.extract_strided_slice %19 {offsets = [6, 0], sizes = [1, 3], strides = [1, 1]} : vector<32x3xf32> to vector<1x3xf32>
    %687 = vector.broadcast %685 : vector<16x1xf32> to vector<16x3xf32>
    %688 = vector.broadcast %686 : vector<1x3xf32> to vector<16x3xf32>
    %689 = arith.mulf %687, %688 : vector<16x3xf32>
    %690 = arith.addf %684, %689 : vector<16x3xf32>
    %691 = vector.extract_strided_slice %649 {offsets = [0, 7], sizes = [16, 1], strides = [1, 1]} : vector<16x32xf32> to vector<16x1xf32>
    %692 = vector.extract_strided_slice %19 {offsets = [7, 0], sizes = [1, 3], strides = [1, 1]} : vector<32x3xf32> to vector<1x3xf32>
    %693 = vector.broadcast %691 : vector<16x1xf32> to vector<16x3xf32>
    %694 = vector.broadcast %692 : vector<1x3xf32> to vector<16x3xf32>
    %695 = arith.mulf %693, %694 : vector<16x3xf32>
    %696 = arith.addf %690, %695 : vector<16x3xf32>
    %697 = vector.extract_strided_slice %649 {offsets = [0, 8], sizes = [16, 1], strides = [1, 1]} : vector<16x32xf32> to vector<16x1xf32>
    %698 = vector.extract_strided_slice %19 {offsets = [8, 0], sizes = [1, 3], strides = [1, 1]} : vector<32x3xf32> to vector<1x3xf32>
    %699 = vector.broadcast %697 : vector<16x1xf32> to vector<16x3xf32>
    %700 = vector.broadcast %698 : vector<1x3xf32> to vector<16x3xf32>
    %701 = arith.mulf %699, %700 : vector<16x3xf32>
    %702 = arith.addf %696, %701 : vector<16x3xf32>
    %703 = vector.extract_strided_slice %649 {offsets = [0, 9], sizes = [16, 1], strides = [1, 1]} : vector<16x32xf32> to vector<16x1xf32>
    %704 = vector.extract_strided_slice %19 {offsets = [9, 0], sizes = [1, 3], strides = [1, 1]} : vector<32x3xf32> to vector<1x3xf32>
    %705 = vector.broadcast %703 : vector<16x1xf32> to vector<16x3xf32>
    %706 = vector.broadcast %704 : vector<1x3xf32> to vector<16x3xf32>
    %707 = arith.mulf %705, %706 : vector<16x3xf32>
    %708 = arith.addf %702, %707 : vector<16x3xf32>
    %709 = vector.extract_strided_slice %649 {offsets = [0, 10], sizes = [16, 1], strides = [1, 1]} : vector<16x32xf32> to vector<16x1xf32>
    %710 = vector.extract_strided_slice %19 {offsets = [10, 0], sizes = [1, 3], strides = [1, 1]} : vector<32x3xf32> to vector<1x3xf32>
    %711 = vector.broadcast %709 : vector<16x1xf32> to vector<16x3xf32>
    %712 = vector.broadcast %710 : vector<1x3xf32> to vector<16x3xf32>
    %713 = arith.mulf %711, %712 : vector<16x3xf32>
    %714 = arith.addf %708, %713 : vector<16x3xf32>
    %715 = vector.extract_strided_slice %649 {offsets = [0, 11], sizes = [16, 1], strides = [1, 1]} : vector<16x32xf32> to vector<16x1xf32>
    %716 = vector.extract_strided_slice %19 {offsets = [11, 0], sizes = [1, 3], strides = [1, 1]} : vector<32x3xf32> to vector<1x3xf32>
    %717 = vector.broadcast %715 : vector<16x1xf32> to vector<16x3xf32>
    %718 = vector.broadcast %716 : vector<1x3xf32> to vector<16x3xf32>
    %719 = arith.mulf %717, %718 : vector<16x3xf32>
    %720 = arith.addf %714, %719 : vector<16x3xf32>
    %721 = vector.extract_strided_slice %649 {offsets = [0, 12], sizes = [16, 1], strides = [1, 1]} : vector<16x32xf32> to vector<16x1xf32>
    %722 = vector.extract_strided_slice %19 {offsets = [12, 0], sizes = [1, 3], strides = [1, 1]} : vector<32x3xf32> to vector<1x3xf32>
    %723 = vector.broadcast %721 : vector<16x1xf32> to vector<16x3xf32>
    %724 = vector.broadcast %722 : vector<1x3xf32> to vector<16x3xf32>
    %725 = arith.mulf %723, %724 : vector<16x3xf32>
    %726 = arith.addf %720, %725 : vector<16x3xf32>
    %727 = vector.extract_strided_slice %649 {offsets = [0, 13], sizes = [16, 1], strides = [1, 1]} : vector<16x32xf32> to vector<16x1xf32>
    %728 = vector.extract_strided_slice %19 {offsets = [13, 0], sizes = [1, 3], strides = [1, 1]} : vector<32x3xf32> to vector<1x3xf32>
    %729 = vector.broadcast %727 : vector<16x1xf32> to vector<16x3xf32>
    %730 = vector.broadcast %728 : vector<1x3xf32> to vector<16x3xf32>
    %731 = arith.mulf %729, %730 : vector<16x3xf32>
    %732 = arith.addf %726, %731 : vector<16x3xf32>
    %733 = vector.extract_strided_slice %649 {offsets = [0, 14], sizes = [16, 1], strides = [1, 1]} : vector<16x32xf32> to vector<16x1xf32>
    %734 = vector.extract_strided_slice %19 {offsets = [14, 0], sizes = [1, 3], strides = [1, 1]} : vector<32x3xf32> to vector<1x3xf32>
    %735 = vector.broadcast %733 : vector<16x1xf32> to vector<16x3xf32>
    %736 = vector.broadcast %734 : vector<1x3xf32> to vector<16x3xf32>
    %737 = arith.mulf %735, %736 : vector<16x3xf32>
    %738 = arith.addf %732, %737 : vector<16x3xf32>
    %739 = vector.extract_strided_slice %649 {offsets = [0, 15], sizes = [16, 1], strides = [1, 1]} : vector<16x32xf32> to vector<16x1xf32>
    %740 = vector.extract_strided_slice %19 {offsets = [15, 0], sizes = [1, 3], strides = [1, 1]} : vector<32x3xf32> to vector<1x3xf32>
    %741 = vector.broadcast %739 : vector<16x1xf32> to vector<16x3xf32>
    %742 = vector.broadcast %740 : vector<1x3xf32> to vector<16x3xf32>
    %743 = arith.mulf %741, %742 : vector<16x3xf32>
    %744 = arith.addf %738, %743 : vector<16x3xf32>
    %745 = vector.extract_strided_slice %649 {offsets = [0, 16], sizes = [16, 1], strides = [1, 1]} : vector<16x32xf32> to vector<16x1xf32>
    %746 = vector.extract_strided_slice %19 {offsets = [16, 0], sizes = [1, 3], strides = [1, 1]} : vector<32x3xf32> to vector<1x3xf32>
    %747 = vector.broadcast %745 : vector<16x1xf32> to vector<16x3xf32>
    %748 = vector.broadcast %746 : vector<1x3xf32> to vector<16x3xf32>
    %749 = arith.mulf %747, %748 : vector<16x3xf32>
    %750 = arith.addf %744, %749 : vector<16x3xf32>
    %751 = vector.extract_strided_slice %649 {offsets = [0, 17], sizes = [16, 1], strides = [1, 1]} : vector<16x32xf32> to vector<16x1xf32>
    %752 = vector.extract_strided_slice %19 {offsets = [17, 0], sizes = [1, 3], strides = [1, 1]} : vector<32x3xf32> to vector<1x3xf32>
    %753 = vector.broadcast %751 : vector<16x1xf32> to vector<16x3xf32>
    %754 = vector.broadcast %752 : vector<1x3xf32> to vector<16x3xf32>
    %755 = arith.mulf %753, %754 : vector<16x3xf32>
    %756 = arith.addf %750, %755 : vector<16x3xf32>
    %757 = vector.extract_strided_slice %649 {offsets = [0, 18], sizes = [16, 1], strides = [1, 1]} : vector<16x32xf32> to vector<16x1xf32>
    %758 = vector.extract_strided_slice %19 {offsets = [18, 0], sizes = [1, 3], strides = [1, 1]} : vector<32x3xf32> to vector<1x3xf32>
    %759 = vector.broadcast %757 : vector<16x1xf32> to vector<16x3xf32>
    %760 = vector.broadcast %758 : vector<1x3xf32> to vector<16x3xf32>
    %761 = arith.mulf %759, %760 : vector<16x3xf32>
    %762 = arith.addf %756, %761 : vector<16x3xf32>
    %763 = vector.extract_strided_slice %649 {offsets = [0, 19], sizes = [16, 1], strides = [1, 1]} : vector<16x32xf32> to vector<16x1xf32>
    %764 = vector.extract_strided_slice %19 {offsets = [19, 0], sizes = [1, 3], strides = [1, 1]} : vector<32x3xf32> to vector<1x3xf32>
    %765 = vector.broadcast %763 : vector<16x1xf32> to vector<16x3xf32>
    %766 = vector.broadcast %764 : vector<1x3xf32> to vector<16x3xf32>
    %767 = arith.mulf %765, %766 : vector<16x3xf32>
    %768 = arith.addf %762, %767 : vector<16x3xf32>
    %769 = vector.extract_strided_slice %649 {offsets = [0, 20], sizes = [16, 1], strides = [1, 1]} : vector<16x32xf32> to vector<16x1xf32>
    %770 = vector.extract_strided_slice %19 {offsets = [20, 0], sizes = [1, 3], strides = [1, 1]} : vector<32x3xf32> to vector<1x3xf32>
    %771 = vector.broadcast %769 : vector<16x1xf32> to vector<16x3xf32>
    %772 = vector.broadcast %770 : vector<1x3xf32> to vector<16x3xf32>
    %773 = arith.mulf %771, %772 : vector<16x3xf32>
    %774 = arith.addf %768, %773 : vector<16x3xf32>
    %775 = vector.extract_strided_slice %649 {offsets = [0, 21], sizes = [16, 1], strides = [1, 1]} : vector<16x32xf32> to vector<16x1xf32>
    %776 = vector.extract_strided_slice %19 {offsets = [21, 0], sizes = [1, 3], strides = [1, 1]} : vector<32x3xf32> to vector<1x3xf32>
    %777 = vector.broadcast %775 : vector<16x1xf32> to vector<16x3xf32>
    %778 = vector.broadcast %776 : vector<1x3xf32> to vector<16x3xf32>
    %779 = arith.mulf %777, %778 : vector<16x3xf32>
    %780 = arith.addf %774, %779 : vector<16x3xf32>
    %781 = vector.extract_strided_slice %649 {offsets = [0, 22], sizes = [16, 1], strides = [1, 1]} : vector<16x32xf32> to vector<16x1xf32>
    %782 = vector.extract_strided_slice %19 {offsets = [22, 0], sizes = [1, 3], strides = [1, 1]} : vector<32x3xf32> to vector<1x3xf32>
    %783 = vector.broadcast %781 : vector<16x1xf32> to vector<16x3xf32>
    %784 = vector.broadcast %782 : vector<1x3xf32> to vector<16x3xf32>
    %785 = arith.mulf %783, %784 : vector<16x3xf32>
    %786 = arith.addf %780, %785 : vector<16x3xf32>
    %787 = vector.extract_strided_slice %649 {offsets = [0, 23], sizes = [16, 1], strides = [1, 1]} : vector<16x32xf32> to vector<16x1xf32>
    %788 = vector.extract_strided_slice %19 {offsets = [23, 0], sizes = [1, 3], strides = [1, 1]} : vector<32x3xf32> to vector<1x3xf32>
    %789 = vector.broadcast %787 : vector<16x1xf32> to vector<16x3xf32>
    %790 = vector.broadcast %788 : vector<1x3xf32> to vector<16x3xf32>
    %791 = arith.mulf %789, %790 : vector<16x3xf32>
    %792 = arith.addf %786, %791 : vector<16x3xf32>
    %793 = vector.extract_strided_slice %649 {offsets = [0, 24], sizes = [16, 1], strides = [1, 1]} : vector<16x32xf32> to vector<16x1xf32>
    %794 = vector.extract_strided_slice %19 {offsets = [24, 0], sizes = [1, 3], strides = [1, 1]} : vector<32x3xf32> to vector<1x3xf32>
    %795 = vector.broadcast %793 : vector<16x1xf32> to vector<16x3xf32>
    %796 = vector.broadcast %794 : vector<1x3xf32> to vector<16x3xf32>
    %797 = arith.mulf %795, %796 : vector<16x3xf32>
    %798 = arith.addf %792, %797 : vector<16x3xf32>
    %799 = vector.extract_strided_slice %649 {offsets = [0, 25], sizes = [16, 1], strides = [1, 1]} : vector<16x32xf32> to vector<16x1xf32>
    %800 = vector.extract_strided_slice %19 {offsets = [25, 0], sizes = [1, 3], strides = [1, 1]} : vector<32x3xf32> to vector<1x3xf32>
    %801 = vector.broadcast %799 : vector<16x1xf32> to vector<16x3xf32>
    %802 = vector.broadcast %800 : vector<1x3xf32> to vector<16x3xf32>
    %803 = arith.mulf %801, %802 : vector<16x3xf32>
    %804 = arith.addf %798, %803 : vector<16x3xf32>
    %805 = vector.extract_strided_slice %649 {offsets = [0, 26], sizes = [16, 1], strides = [1, 1]} : vector<16x32xf32> to vector<16x1xf32>
    %806 = vector.extract_strided_slice %19 {offsets = [26, 0], sizes = [1, 3], strides = [1, 1]} : vector<32x3xf32> to vector<1x3xf32>
    %807 = vector.broadcast %805 : vector<16x1xf32> to vector<16x3xf32>
    %808 = vector.broadcast %806 : vector<1x3xf32> to vector<16x3xf32>
    %809 = arith.mulf %807, %808 : vector<16x3xf32>
    %810 = arith.addf %804, %809 : vector<16x3xf32>
    %811 = vector.extract_strided_slice %649 {offsets = [0, 27], sizes = [16, 1], strides = [1, 1]} : vector<16x32xf32> to vector<16x1xf32>
    %812 = vector.extract_strided_slice %19 {offsets = [27, 0], sizes = [1, 3], strides = [1, 1]} : vector<32x3xf32> to vector<1x3xf32>
    %813 = vector.broadcast %811 : vector<16x1xf32> to vector<16x3xf32>
    %814 = vector.broadcast %812 : vector<1x3xf32> to vector<16x3xf32>
    %815 = arith.mulf %813, %814 : vector<16x3xf32>
    %816 = arith.addf %810, %815 : vector<16x3xf32>
    %817 = vector.extract_strided_slice %649 {offsets = [0, 28], sizes = [16, 1], strides = [1, 1]} : vector<16x32xf32> to vector<16x1xf32>
    %818 = vector.extract_strided_slice %19 {offsets = [28, 0], sizes = [1, 3], strides = [1, 1]} : vector<32x3xf32> to vector<1x3xf32>
    %819 = vector.broadcast %817 : vector<16x1xf32> to vector<16x3xf32>
    %820 = vector.broadcast %818 : vector<1x3xf32> to vector<16x3xf32>
    %821 = arith.mulf %819, %820 : vector<16x3xf32>
    %822 = arith.addf %816, %821 : vector<16x3xf32>
    %823 = vector.extract_strided_slice %649 {offsets = [0, 29], sizes = [16, 1], strides = [1, 1]} : vector<16x32xf32> to vector<16x1xf32>
    %824 = vector.extract_strided_slice %19 {offsets = [29, 0], sizes = [1, 3], strides = [1, 1]} : vector<32x3xf32> to vector<1x3xf32>
    %825 = vector.broadcast %823 : vector<16x1xf32> to vector<16x3xf32>
    %826 = vector.broadcast %824 : vector<1x3xf32> to vector<16x3xf32>
    %827 = arith.mulf %825, %826 : vector<16x3xf32>
    %828 = arith.addf %822, %827 : vector<16x3xf32>
    %829 = vector.extract_strided_slice %649 {offsets = [0, 30], sizes = [16, 1], strides = [1, 1]} : vector<16x32xf32> to vector<16x1xf32>
    %830 = vector.extract_strided_slice %19 {offsets = [30, 0], sizes = [1, 3], strides = [1, 1]} : vector<32x3xf32> to vector<1x3xf32>
    %831 = vector.broadcast %829 : vector<16x1xf32> to vector<16x3xf32>
    %832 = vector.broadcast %830 : vector<1x3xf32> to vector<16x3xf32>
    %833 = arith.mulf %831, %832 : vector<16x3xf32>
    %834 = arith.addf %828, %833 : vector<16x3xf32>
    %835 = vector.extract_strided_slice %649 {offsets = [0, 31], sizes = [16, 1], strides = [1, 1]} : vector<16x32xf32> to vector<16x1xf32>
    %836 = vector.extract_strided_slice %19 {offsets = [31, 0], sizes = [1, 3], strides = [1, 1]} : vector<32x3xf32> to vector<1x3xf32>
    %837 = vector.broadcast %835 : vector<16x1xf32> to vector<16x3xf32>
    %838 = vector.broadcast %836 : vector<1x3xf32> to vector<16x3xf32>
    %839 = arith.mulf %837, %838 : vector<16x3xf32>
    %840 = arith.addf %834, %839 : vector<16x3xf32>
    %841 = vector.broadcast %20 : vector<1x3xf32> to vector<16x3xf32>
    %842 = arith.addf %840, %841 : vector<16x3xf32>
    %843 = arith.addf %628, %842 : vector<16x3xf32>
    %844 = vector.extract_strided_slice %843 {offsets = [0, 0], sizes = [16, 1], strides = [1, 1]} : vector<16x3xf32> to vector<16x1xf32>
    %845 = vector.extract_strided_slice %843 {offsets = [0, 1], sizes = [16, 1], strides = [1, 1]} : vector<16x3xf32> to vector<16x1xf32>
    %846 = arith.addf %844, %845 : vector<16x1xf32>
    %847 = vector.extract_strided_slice %843 {offsets = [0, 2], sizes = [16, 1], strides = [1, 1]} : vector<16x3xf32> to vector<16x1xf32>
    %848 = arith.addf %846, %847 : vector<16x1xf32>
    %cst_35 = arith.constant 0.333333343 : f32
    %849 = vector.broadcast %cst_35 : f32 to vector<16x1xf32>
    %850 = arith.mulf %848, %849 : vector<16x1xf32>
    %851 = vector.extract_strided_slice %843 {offsets = [0, 0], sizes = [16, 1], strides = [1, 1]} : vector<16x3xf32> to vector<16x1xf32>
    %852 = arith.subf %851, %850 : vector<16x1xf32>
    %853 = vector.extract_strided_slice %843 {offsets = [0, 1], sizes = [16, 1], strides = [1, 1]} : vector<16x3xf32> to vector<16x1xf32>
    %854 = arith.subf %853, %850 : vector<16x1xf32>
    %855 = vector.extract_strided_slice %843 {offsets = [0, 2], sizes = [16, 1], strides = [1, 1]} : vector<16x3xf32> to vector<16x1xf32>
    %856 = arith.subf %855, %850 : vector<16x1xf32>
    %857 = arith.mulf %852, %852 : vector<16x1xf32>
    %858 = arith.mulf %854, %854 : vector<16x1xf32>
    %859 = arith.addf %857, %858 : vector<16x1xf32>
    %860 = arith.mulf %856, %856 : vector<16x1xf32>
    %861 = arith.addf %859, %860 : vector<16x1xf32>
    %cst_36 = arith.constant 0.333333343 : f32
    %862 = vector.broadcast %cst_36 : f32 to vector<16x1xf32>
    %863 = arith.mulf %861, %862 : vector<16x1xf32>
    %cst_37 = arith.constant 9.99999974E-6 : f32
    %864 = vector.broadcast %cst_37 : f32 to vector<16x1xf32>
    %865 = arith.addf %863, %864 : vector<16x1xf32>
    %866 = math.rsqrt %865 : vector<16x1xf32>
    %867 = vector.broadcast %850 : vector<16x1xf32> to vector<16x3xf32>
    %868 = arith.subf %843, %867 : vector<16x3xf32>
    %869 = vector.broadcast %866 : vector<16x1xf32> to vector<16x3xf32>
    %870 = arith.mulf %868, %869 : vector<16x3xf32>
    %871 = vector.broadcast %23 : vector<1x3xf32> to vector<16x3xf32>
    %872 = arith.mulf %870, %871 : vector<16x3xf32>
    %873 = vector.broadcast %24 : vector<1x3xf32> to vector<16x3xf32>
    %874 = arith.addf %872, %873 : vector<16x3xf32>
    %875 = vector.extract_strided_slice %874 {offsets = [0, 0], sizes = [8, 3], strides = [1, 1]} : vector<16x3xf32> to vector<8x3xf32>
    %876 = vector.extract_strided_slice %874 {offsets = [8, 0], sizes = [8, 3], strides = [1, 1]} : vector<16x3xf32> to vector<8x3xf32>
    %877 = arith.addf %875, %876 : vector<8x3xf32>
    %cst_38 = arith.constant 5.000000e-01 : f32
    %878 = vector.broadcast %cst_38 : f32 to vector<8x3xf32>
    %879 = arith.mulf %877, %878 : vector<8x3xf32>
    %880 = vector.extract_strided_slice %879 {offsets = [0, 0], sizes = [8, 1], strides = [1, 1]} : vector<8x3xf32> to vector<8x1xf32>
    %881 = vector.extract_strided_slice %25 {offsets = [0, 0], sizes = [1, 1], strides = [1, 1]} : vector<1x4xf32> to vector<1x1xf32>
    %882 = vector.broadcast %881 : vector<1x1xf32> to vector<8x1xf32>
    %883 = arith.mulf %880, %882 : vector<8x1xf32>
    %884 = vector.extract_strided_slice %879 {offsets = [0, 1], sizes = [8, 1], strides = [1, 1]} : vector<8x3xf32> to vector<8x1xf32>
    %885 = vector.extract_strided_slice %25 {offsets = [0, 1], sizes = [1, 1], strides = [1, 1]} : vector<1x4xf32> to vector<1x1xf32>
    %886 = vector.broadcast %885 : vector<1x1xf32> to vector<8x1xf32>
    %887 = arith.mulf %884, %886 : vector<8x1xf32>
    %888 = arith.addf %883, %887 : vector<8x1xf32>
    %889 = vector.extract_strided_slice %879 {offsets = [0, 2], sizes = [8, 1], strides = [1, 1]} : vector<8x3xf32> to vector<8x1xf32>
    %890 = vector.extract_strided_slice %25 {offsets = [0, 2], sizes = [1, 1], strides = [1, 1]} : vector<1x4xf32> to vector<1x1xf32>
    %891 = vector.broadcast %890 : vector<1x1xf32> to vector<8x1xf32>
    %892 = arith.mulf %889, %891 : vector<8x1xf32>
    %893 = arith.addf %888, %892 : vector<8x1xf32>
    %894 = vector.extract_strided_slice %25 {offsets = [0, 3], sizes = [1, 1], strides = [1, 1]} : vector<1x4xf32> to vector<1x1xf32>
    %895 = vector.broadcast %894 : vector<1x1xf32> to vector<8x1xf32>
    %896 = arith.addf %893, %895 : vector<8x1xf32>
    %c0_39 = arith.constant 0 : index
    %c0_40 = arith.constant 0 : index
    %897 = vector.load %arg2[%c0_39, %c0_40] : memref<8x1xf32, #tpu.memory_space<vmem>>, vector<8x1xf32>
    tpu.vector_store %arg2[%c0_39, %c0_40], %896 {strides = array<i32>} : memref<8x1xf32, #tpu.memory_space<vmem>>, vector<8x1xf32>,
    return
  }
}

</mosaic_0001>

<bundles_post_ra>
// kernel: transformer_forward.1
= control target key start
LH: loop header
LB: loop body
LE: loop exit
PB: predicated region body
PF: predicated region fallthrough
CT: control target
= control target key end

     0   :  { %v26_v0 = vlaneseq  ;;  %v3941_v1 = vmov 1   ;;  %v3939_v2 = vmov 0   ;;  %s2637_s13 = smov 3   ;;  %v3879_v14 = vmov 2   ;;  %s2640_s16 = smov 127   ;;  %s3876_s1 = inlined_call_operand.vmem [shape: f32[104,32], index: 1, kind: input, shape index: {}]   ;;  %s3877_s0 = inlined_call_operand.vmem [shape: f32[8,6], index: 0, kind: input, shape index: {}]   ;;  %s3878_s2 = inlined_call_operand.vmem [shape: f32[8,1], index: 2, kind: output, shape index: {}]  }
   0x1   :  { %2396 = vset.pattern.permute.xlu0 %v3941_v1  ;;  %2395 = vset.pattern.permute.xlu1 %v3939_v2  ;;  %v23_v4 = vld [vmem:[%s3876_s1 + $0x60] sm:$0xff]  ;;  %vm160_vm0 = vcmask 64512   ;;  %vm218_vm1 = vcmask 7168   ;;  %vm220_vm2 = vcmask 15360   ;;  %s2641_s17 = smov 126   ;;  %s2642_s18 = smov 1  }
   0x2   :  { %v2690_v3 = vshrl.u32 %v26_v0, 7  ;;  %v24_v5 = vld [vmem:[%s3877_s0] sm:$0xff]  ;;  %s2638_s0 = smov 125   ;;  %s2643_s19 = smov 2  }
   0x3   :  { %v25_v9 = vmul.f32 1.7320508, %v24_v5  ;;  %v2731_v19 = vld [vmem:[%s3876_s1] sm:$0xff] }
   0x4   :  { %v2699_v6 = vsub.s32 4, %v2690_v3  ;;  %v2702_v7 = vsub.s32 3, %v2690_v3  ;;  %v2723_v17 = vsub.s32 1, %v2690_v3  ;;  %v2726_v18 = vsub.s32 0, %v2690_v3 }
   0x5   :  { %v2738_v24 = vsub.s32 2, %v2690_v3 }
   0x6   :  { %v34_v8 = vrot.slane %v23_v4, %v2699_v6  ;;  %v29_v10 = vrot.slane %v23_v4, %v2702_v7  ;;  %v70_v21 = vrot.slane %v2731_v19, %v2723_v17  ;;  %v56_v22 = vrot.slane %v2731_v19, %v2726_v18 }
   0x7   :  { %v86_v29 = vrot.slane %v2731_v19, %v2738_v24  ;;  %v94_v37 = vrot.slane %v2731_v19, %v2702_v7 }
   0x8   :  { %36 = vrot.lane.b32.xlu0 %v34_v8, %s2637_s13  ;;  %v2706_v11 = vadd.f32 %v29_v10, %v25_v9 }
   0xa   :  { %46 = vperm.xlu1 %2395, %v2706_v11  }
  0x7a   :  { %v37_v12 = vpop.permute.xlu0 %36 }
  0x7b   :  { %v39_v13 = vadd.f32 %v37_v12, %v25_v9 }
  0x7d   :  { %41 = vrot.lane.b32.xlu0 %v39_v13, %s2638_s0 }
  0x81   :  { %60 = vperm.xlu0 %2396, %v2706_v11  }
  0x85   :  { %2399 = vset.pattern.permute.xlu0 %v3879_v14 }
  0x89   :  { %v47_v16 = vpop.permute.xlu1 %46 }
  0x8a   :  { %v57_v27 = vmul.f32 %v56_v22, %v47_v16 }
  0xef   :  { %v2712_v15 = vpop.permute.xlu0 %41 }
  0xf0   :  { %80 = vperm.xlu0 %2399, %v2712_v15   ;;  %50 = vperm.xlu1 %2395, %v2712_v15  }
  0xf4   :  { %2397 = vset.pattern.permute.xlu1 %v3941_v1  ;;  %2400 = vset.pattern.permute.xlu0 %v3939_v2 }
  0xf5   :  { %64 = vperm.xlu1 %2397, %v2712_v15  }
  0xf9   :  { %2398 = vset.pattern.permute.xlu1 %v3879_v14 }
  0xfa   :  { %76 = vperm.xlu1 %2398, %v2706_v11  }
  0xfe   :  { %2401 = vset.pattern.permute.xlu1 %v3941_v1 }
 0x100   :  { %v61_v23 = vpop.permute.xlu0 %60 }
 0x101   :  { %v71_v26 = vmul.f32 %v70_v21, %v61_v23 }
 0x103   :  { %v73_v33 = vadd.f32 %v71_v26, %v57_v27 }
 0x16f   :  { %v51_v20 = vpop.permute.xlu1 %50  ;;  %v81_v31 = vpop.permute.xlu0 %80 }
 0x170   :  { %v58_v30 = vmul.f32 %v56_v22, %v51_v20  ;;  %v88_v36 = vmul.f32 %v86_v29, %v81_v31 }
 0x174   :  { %v65_v25 = vpop.permute.xlu1 %64 }
 0x175   :  { %v72_v28 = vmul.f32 %v70_v21, %v65_v25 }
 0x177   :  { %v74_v34 = vadd.f32 %v72_v28, %v58_v30 }
 0x179   :  { %v77_v32 = vpop.permute.xlu1 %76  ;;  %v90_v39 = vadd.f32 %v88_v36, %v74_v34 }
 0x17a   :  { %v87_v35 = vmul.f32 %v86_v29, %v77_v32 }
 0x17b   :  { %v96_v41 = vadd.f32 %v94_v37, %v90_v39 }
 0x17c   :  { %v89_v38 = vadd.f32 %v87_v35, %v73_v33 }
 0x17e   :  { %v95_v40 = vadd.f32 %v94_v37, %v89_v38 }
 0x180   :  { %134 = vperm.xlu0 %2400, %v95_v40   ;;  %98 = vrot.lane.b32.xlu1 %v95_v40, %s2638_s0 }
 0x184   :  { %2404 = vset.pattern.permute.xlu0 %v3941_v1  ;;  %223 = vrot.lane.b32.xlu1 %v96_v41, %s2638_s0 }
 0x185   :  { %268 = vperm.xlu0 %2404, %v96_v41  }
 0x188   :  { %143 = vperm.xlu1 %2401, %v95_v40  }
 0x18c   :  { %2402 = vset.pattern.permute.xlu1 %v3879_v14 }
 0x18d   :  { %152 = vperm.xlu1 %2402, %v95_v40  }
 0x191   :  { %2403 = vset.pattern.permute.xlu1 %v3939_v2 }
 0x192   :  { %259 = vperm.xlu1 %2403, %v96_v41  }
 0x196   :  { %2405 = vset.pattern.permute.xlu1 %v3879_v14 }
 0x197   :  { %277 = vperm.xlu1 %2405, %v96_v41  }
 0x1f2   :  { %v99_v42 = vpop.permute.xlu1 %98 }
 0x1f3   :  { %101 = vxpose.xlu0.b32.start.end [1/1] (short) (narrow) %v99_v42, 8 }
 0x1f6   :  { %v224_v43 = vpop.permute.xlu1 %223 }
 0x1f7   :  { %226 = vxpose.xlu1.b32.start.end [1/1] (short) (narrow) %v224_v43, 8 }
 0x1ff   :  { %v135_v46 = vpop.permute.xlu0 %134 }
 0x204   :  { %v269_v48 = vpop.permute.xlu0 %268 }
 0x207   :  { %v144_v44 = vpop.permute.xlu1 %143 }
 0x20c   :  { %v153_v45 = vpop.permute.xlu1 %152 }
 0x211   :  { %v260_v47 = vpop.permute.xlu1 %259 }
 0x215   :  { %2406 = vset.pattern.permute.xlu1 %v3939_v2 }
 0x216   :  { %v278_v49 = vpop.permute.xlu1 %277 }
 0x21c   :  { %2407 = vset.pattern.permute.xlu0 %v3939_v2 }
 0x273   :  { %v2752_v50 = vpop.trf.xlu0 }
 0x274   :  { %v140_v51 = vrot.slane %v2752_v50, %v2726_v18  ;;  %v149_v52 = vrot.slane %v2752_v50, %v2723_v17  ;;  %v158_v53 = vrot.slane %v2752_v50, %v2738_v24 }
 0x276   :  { %v141_v54 = vmul.f32 %v140_v51, %v135_v46  ;;  %v150_v55 = vmul.f32 %v149_v52, %v144_v44  ;;  %v159_v59 = vmul.f32 %v158_v53, %v153_v45 }
 0x277   :  { %v2760_v56 = vpop.trf.xlu1 }
 0x278   :  { %v161_v57 = vsel %vm160_vm0, %v141_v54, -inf  ;;  %v164_v58 = vsel %vm160_vm0, %v150_v55, -inf  ;;  %v265_v60 = vrot.slane %v2760_v56, %v2726_v18  ;;  %v274_v61 = vrot.slane %v2760_v56, %v2723_v17 }
 0x279   :  { %162 = vmax.xlane.f32.xlu0 %v161_v57  ;;  %165 = vmax.xlane.f32.xlu1 %v164_v58  ;;  %v167_v63 = vsel %vm160_vm0, %v159_v59, -inf  ;;  %v283_v5 = vrot.slane %v2760_v56, %v2738_v24 }
 0x27a   :  { %v266_v62 = vmul.f32 %v265_v60, %v260_v47  ;;  %v275_v4 = vmul.f32 %v274_v61, %v269_v48  ;;  %v205_v61 = vrot.slane %v2752_v50, %v2699_v6 }
 0x27b   :  { %v284_v9 = vmul.f32 %v283_v5, %v278_v49 }
 0x27c   :  { %v285_v0 = vsel %vm160_vm0, %v266_v62, -inf  ;;  %v288_v8 = vsel %vm160_vm0, %v275_v4, -inf }
 0x27d   :  { %168 = vmax.xlane.f32.xlu1 %v167_v63  ;;  %286 = vmax.xlane.f32.xlu0 %v285_v0  ;;  %v291_v10 = vsel %vm160_vm0, %v284_v9, -inf }
 0x281   :  { %289 = vmax.xlane.f32.xlu0 %v288_v8  ;;  %v321_v8 = vrot.slane %v2760_v56, %v2702_v7 }
 0x285   :  { %292 = vmax.xlane.f32.xlu0 %v291_v10  ;;  %v2789_v10 = vsub.s32 5, %v2690_v3 }
 0x306   :  { %v163_v12 = vpop.xlane.xlu0 %162  ;;  %v166_v13 = vpop.xlane.xlu1 %165 }
 0x307   :  { %v170_v16 = vsub.f32 %v141_v54, %v163_v12  ;;  %v171_v20 = vsub.f32 %v150_v55, %v166_v13 }
 0x309   :  { %v173_v21 = vmul.f32 1.442695, %v170_v16  ;;  %v175_v22 = vmul.f32 1.442695, %v171_v20 }
 0x30a   :  { %v287_v23 = vpop.xlane.xlu0 %286  ;;  %v169_v25 = vpop.xlane.xlu1 %168 }
 0x30b   :  { %2570 = vpow2.f32 %v173_v21  ;;  %v294_v26 = vsub.f32 %v266_v62, %v287_v23  ;;  %v172_v27 = vsub.f32 %v159_v59, %v169_v25  ;;  %v197_v59 = vrot.slane %v2752_v50, %v2702_v7 }
 0x30c   :  { %2572 = vpow2.f32 %v175_v22  ;;  %v329_v22 = vrot.slane %v2760_v56, %v2699_v6  ;;  %v213_v25 = vrot.slane %v2752_v50, %v2789_v10 }
 0x30d   :  { %v297_v28 = vmul.f32 1.442695, %v294_v26  ;;  %v177_v29 = vmul.f32 1.442695, %v172_v27 }
 0x30e   :  { %v290_v30 = vpop.xlane.xlu0 %289 }
 0x30f   :  { %2574 = vpow2.f32 %v297_v28  ;;  %v295_v31 = vsub.f32 %v275_v4, %v290_v30 }
 0x310   :  { %2576 = vpow2.f32 %v177_v29 }
 0x311   :  { %v299_v32 = vmul.f32 1.442695, %v295_v31  ;;  %v337_v31 = vrot.slane %v2760_v56, %v2789_v10 }
 0x312   :  { %v293_v33 = vpop.xlane.xlu0 %292 }
 0x313   :  { %2578 = vpow2.f32 %v299_v32  ;;  %v296_v34 = vsub.f32 %v284_v9, %v293_v33 }
 0x315   :  { %v2571_v35 = vpop.eup %2570  ;;  %v301_v36 = vmul.f32 1.442695, %v296_v34 }
 0x316   :  { %v2573_v37 = vpop.eup %2572  ;;  %v179_v38 = vsel %vm160_vm0, %v2571_v35, 0.0 }
 0x317   :  { %2580 = vpow2.f32 %v301_v36  ;;  %180 = vadd.xlane.f32.xlu1 %v179_v38  ;;  %v182_v39 = vsel %vm160_vm0, %v2573_v37, 0.0 }
 0x318   :  { %183 = vadd.xlane.f32.xlu0 %v182_v39 }
 0x319   :  { %v2575_v40 = vpop.eup %2574 }
 0x31a   :  { %v303_v41 = vsel %vm160_vm0, %v2575_v40, 0.0  ;;  %v2577_v42 = vpop.eup %2576 }
 0x31b   :  { %304 = vadd.xlane.f32.xlu1 %v303_v41  ;;  %v185_v45 = vsel %vm160_vm0, %v2577_v42, 0.0 }
 0x31d   :  { %v2579_v43 = vpop.eup %2578 }
 0x31e   :  { %v306_v44 = vsel %vm160_vm0, %v2579_v43, 0.0 }
 0x31f   :  { %307 = vadd.xlane.f32.xlu0 %v306_v44  ;;  %186 = vadd.xlane.f32.xlu1 %v185_v45  ;;  %v371_v44 = vrot.slane %v2731_v19, %v2789_v10  ;;  %v2813_v45 = vsub.s32 6, %v2690_v3 }
 0x321   :  { %v2581_v46 = vpop.eup %2580 }
 0x322   :  { %v309_v47 = vsel %vm160_vm0, %v2581_v46, 0.0 }
 0x323   :  { %310 = vadd.xlane.f32.xlu0 %v309_v47 }
 0x3a4   :  { %v181_v48 = vpop.xlane.xlu1 %180 }
 0x3a5   :  { %v184_v49 = vpop.xlane.xlu0 %183  ;;  %2582 = vrcp.f32 %v181_v48 }
 0x3a6   :  { %2584 = vrcp.f32 %v184_v49  ;;  %v387_v49 = vrot.slane %v2731_v19, %v2813_v45 }
 0x3a8   :  { %v305_v51 = vpop.xlane.xlu1 %304 }
 0x3a9   :  { %2586 = vrcp.f32 %v305_v51  ;;  %v2820_v51 = vsub.s32 7, %v2690_v3 }
 0x3ac   :  { %v308_v52 = vpop.xlane.xlu0 %307  ;;  %v187_v53 = vpop.xlane.xlu1 %186 }
 0x3ad   :  { %2588 = vrcp.f32 %v308_v52 }
 0x3ae   :  { %2590 = vrcp.f32 %v187_v53 }
 0x3af   :  { %v2583_v54 = vpop.eup %2582 }
 0x3b0   :  { %v2585_v55 = vpop.eup %2584  ;;  %v311_v57 = vpop.xlane.xlu0 %310  ;;  %v189_v58 = vmul.f32 %v2583_v54, %v2571_v35 }
 0x3b1   :  { %2592 = vrcp.f32 %v311_v57  ;;  %v191_v60 = vmul.f32 %v2585_v55, %v2573_v37  ;;  %v395_v55 = vrot.slane %v2731_v19, %v2820_v51 }
 0x3b2   :  { %v198_v62 = vmul.f32 %v197_v59, %v189_v58 }
 0x3b3   :  { %v2587_v63 = vpop.eup %2586  ;;  %v206_v0 = vmul.f32 %v205_v61, %v191_v60 }
 0x3b4   :  { %v199_v4 = vsel %vm160_vm0, %v198_v62, 0.0  ;;  %v313_v5 = vmul.f32 %v2587_v63, %v2575_v40 }
 0x3b5   :  { %v207_v9 = vsel %vm160_vm0, %v206_v0, 0.0  ;;  %200 = vadd.xlane.f32.xlu1 %v199_v4 }
 0x3b6   :  { %208 = vadd.xlane.f32.xlu0 %v207_v9  ;;  %v322_v12 = vmul.f32 %v321_v8, %v313_v5 }
 0x3b7   :  { %v2589_v13 = vpop.eup %2588 }
 0x3b8   :  { %v2591_v16 = vpop.eup %2590  ;;  %v323_v20 = vsel %vm160_vm0, %v322_v12, 0.0  ;;  %v315_v21 = vmul.f32 %v2589_v13, %v2579_v43 }
 0x3b9   :  { %324 = vadd.xlane.f32.xlu1 %v323_v20  ;;  %v193_v23 = vmul.f32 %v2591_v16, %v2577_v42 }
 0x3ba   :  { %v330_v26 = vmul.f32 %v329_v22, %v315_v21 }
 0x3bb   :  { %v2593_v27 = vpop.eup %2592  ;;  %v214_v28 = vmul.f32 %v213_v25, %v193_v23 }
 0x3bc   :  { %v331_v29 = vsel %vm160_vm0, %v330_v26, 0.0  ;;  %v317_v30 = vmul.f32 %v2593_v27, %v2581_v46  ;;  %v357_v46 = vrot.slane %v2731_v19, %v2699_v6 }
 0x3bd   :  { %332 = vadd.xlane.f32.xlu0 %v331_v29  ;;  %v215_v32 = vsel %vm160_vm0, %v214_v28, 0.0 }
 0x3be   :  { %216 = vadd.xlane.f32.xlu1 %v215_v32  ;;  %v338_v33 = vmul.f32 %v337_v31, %v317_v30 }
 0x3c0   :  { %v339_v34 = vsel %vm160_vm0, %v338_v33, 0.0 }
 0x3c1   :  { %340 = vadd.xlane.f32.xlu0 %v339_v34 }
 0x442   :  { %v201_v35 = vpop.xlane.xlu1 %200 }
 0x443   :  { %v209_v36 = vpop.xlane.xlu0 %208 }
 0x444   :  { %v219_v38 = vsel %vm218_vm1, %v201_v35, %v209_v36 }
 0x446   :  { %v325_v50 = vpop.xlane.xlu1 %324 }
 0x44a   :  { %v333_v37 = vpop.xlane.xlu0 %332 }
 0x44b   :  { %v217_v39 = vpop.xlane.xlu1 %216  ;;  %v342_v56 = vsel %vm218_vm1, %v325_v50, %v333_v37 }
 0x44c   :  { %v221_v40 = vsel %vm220_vm2, %v219_v38, %v217_v39 }
 0x44d   :  { %346 = vperm.xlu1 %2406, %v221_v40  }
 0x44e   :  { %v341_v41 = vpop.xlane.xlu0 %340 }
 0x44f   :  { %v343_v42 = vsel %vm220_vm2, %v342_v56, %v341_v41 }
 0x450   :  { %351 = vperm.xlu0 %2407, %v343_v42  }
 0x451   :  { %2408 = vset.pattern.permute.xlu1 %v3941_v1 }
 0x452   :  { %361 = vperm.xlu1 %2408, %v221_v40  }
 0x456   :  { %2409 = vset.pattern.permute.xlu1 %v3879_v14 }
 0x457   :  { %377 = vperm.xlu1 %2409, %v221_v40  }
 0x45b   :  { %2410 = vset.pattern.permute.xlu1 %v3941_v1 }
 0x45c   :  { %365 = vperm.xlu1 %2410, %v343_v42  }
 0x460   :  { %2411 = vset.pattern.permute.xlu1 %v3879_v14 }
 0x461   :  { %381 = vperm.xlu1 %2411, %v343_v42  }
 0x465   :  { %2412 = vset.pattern.permute.xlu1 %v3939_v2 }
 0x4cc   :  { %v347_v43 = vpop.permute.xlu1 %346 }
 0x4cd   :  { %v358_v52 = vmul.f32 %v357_v46, %v347_v43 }
 0x4cf   :  { %v352_v61 = vpop.permute.xlu0 %351 }
 0x4d0   :  { %v359_v0 = vmul.f32 %v357_v46, %v352_v61 }
 0x4d1   :  { %v362_v47 = vpop.permute.xlu1 %361 }
 0x4d2   :  { %v372_v48 = vmul.f32 %v371_v44, %v362_v47 }
 0x4d4   :  { %v374_v54 = vadd.f32 %v372_v48, %v358_v52 }
 0x4d6   :  { %v378_v53 = vpop.permute.xlu1 %377 }
 0x4d7   :  { %v388_v57 = vmul.f32 %v387_v49, %v378_v53 }
 0x4d9   :  { %v390_v58 = vadd.f32 %v388_v57, %v374_v54 }
 0x4db   :  { %v396_v59 = vadd.f32 %v395_v55, %v390_v58  ;;  %v366_v60 = vpop.permute.xlu1 %365 }
 0x4dc   :  { %v373_v63 = vmul.f32 %v371_v44, %v366_v60 }
 0x4dd   :  { %v2825_v62 = vadd.f32 %v396_v59, %v2706_v11  ;;  %v2858_v59 = vld [vmem:[%s3876_s1 + $0x28] sm:$0xff] }
 0x4de   :  { %v375_v4 = vadd.f32 %v373_v63, %v359_v0  ;;  %v497_v61 = vrot.slane %v2858_v59, %v2789_v10  ;;  %v503_v0 = vrot.slane %v2858_v59, %v2813_v45 }
 0x4df   :  { %402 = vrot.lane.b32.xlu1 %v2825_v62, %s2640_s16 }
 0x4e0   :  { %v382_v3 = vpop.permute.xlu1 %381 }
 0x4e1   :  { %v389_v5 = vmul.f32 %v387_v49, %v382_v3 }
 0x4e3   :  { %v391_v8 = vadd.f32 %v389_v5, %v375_v4  ;;  %410 = vrot.lane.b32.xlu1 %v2825_v62, %s2641_s17 }
 0x4e5   :  { %v397_v19 = vadd.f32 %v395_v55, %v391_v8 }
 0x4e7   :  { %v2832_v9 = vadd.f32 %v397_v19, %v2712_v15 }
 0x4e9   :  { %404 = vrot.lane.b32.xlu1 %v2832_v9, %s2640_s16 }
 0x4ed   :  { %412 = vrot.lane.b32.xlu1 %v2832_v9, %s2641_s17 }
 0x551   :  { %v403_v11 = vpop.permute.xlu1 %402 }
 0x552   :  { %v408_v12 = vadd.f32 %v403_v11, %v2825_v62 }
 0x555   :  { %v411_v13 = vpop.permute.xlu1 %410 }
 0x556   :  { %v416_v16 = vadd.f32 %v411_v13, %v408_v12 }
 0x558   :  { %v418_v20 = vmul.f32 0.33333334, %v416_v16  ;;  %v2878_v16 = vld [vmem:[%s3876_s1 + $0x8] sm:$0xff] }
 0x55a   :  { %424 = vrot.lane.b32.xlu0 %v418_v20, %s2642_s18  ;;  %v420_v37 = vsub.f32 %v2825_v62, %v418_v20 }
 0x55b   :  { %v405_v21 = vpop.permute.xlu1 %404 }
 0x55c   :  { %v409_v22 = vadd.f32 %v405_v21, %v2832_v9  ;;  %v440_v39 = vmul.f32 %v420_v37, %v420_v37  ;;  %v2886_v21 = vrot.slane %v2878_v16, %v2723_v17  ;;  %v3933_v37 = vmov 6  }
 0x55e   :  { %432 = vrot.lane.b32.xlu0 %v418_v20, %s2643_s19 }
 0x55f   :  { %v413_v15 = vpop.permute.xlu1 %412 }
 0x560   :  { %v417_v23 = vadd.f32 %v413_v15, %v409_v22  ;;  %v2890_v22 = vrot.slane %v2878_v16, %v2738_v24 }
 0x562   :  { %v419_v25 = vmul.f32 0.33333334, %v417_v23 }
 0x564   :  { %426 = vrot.lane.b32.xlu1 %v419_v25, %s2642_s18  ;;  %v421_v43 = vsub.f32 %v2832_v9, %v419_v25 }
 0x566   :  { %v441_v47 = vmul.f32 %v421_v43, %v421_v43  ;;  %v3891_v43 = vmov 22  }
 0x568   :  { %434 = vrot.lane.b32.xlu1 %v419_v25, %s2643_s19 }
 0x5cc   :  { %v425_v26 = vpop.permute.xlu0 %424 }
 0x5cd   :  { %v430_v27 = vsub.f32 %v2825_v62, %v425_v26 }
 0x5cf   :  { %v442_v28 = vmul.f32 %v430_v27, %v430_v27 }
 0x5d0   :  { %v433_v29 = vpop.permute.xlu0 %432 }
 0x5d1   :  { %v438_v30 = vsub.f32 %v2825_v62, %v433_v29  ;;  %446 = vrot.lane.b32.xlu0 %v442_v28, %s2640_s16  ;;  %v2897_v28 = vrot.slane %v2878_v16, %v2702_v7 }
 0x5d3   :  { %v454_v31 = vmul.f32 %v438_v30, %v438_v30 }
 0x5d5   :  { %458 = vrot.lane.b32.xlu0 %v454_v31, %s2641_s17 }
 0x5d6   :  { %v427_v32 = vpop.permute.xlu1 %426 }
 0x5d7   :  { %v431_v33 = vsub.f32 %v2832_v9, %v427_v32 }
 0x5d9   :  { %v443_v34 = vmul.f32 %v431_v33, %v431_v33  ;;  %473 = vperm.xlu0 %2407, %v418_v20   ;;  %v3935_v33 = vmov 4  }
 0x5da   :  { %v435_v35 = vpop.permute.xlu1 %434 }
 0x5db   :  { %v439_v36 = vsub.f32 %v2832_v9, %v435_v35  ;;  %448 = vrot.lane.b32.xlu1 %v443_v34, %s2640_s16  ;;  %v3927_v34 = vmov 7   ;;  %v3937_v35 = vmov 3  }
 0x5dd   :  { %v455_v50 = vmul.f32 %v439_v36, %v439_v36  ;;  %v3919_v36 = vmov 10  }
 0x5df   :  { %460 = vrot.lane.b32.xlu1 %v455_v50, %s2641_s17  ;;  %v3931_v50 = vmov 5  }
 0x5e3   :  { %477 = vperm.xlu1 %2412, %v419_v25  }
 0x643   :  { %v447_v38 = vpop.permute.xlu0 %446 }
 0x644   :  { %v452_v40 = vadd.f32 %v447_v38, %v440_v39  ;;  %v3911_v38 = vmov 13   ;;  %v3923_v39 = vmov 8  }
 0x647   :  { %v459_v56 = vpop.permute.xlu0 %458 }
 0x648   :  { %v464_v41 = vadd.f32 %v459_v56, %v452_v40  ;;  %v3905_v40 = vmov 16   ;;  %v3929_v56 = vmov 9  }
 0x64a   :  { %v466_v42 = vmul.f32 0.33333334, %v464_v41  ;;  %v3901_v41 = vmov 19  }
 0x64c   :  { %v468_v44 = vadd.f32 1e-05, %v466_v42  ;;  %v3917_v42 = vmov 11  }
 0x64d   :  { %v449_v46 = vpop.permute.xlu1 %448 }
 0x64e   :  { %2594 = vrsqrt.f32 %v468_v44  ;;  %v453_v48 = vadd.f32 %v449_v46, %v441_v47  ;;  %v3925_v44 = vmov 12   ;;  %v3887_v46 = vmov 25  }
 0x64f   :  { %v3883_v47 = vmov 28  }
 0x651   :  { %v461_v49 = vpop.permute.xlu1 %460 }
 0x652   :  { %v465_v52 = vadd.f32 %v461_v49, %v453_v48  ;;  %v3907_v48 = vmov 14   ;;  %v3915_v49 = vmov 15  }
 0x654   :  { %v467_v53 = vmul.f32 0.33333334, %v465_v52  ;;  %v3903_v52 = vmov 17  }
 0x656   :  { %v469_v54 = vadd.f32 1e-05, %v467_v53  ;;  %v3913_v53 = vmov 18  }
 0x658   :  { %v2595_v55 = vpop.eup %2594  ;;  %2596 = vrsqrt.f32 %v469_v54  ;;  %v474_v58 = vpop.permute.xlu0 %473  ;;  %v3899_v54 = vmov 20  }
 0x659   :  { %484 = vperm.xlu0 %2407, %v2595_v55   ;;  %v480_v60 = vsub.f32 %v2825_v62, %v474_v58  ;;  %v3909_v55 = vmov 21   ;;  %v3889_v58 = vmov 24  }
 0x662   :  { %v2597_v57 = vpop.eup %2596  ;;  %v478_v8 = vpop.permute.xlu1 %477 }
 0x663   :  { %489 = vperm.xlu1 %2412, %v2597_v57   ;;  %v481_v19 = vsub.f32 %v2832_v9, %v478_v8  ;;  %v2882_v9 = vrot.slane %v2878_v16, %v2726_v18  ;;  %v3897_v57 = vmov 23  }
 0x667   :  { %2414 = vset.pattern.permute.xlu1 %v3879_v14 }
 0x6d8   :  { %v485_v63 = vpop.permute.xlu0 %484 }
 0x6d9   :  { %v492_v3 = vmul.f32 %v485_v63, %v480_v60  ;;  %v3895_v60 = vmov 26   ;;  %v3893_v63 = vmov 29  }
 0x6db   :  { %v498_v4 = vmul.f32 %v497_v61, %v492_v3 }
 0x6dd   :  { %v2865_v5 = vadd.f32 %v503_v0, %v498_v4 }
 0x6df   :  { %508 = vperm.xlu0 %2407, %v2865_v5   ;;  %539 = vperm.xlu1 %2414, %v2865_v5  }
 0x6e2   :  { %v490_v11 = vpop.permute.xlu1 %489 }
 0x6e3   :  { %v493_v62 = vmul.f32 %v490_v11, %v481_v19  ;;  %2413 = vset.pattern.permute.xlu0 %v3941_v1  ;;  %2415 = vset.pattern.permute.xlu1 %v3939_v2 }
 0x6e4   :  { %523 = vperm.xlu0 %2413, %v2865_v5  }
 0x6e5   :  { %v499_v12 = vmul.f32 %v497_v61, %v493_v62  ;;  %v3885_v61 = vmov 27  }
 0x6e7   :  { %v2873_v13 = vadd.f32 %v503_v0, %v499_v12  ;;  %v3881_v0 = vmov 30  }
 0x75e   :  { %v509_v20 = vpop.permute.xlu0 %508  ;;  %v540_v15 = vpop.permute.xlu1 %539 }
 0x75f   :  { %v520_v25 = vmul.f32 %v2882_v9, %v509_v20  ;;  %v550_v27 = vmul.f32 %v2890_v22, %v540_v15 }
 0x763   :  { %v524_v23 = vpop.permute.xlu0 %523 }
 0x764   :  { %v534_v26 = vmul.f32 %v2886_v21, %v524_v23 }
 0x766   :  { %v536_v29 = vadd.f32 %v534_v26, %v520_v25 }
 0x768   :  { %v552_v30 = vadd.f32 %v550_v27, %v536_v29 }
 0x76a   :  { %v558_v31 = vadd.f32 %v2897_v28, %v552_v30 }
 0x76c   :  { %v2900_v32 = vmax.f32 %v558_v31, 0.0 }
 0x76e   :  { %579 = vperm.xlu0 %2413, %v2900_v32   ;;  %564 = vperm.xlu1 %2415, %v2900_v32  }
 0x772   :  { %2418 = vset.pattern.permute.xlu0 %v3935_v33  ;;  %2416 = vset.pattern.permute.xlu1 %v3879_v14 }
 0x773   :  { %627 = vperm.xlu0 %2418, %v2900_v32   ;;  %595 = vperm.xlu1 %2416, %v2900_v32  }
 0x777   :  { %2421 = vset.pattern.permute.xlu0 %v3927_v34  ;;  %2417 = vset.pattern.permute.xlu1 %v3937_v35 }
 0x778   :  { %675 = vperm.xlu0 %2421, %v2900_v32   ;;  %611 = vperm.xlu1 %2417, %v2900_v32  }
 0x77c   :  { %2424 = vset.pattern.permute.xlu0 %v3919_v36  ;;  %2419 = vset.pattern.permute.xlu1 %v3931_v50 }
 0x77d   :  { %723 = vperm.xlu0 %2424, %v2900_v32   ;;  %643 = vperm.xlu1 %2419, %v2900_v32  }
 0x781   :  { %2429 = vset.pattern.permute.xlu0 %v3879_v14  ;;  %2420 = vset.pattern.permute.xlu1 %v3933_v37 }
 0x782   :  { %543 = vperm.xlu0 %2429, %v2873_v13   ;;  %659 = vperm.xlu1 %2420, %v2900_v32  }
 0x786   :  { %2430 = vset.pattern.permute.xlu0 %v3911_v38  ;;  %2422 = vset.pattern.permute.xlu1 %v3923_v39 }
 0x787   :  { %771 = vperm.xlu0 %2430, %v2900_v32   ;;  %691 = vperm.xlu1 %2422, %v2900_v32  }
 0x78b   :  { %2433 = vset.pattern.permute.xlu0 %v3905_v40  ;;  %2423 = vset.pattern.permute.xlu1 %v3929_v56 }
 0x78c   :  { %819 = vperm.xlu0 %2433, %v2900_v32   ;;  %707 = vperm.xlu1 %2423, %v2900_v32  }
 0x790   :  { %2436 = vset.pattern.permute.xlu0 %v3901_v41  ;;  %2425 = vset.pattern.permute.xlu1 %v3917_v42 }
 0x791   :  { %867 = vperm.xlu0 %2436, %v2900_v32   ;;  %739 = vperm.xlu1 %2425, %v2900_v32  }
 0x795   :  { %2439 = vset.pattern.permute.xlu0 %v3891_v43  ;;  %2426 = vset.pattern.permute.xlu1 %v3925_v44 }
 0x796   :  { %915 = vperm.xlu0 %2439, %v2900_v32   ;;  %755 = vperm.xlu1 %2426, %v2900_v32  }
 0x79a   :  { %2442 = vset.pattern.permute.xlu0 %v3887_v46  ;;  %2427 = vset.pattern.permute.xlu1 %v3939_v2 }
 0x79b   :  { %963 = vperm.xlu0 %2442, %v2900_v32   ;;  %513 = vperm.xlu1 %2427, %v2873_v13  }
 0x79f   :  { %2445 = vset.pattern.permute.xlu0 %v3883_v47  ;;  %2428 = vset.pattern.permute.xlu1 %v3941_v1 }
 0x7a0   :  { %1011 = vperm.xlu0 %2445, %v2900_v32   ;;  %527 = vperm.xlu1 %2428, %v2873_v13  }
 0x7a4   :  { %2431 = vset.pattern.permute.xlu1 %v3907_v48  ;;  %2450 = vset.pattern.permute.xlu0 %v3879_v14 }
 0x7a5   :  { %787 = vperm.xlu1 %2431, %v2900_v32  }
 0x7a9   :  { %2432 = vset.pattern.permute.xlu1 %v3915_v49 }
 0x7aa   :  { %803 = vperm.xlu1 %2432, %v2900_v32  }
 0x7ae   :  { %2434 = vset.pattern.permute.xlu1 %v3903_v52 }
 0x7af   :  { %835 = vperm.xlu1 %2434, %v2900_v32  }
 0x7b3   :  { %2435 = vset.pattern.permute.xlu1 %v3913_v53 }
 0x7b4   :  { %851 = vperm.xlu1 %2435, %v2900_v32  }
 0x7b8   :  { %2437 = vset.pattern.permute.xlu1 %v3899_v54 }
 0x7b9   :  { %883 = vperm.xlu1 %2437, %v2900_v32  }
 0x7bd   :  { %2438 = vset.pattern.permute.xlu1 %v3909_v55 }
 0x7be   :  { %899 = vperm.xlu1 %2438, %v2900_v32  }
 0x7c2   :  { %2440 = vset.pattern.permute.xlu1 %v3897_v57 }
 0x7c3   :  { %931 = vperm.xlu1 %2440, %v2900_v32  }
 0x7c7   :  { %2441 = vset.pattern.permute.xlu1 %v3889_v58 }
 0x7c8   :  { %947 = vperm.xlu1 %2441, %v2900_v32  }
 0x7cc   :  { %2443 = vset.pattern.permute.xlu1 %v3895_v60 }
 0x7cd   :  { %979 = vperm.xlu1 %2443, %v2900_v32  }
 0x7d1   :  { %2444 = vset.pattern.permute.xlu1 %v3885_v61 }
 0x7d2   :  { %995 = vperm.xlu1 %2444, %v2900_v32  }
 0x7d6   :  { %2446 = vset.pattern.permute.xlu1 %v3893_v63 }
 0x7d7   :  { %1027 = vperm.xlu1 %2446, %v2900_v32  }
 0x7db   :  { %2447 = vset.pattern.permute.xlu1 %v3881_v0 }
 0x7dc   :  { %1043 = vperm.xlu1 %2447, %v2900_v32  }
 0x7e0   :  { %2448 = vset.pattern.permute.xlu1 %v3939_v2 }
 0x7ed   :  { %v2970_v3 = vpop.permute.xlu1 %564  ;;  %v2982_v12 = vpop.permute.xlu0 %579 }
 0x7f2   :  { %v2972_v4 = vpop.permute.xlu1 %595  ;;  %v2986_v15 = vpop.permute.xlu0 %627 }
 0x7f7   :  { %v2974_v8 = vpop.permute.xlu1 %611  ;;  %v2990_v25 = vpop.permute.xlu0 %675 }
 0x7fc   :  { %v2976_v19 = vpop.permute.xlu1 %643  ;;  %v2994_v27 = vpop.permute.xlu0 %723 }
 0x801   :  { %v2978_v11 = vpop.permute.xlu1 %659  ;;  %v544_v30 = vpop.permute.xlu0 %543 }
 0x802   :  { %v551_v47 = vmul.f32 %v2890_v22, %v544_v30 }
 0x806   :  { %v2980_v62 = vpop.permute.xlu1 %691 }
 0x80b   :  { %v2984_v20 = vpop.permute.xlu1 %707 }
 0x810   :  { %v2988_v23 = vpop.permute.xlu1 %739 }
 0x815   :  { %v2992_v26 = vpop.permute.xlu1 %755 }
 0x81a   :  { %v514_v29 = vpop.permute.xlu1 %513 }
 0x81b   :  { %v521_v14 = vmul.f32 %v2882_v9, %v514_v29 }
 0x81f   :  { %v528_v31 = vpop.permute.xlu1 %527 }
 0x820   :  { %v535_v0 = vmul.f32 %v2886_v21, %v528_v31  ;;  %v3085_v31 = vrot.slane %v2878_v16, %v2820_v51 }
 0x822   :  { %v537_v61 = vadd.f32 %v535_v0, %v521_v14  ;;  %v3921_v14 = vmov 31  }
 0x824   :  { %v553_v46 = vadd.f32 %v551_v47, %v537_v61  ;;  %v3047_v9 = vpop.permute.xlu1 %787  ;;  %v3069_v47 = vrot.slane %v2878_v16, %v2699_v6  ;;  %v3074_v61 = vrot.slane %v2878_v16, %v2813_v45 }
 0x826   :  { %v559_v58 = vadd.f32 %v2897_v28, %v553_v46  ;;  %v3957_v28 = vmov 22   ;;  %v3065_v46 = vrot.slane %v2878_v16, %v2789_v10  ;;  %v576_v30 = vmul.f32 %v3069_v47, %v2970_v3 }
 0x828   :  { %v3000_v43 = vmax.f32 %v559_v58, 0.0  ;;  %v3958_v58 = vmov 24   ;;  %v590_v29 = vmul.f32 %v3065_v46, %v2982_v12  ;;  %v622_v12 = vmul.f32 %v3085_v31, %v2974_v8  ;;  %v772_v8 = vpop.permute.xlu0 %771 }
 0x829   :  { %v3051_v21 = vpop.permute.xlu1 %803 }
 0x82a   :  { %599 = vperm.xlu0 %2450, %v3000_v43   ;;  %569 = vperm.xlu1 %2448, %v3000_v43  }
 0x82e   :  { %2453 = vset.pattern.permute.xlu0 %v3931_v50  ;;  %2449 = vset.pattern.permute.xlu1 %v3941_v1  ;;  %v3055_v22 = vpop.permute.xlu1 %835 }
 0x82f   :  { %647 = vperm.xlu0 %2453, %v3000_v43   ;;  %583 = vperm.xlu1 %2449, %v3000_v43  }
 0x833   :  { %2456 = vset.pattern.permute.xlu0 %v3923_v39  ;;  %2451 = vset.pattern.permute.xlu1 %v3937_v35 }
 0x834   :  { %695 = vperm.xlu0 %2456, %v3000_v43   ;;  %615 = vperm.xlu1 %2451, %v3000_v43  }
 0x838   :  { %2459 = vset.pattern.permute.xlu0 %v3917_v42  ;;  %2452 = vset.pattern.permute.xlu1 %v3935_v33 }
 0x839   :  { %743 = vperm.xlu0 %2459, %v3000_v43   ;;  %631 = vperm.xlu1 %2452, %v3000_v43  }
 0x83d   :  { %2462 = vset.pattern.permute.xlu0 %v3907_v48  ;;  %2454 = vset.pattern.permute.xlu1 %v3933_v37 }
 0x83e   :  { %791 = vperm.xlu0 %2462, %v3000_v43   ;;  %663 = vperm.xlu1 %2454, %v3000_v43  }
 0x842   :  { %2465 = vset.pattern.permute.xlu0 %v3903_v52  ;;  %2455 = vset.pattern.permute.xlu1 %v3927_v34  ;;  %v3960_v52 = vmov 27  }
 0x843   :  { %839 = vperm.xlu0 %2465, %v3000_v43   ;;  %679 = vperm.xlu1 %2455, %v3000_v43  }
 0x847   :  { %2468 = vset.pattern.permute.xlu0 %v3899_v54  ;;  %2457 = vset.pattern.permute.xlu1 %v3929_v56  ;;  %v592_v54 = vadd.f32 %v590_v29, %v576_v30 }
 0x848   :  { %887 = vperm.xlu0 %2468, %v3000_v43   ;;  %711 = vperm.xlu1 %2457, %v3000_v43  }
 0x84c   :  { %2471 = vset.pattern.permute.xlu0 %v3897_v57  ;;  %2458 = vset.pattern.permute.xlu1 %v3919_v36  ;;  %v13_v57 = vld [vmem:[%s3876_s1 + $0x10] sm:$0xff] }
 0x84d   :  { %935 = vperm.xlu0 %2471, %v3000_v43   ;;  %727 = vperm.xlu1 %2458, %v3000_v43   ;;  %v3099_v16 = vrot.slane %v13_v57, %v2726_v18  ;;  %v3109_v30 = vrot.slane %v13_v57, %v2738_v24 }
 0x84f   :  { %v638_v29 = vmul.f32 %v3099_v16, %v2986_v15 }
 0x851   :  { %2474 = vset.pattern.permute.xlu0 %v3895_v60  ;;  %2460 = vset.pattern.permute.xlu1 %v3925_v44  ;;  %v3959_v60 = vmov 25  }
 0x852   :  { %983 = vperm.xlu0 %2474, %v3000_v43   ;;  %759 = vperm.xlu1 %2460, %v3000_v43  }
 0x856   :  { %2477 = vset.pattern.permute.xlu0 %v3893_v63  ;;  %2461 = vset.pattern.permute.xlu1 %v3911_v38  ;;  %v606_v63 = vmul.f32 %v3074_v61, %v2972_v4  ;;  %v820_v38 = vpop.permute.xlu0 %819 }
 0x857   :  { %1031 = vperm.xlu0 %2477, %v3000_v43   ;;  %775 = vperm.xlu1 %2461, %v3000_v43  }
 0x85b   :  { %2478 = vset.pattern.permute.xlu0 %v3921_v14  ;;  %2463 = vset.pattern.permute.xlu1 %v3915_v49  ;;  %v3962_v49 = vmov 30  }
 0x85c   :  { %1059 = vperm.xlu0 %2478, %v2900_v32   ;;  %807 = vperm.xlu1 %2463, %v3000_v43   ;;  %v3060_v32 = vpop.permute.xlu1 %851 }
 0x860   :  { %2464 = vset.pattern.permute.xlu1 %v3905_v40  ;;  %2482 = vset.pattern.permute.xlu0 %v3939_v2  ;;  %v3077_v0 = vpop.permute.xlu1 %883  ;;  %v3103_v40 = vrot.slane %v13_v57, %v2723_v17 }
 0x861   :  { %823 = vperm.xlu1 %2464, %v3000_v43  }
 0x864   :  { %v3096_v3 = vpop.permute.xlu1 %899 }
 0x865   :  { %2466 = vset.pattern.permute.xlu1 %v3913_v53 }
 0x866   :  { %855 = vperm.xlu1 %2466, %v3000_v43  }
 0x868   :  { %v3111_v48 = vpop.permute.xlu1 %931 }
 0x86a   :  { %2467 = vset.pattern.permute.xlu1 %v3901_v41  ;;  %v608_v41 = vadd.f32 %v606_v63, %v592_v54  ;;  %v654_v54 = vmul.f32 %v3103_v40, %v2976_v19  ;;  %v3961_v63 = vmov 28  }
 0x86b   :  { %871 = vperm.xlu1 %2467, %v3000_v43  }
 0x86c   :  { %v624_v4 = vadd.f32 %v622_v12, %v608_v41  ;;  %v670_v41 = vmul.f32 %v3109_v30, %v2978_v11  ;;  %v3120_v12 = vrot.slane %v13_v57, %v2702_v7  ;;  %v3122_v53 = vpop.permute.xlu1 %947  ;;  %v3132_v11 = vrot.slane %v13_v57, %v2789_v10 }
 0x86e   :  { %v686_v19 = vmul.f32 %v3120_v12, %v2990_v25 }
 0x86f   :  { %2469 = vset.pattern.permute.xlu1 %v3909_v55  ;;  %v640_v55 = vadd.f32 %v638_v29, %v624_v4  ;;  %v3126_v29 = vrot.slane %v13_v57, %v2699_v6 }
 0x870   :  { %903 = vperm.xlu1 %2469, %v3000_v43   ;;  %v3137_v36 = vpop.permute.xlu1 %979 }
 0x871   :  { %v656_v15 = vadd.f32 %v654_v54, %v640_v55  ;;  %v702_v55 = vmul.f32 %v3126_v29, %v2980_v62  ;;  %v868_v54 = vpop.permute.xlu0 %867  ;;  %v14_v62 = vld [vmem:[%s3876_s1 + $0x18] sm:$0xff] }
 0x872   :  { %v3159_v39 = vrot.slane %v14_v62, %v2726_v18  ;;  %v3170_v44 = vrot.slane %v14_v62, %v2723_v17 }
 0x873   :  { %v672_v4 = vadd.f32 %v670_v41, %v656_v15  ;;  %v718_v41 = vmul.f32 %v3132_v11, %v2984_v20  ;;  %v3143_v15 = vrot.slane %v13_v57, %v2813_v45 }
 0x874   :  { %2470 = vset.pattern.permute.xlu1 %v3957_v28 }
 0x875   :  { %919 = vperm.xlu1 %2470, %v3000_v43   ;;  %v688_v42 = vadd.f32 %v686_v19, %v672_v4  ;;  %v3147_v19 = vrot.slane %v13_v57, %v2820_v51  ;;  %v734_v20 = vmul.f32 %v3143_v15, %v2994_v27  ;;  %v766_v57 = vmul.f32 %v3159_v39, %v2992_v26 }
 0x876   :  { %v3173_v27 = vrot.slane %v14_v62, %v2738_v24 }
 0x877   :  { %v704_v25 = vadd.f32 %v702_v55, %v688_v42  ;;  %v750_v55 = vmul.f32 %v3147_v19, %v2988_v23  ;;  %v782_v23 = vmul.f32 %v3170_v44, %v772_v8  ;;  %v3191_v8 = vrot.slane %v14_v62, %v2789_v10 }
 0x878   :  { %v798_v26 = vmul.f32 %v3173_v27, %v3047_v9 }
 0x879   :  { %2472 = vset.pattern.permute.xlu1 %v3958_v58  ;;  %v720_v4 = vadd.f32 %v718_v41, %v704_v25 }
 0x87a   :  { %951 = vperm.xlu1 %2472, %v3000_v43  }
 0x87b   :  { %v736_v42 = vadd.f32 %v734_v20, %v720_v4  ;;  %v3176_v4 = vrot.slane %v14_v62, %v2702_v7 }
 0x87d   :  { %v752_v34 = vadd.f32 %v750_v55, %v736_v42  ;;  %v814_v42 = vmul.f32 %v3176_v4, %v3051_v21  ;;  %v3188_v55 = vrot.slane %v14_v62, %v2699_v6 }
 0x87e   :  { %2473 = vset.pattern.permute.xlu1 %v3959_v60 }
 0x87f   :  { %967 = vperm.xlu1 %2473, %v3000_v43   ;;  %v768_v56 = vadd.f32 %v766_v57, %v752_v34  ;;  %v830_v9 = vmul.f32 %v3188_v55, %v820_v38 }
 0x881   :  { %v784_v37 = vadd.f32 %v782_v23, %v768_v56  ;;  %v846_v56 = vmul.f32 %v3191_v8, %v3055_v22 }
 0x883   :  { %2475 = vset.pattern.permute.xlu1 %v3960_v52  ;;  %v800_v34 = vadd.f32 %v798_v26, %v784_v37 }
 0x884   :  { %999 = vperm.xlu1 %2475, %v3000_v43  }
 0x885   :  { %v816_v35 = vadd.f32 %v814_v42, %v800_v34  ;;  %v3204_v34 = vrot.slane %v14_v62, %v2820_v51 }
 0x887   :  { %v832_v1 = vadd.f32 %v830_v9, %v816_v35  ;;  %v15_v35 = vld [vmem:[%s3876_s1 + $0x20] sm:$0xff] }
 0x888   :  { %2476 = vset.pattern.permute.xlu1 %v3961_v63 }
 0x889   :  { %1015 = vperm.xlu1 %2476, %v3000_v43   ;;  %v848_v38 = vadd.f32 %v846_v56, %v832_v1 }
 0x88d   :  { %2479 = vset.pattern.permute.xlu1 %v3962_v49 }
 0x88e   :  { %1047 = vperm.xlu1 %2479, %v3000_v43  }
 0x892   :  { %2480 = vset.pattern.permute.xlu1 %v3921_v14  ;;  %v3152_v14 = vpop.permute.xlu0 %915 }
 0x893   :  { %1063 = vperm.xlu1 %2480, %v3000_v43   ;;  %v3154_v43 = vpop.permute.xlu1 %995 }
 0x896   :  { %v3165_v41 = vpop.permute.xlu0 %963 }
 0x897   :  { %2481 = vset.pattern.permute.xlu1 %v3939_v2  ;;  %v3167_v25 = vpop.permute.xlu1 %1027  ;;  %v3195_v2 = vrot.slane %v14_v62, %v2813_v45 }
 0x899   :  { %v862_v26 = vmul.f32 %v3195_v2, %v3060_v32 }
 0x89a   :  { %v3181_v20 = vpop.permute.xlu0 %1011 }
 0x89b   :  { %v3183_v50 = vpop.permute.xlu1 %1043  ;;  %v864_v28 = vadd.f32 %v862_v26, %v848_v38 }
 0x8a9   :  { %v600_v57 = vpop.permute.xlu0 %599  ;;  %v570_v33 = vpop.permute.xlu1 %569 }
 0x8aa   :  { %v577_v63 = vmul.f32 %v3069_v47, %v570_v33  ;;  %v607_v22 = vmul.f32 %v3074_v61, %v600_v57  ;;  %v3211_v33 = vrot.slane %v15_v35, %v2726_v18  ;;  %v878_v47 = vmul.f32 %v3204_v34, %v868_v54 }
 0x8ac   :  { %v880_v1 = vadd.f32 %v878_v47, %v864_v28  ;;  %v894_v62 = vmul.f32 %v3211_v33, %v3077_v0  ;;  %v3228_v0 = vrot.slane %v15_v35, %v2702_v7 }
 0x8ae   :  { %v648_v21 = vpop.permute.xlu0 %647  ;;  %v584_v23 = vpop.permute.xlu1 %583  ;;  %v942_v47 = vmul.f32 %v3228_v0, %v3111_v48  ;;  %v3246_v48 = vrot.slane %v15_v35, %v2813_v45 }
 0x8af   :  { %v591_v37 = vmul.f32 %v3065_v46, %v584_v23  ;;  %v655_v54 = vmul.f32 %v3103_v40, %v648_v21 }
 0x8b1   :  { %v593_v42 = vadd.f32 %v591_v37, %v577_v63  ;;  %v3216_v63 = vrot.slane %v15_v35, %v2723_v17 }
 0x8b3   :  { %v696_v9 = vpop.permute.xlu0 %695  ;;  %v616_v60 = vpop.permute.xlu1 %615  ;;  %v609_v46 = vadd.f32 %v607_v22, %v593_v42  ;;  %v910_v37 = vmul.f32 %v3216_v63, %v3096_v3  ;;  %v3234_v3 = vrot.slane %v15_v35, %v2699_v6 }
 0x8b4   :  { %v623_v32 = vmul.f32 %v3085_v31, %v616_v60  ;;  %v3224_v60 = vrot.slane %v15_v35, %v2738_v24  ;;  %v896_v31 = vadd.f32 %v894_v62, %v880_v1 }
 0x8b6   :  { %v625_v57 = vadd.f32 %v623_v32, %v609_v46  ;;  %v912_v38 = vadd.f32 %v910_v37, %v896_v31 }
 0x8b8   :  { %v744_v56 = vpop.permute.xlu0 %743  ;;  %v632_v61 = vpop.permute.xlu1 %631 }
 0x8b9   :  { %v639_v23 = vmul.f32 %v3099_v16, %v632_v61  ;;  %v926_v16 = vmul.f32 %v3224_v60, %v3152_v14  ;;  %v958_v61 = vmul.f32 %v3234_v3, %v3122_v53  ;;  %v3252_v53 = vrot.slane %v15_v35, %v2820_v51 }
 0x8bb   :  { %v641_v26 = vadd.f32 %v639_v23, %v625_v57  ;;  %v928_v32 = vadd.f32 %v926_v16, %v912_v38  ;;  %v703_v23 = vmul.f32 %v3126_v29, %v696_v9 }
 0x8bd   :  { %v792_v42 = vpop.permute.xlu0 %791  ;;  %v664_v28 = vpop.permute.xlu1 %663  ;;  %v657_v22 = vadd.f32 %v655_v54, %v641_v26  ;;  %v944_v14 = vadd.f32 %v942_v47, %v928_v32  ;;  %v1006_v32 = vmul.f32 %v3252_v53, %v3154_v43 }
 0x8be   :  { %v671_v46 = vmul.f32 %v3109_v30, %v664_v28  ;;  %v3242_v30 = vrot.slane %v15_v35, %v2789_v10  ;;  %v751_v35 = vmul.f32 %v3147_v19, %v744_v56 }
 0x8bf   :  { %v960_v31 = vadd.f32 %v958_v61, %v944_v14 }
 0x8c0   :  { %v673_v1 = vadd.f32 %v671_v46, %v657_v22  ;;  %v990_v22 = vmul.f32 %v3246_v48, %v3137_v36  ;;  %v3266_v36 = vrot.slane %v2858_v59, %v2723_v17 }
 0x8c2   :  { %v840_v40 = vpop.permute.xlu0 %839  ;;  %v680_v21 = vpop.permute.xlu1 %679  ;;  %v1038_v19 = vmul.f32 %v3266_v36, %v3167_v25  ;;  %v1077_v25 = vrot.slane %v2858_v59, %v2699_v6 }
 0x8c3   :  { %v687_v62 = vmul.f32 %v3120_v12, %v680_v21  ;;  %v974_v12 = vmul.f32 %v3242_v30, %v3165_v41 }
 0x8c5   :  { %v689_v57 = vadd.f32 %v687_v62, %v673_v1  ;;  %v976_v38 = vadd.f32 %v974_v12, %v960_v31  ;;  %v799_v12 = vmul.f32 %v3173_v27, %v792_v42  ;;  %v847_v42 = vmul.f32 %v3191_v8, %v840_v40 }
 0x8c7   :  { %v888_v37 = vpop.permute.xlu0 %887  ;;  %v712_v26 = vpop.permute.xlu1 %711  ;;  %v705_v54 = vadd.f32 %v703_v23, %v689_v57  ;;  %v992_v41 = vadd.f32 %v990_v22, %v976_v38  ;;  %v3273_v57 = vrot.slane %v2858_v59, %v2738_v24 }
 0x8c8   :  { %v719_v28 = vmul.f32 %v3132_v11, %v712_v26  ;;  %v3261_v11 = vrot.slane %v2858_v59, %v2726_v18 }
 0x8c9   :  { %v1008_v62 = vadd.f32 %v1006_v32, %v992_v41 }
 0x8ca   :  { %v721_v46 = vadd.f32 %v719_v28, %v705_v54  ;;  %v1022_v43 = vmul.f32 %v3261_v11, %v3181_v20  ;;  %v1054_v54 = vmul.f32 %v3273_v57, %v3183_v50 }
 0x8cc   :  { %v936_v29 = vpop.permute.xlu0 %935  ;;  %v728_v9 = vpop.permute.xlu1 %727  ;;  %v1024_v14 = vadd.f32 %v1022_v43, %v1008_v62 }
 0x8cd   :  { %v735_v16 = vmul.f32 %v3143_v15, %v728_v9 }
 0x8ce   :  { %v1040_v28 = vadd.f32 %v1038_v19, %v1024_v14 }
 0x8cf   :  { %v737_v47 = vadd.f32 %v735_v16, %v721_v46 }
 0x8d0   :  { %v1056_v9 = vadd.f32 %v1054_v54, %v1040_v28 }
 0x8d1   :  { %v984_v21 = vpop.permute.xlu0 %983  ;;  %v760_v1 = vpop.permute.xlu1 %759  ;;  %v753_v61 = vadd.f32 %v751_v35, %v737_v47 }
 0x8d2   :  { %v767_v15 = vmul.f32 %v3159_v39, %v760_v1  ;;  %v1069_v39 = vrot.slane %v2858_v59, %v2702_v7 }
 0x8d4   :  { %v769_v26 = vadd.f32 %v767_v15, %v753_v61 }
 0x8d6   :  { %v1032_v56 = vpop.permute.xlu0 %1031  ;;  %v776_v23 = vpop.permute.xlu1 %775 }
 0x8d7   :  { %v783_v31 = vmul.f32 %v3170_v44, %v776_v23 }
 0x8d9   :  { %v785_v20 = vadd.f32 %v783_v31, %v769_v26 }
 0x8db   :  { %v1060_v38 = vpop.permute.xlu0 %1059  ;;  %v808_v22 = vpop.permute.xlu1 %807  ;;  %v801_v16 = vadd.f32 %v799_v12, %v785_v20 }
 0x8dc   :  { %v1070_v46 = vmul.f32 %v1069_v39, %v1060_v38  ;;  %v815_v44 = vmul.f32 %v3176_v4, %v808_v22 }
 0x8de   :  { %v1072_v32 = vadd.f32 %v1070_v46, %v1056_v9  ;;  %v817_v41 = vadd.f32 %v815_v44, %v801_v16 }
 0x8e0   :  { %v1078_v47 = vadd.f32 %v1077_v25, %v1072_v32  ;;  %v824_v50 = vpop.permute.xlu1 %823 }
 0x8e1   :  { %v831_v35 = vmul.f32 %v3188_v55, %v824_v50 }
 0x8e2   :  { %v3288_v1 = vadd.f32 %v1078_v47, %v2865_v5  ;;  %v895_v5 = vmul.f32 %v3211_v33, %v888_v37  ;;  %v991_v37 = vmul.f32 %v3246_v48, %v984_v21 }
 0x8e3   :  { %v833_v27 = vadd.f32 %v831_v35, %v817_v41 }
 0x8e4   :  { %1084 = vrot.lane.b32.xlu1 %v3288_v1, %s2640_s16 }
 0x8e5   :  { %v856_v62 = vpop.permute.xlu1 %855  ;;  %v849_v61 = vadd.f32 %v847_v42, %v833_v27 }
 0x8e6   :  { %v863_v15 = vmul.f32 %v3195_v2, %v856_v62  ;;  %v943_v2 = vmul.f32 %v3228_v0, %v936_v29  ;;  %v1039_v29 = vmul.f32 %v3266_v36, %v1032_v56 }
 0x8e8   :  { %1092 = vrot.lane.b32.xlu1 %v3288_v1, %s2641_s17  ;;  %v865_v43 = vadd.f32 %v863_v15, %v849_v61 }
 0x8ea   :  { %v872_v4 = vpop.permute.xlu1 %871 }
 0x8eb   :  { %v879_v55 = vmul.f32 %v3204_v34, %v872_v4 }
 0x8ed   :  { %v881_v14 = vadd.f32 %v879_v55, %v865_v43 }
 0x8ef   :  { %v904_v19 = vpop.permute.xlu1 %903  ;;  %v897_v23 = vadd.f32 %v895_v5, %v881_v14 }
 0x8f0   :  { %v911_v26 = vmul.f32 %v3216_v63, %v904_v19 }
 0x8f2   :  { %v913_v8 = vadd.f32 %v911_v26, %v897_v23 }
 0x8f4   :  { %v920_v31 = vpop.permute.xlu1 %919 }
 0x8f5   :  { %v927_v40 = vmul.f32 %v3224_v60, %v920_v31 }
 0x8f7   :  { %v929_v54 = vadd.f32 %v927_v40, %v913_v8 }
 0x8f9   :  { %v952_v20 = vpop.permute.xlu1 %951  ;;  %v945_v28 = vadd.f32 %v943_v2, %v929_v54 }
 0x8fa   :  { %v959_v12 = vmul.f32 %v3234_v3, %v952_v20 }
 0x8fc   :  { %v961_v34 = vadd.f32 %v959_v12, %v945_v28 }
 0x8fe   :  { %v968_v38 = vpop.permute.xlu1 %967 }
 0x8ff   :  { %v975_v22 = vmul.f32 %v3242_v30, %v968_v38 }
 0x901   :  { %v977_v33 = vadd.f32 %v975_v22, %v961_v34 }
 0x903   :  { %v1000_v9 = vpop.permute.xlu1 %999  ;;  %v993_v63 = vadd.f32 %v991_v37, %v977_v33 }
 0x904   :  { %v1007_v46 = vmul.f32 %v3252_v53, %v1000_v9 }
 0x906   :  { %v1009_v60 = vadd.f32 %v1007_v46, %v993_v63 }
 0x908   :  { %v1016_v16 = vpop.permute.xlu1 %1015 }
 0x909   :  { %v1023_v44 = vmul.f32 %v3261_v11, %v1016_v16 }
 0x90b   :  { %v1025_v0 = vadd.f32 %v1023_v44, %v1009_v60 }
 0x90d   :  { %v1048_v32 = vpop.permute.xlu1 %1047  ;;  %v1041_v3 = vadd.f32 %v1039_v29, %v1025_v0  ;;  %v3334_v29 = vld [vmem:[%s3876_s1 + $0x30] sm:$0xff] }
 0x90e   :  { %v1055_v47 = vmul.f32 %v3273_v57, %v1048_v32 }
 0x910   :  { %v1057_v30 = vadd.f32 %v1055_v47, %v1041_v3  ;;  %v1179_v3 = vrot.slane %v2858_v59, %v2820_v51 }
 0x912   :  { %v1064_v50 = vpop.permute.xlu1 %1063 }
 0x913   :  { %v1071_v41 = vmul.f32 %v1069_v39, %v1064_v50  ;;  %v1185_v50 = vrot.slane %v3334_v29, %v2726_v18 }
 0x915   :  { %v1073_v35 = vadd.f32 %v1071_v41, %v1057_v30 }
 0x917   :  { %v1079_v48 = vadd.f32 %v1077_v25, %v1073_v35 }
 0x919   :  { %v3309_v21 = vadd.f32 %v1079_v48, %v2873_v13  ;;  %v3963_v48 = vmov 1  }
 0x91b   :  { %1086 = vrot.lane.b32.xlu0 %v3309_v21, %s2640_s16 }
 0x91f   :  { %1094 = vrot.lane.b32.xlu0 %v3309_v21, %s2641_s17 }
 0x956   :  { %v1085_v53 = vpop.permute.xlu1 %1084 }
 0x957   :  { %v1090_v11 = vadd.f32 %v1085_v53, %v3288_v1  ;;  %v3964_v53 = vmov 2  }
 0x95a   :  { %v1093_v36 = vpop.permute.xlu1 %1092 }
 0x95b   :  { %v1098_v56 = vadd.f32 %v1093_v36, %v1090_v11 }
 0x95d   :  { %v1100_v57 = vmul.f32 0.33333334, %v1098_v56 }
 0x95f   :  { %1106 = vrot.lane.b32.xlu1 %v1100_v57, %s2642_s18  ;;  %v1102_v8 = vsub.f32 %v3288_v1, %v1100_v57 }
 0x961   :  { %v1122_v54 = vmul.f32 %v1102_v8, %v1102_v8  ;;  %v1239_v8 = vrot.slane %v3334_v29, %v2699_v6 }
 0x963   :  { %1114 = vrot.lane.b32.xlu1 %v1100_v57, %s2643_s19 }
 0x98d   :  { %v1087_v39 = vpop.permute.xlu0 %1086 }
 0x98e   :  { %v1091_v13 = vadd.f32 %v1087_v39, %v3309_v21  ;;  %v3965_v39 = vmov 0  }
 0x991   :  { %v1095_v25 = vpop.permute.xlu0 %1094 }
 0x992   :  { %v1099_v27 = vadd.f32 %v1095_v25, %v1091_v13  ;;  %v1215_v25 = vrot.slane %v3334_v29, %v2738_v24 }
 0x994   :  { %v1101_v42 = vmul.f32 0.33333334, %v1099_v27 }
 0x996   :  { %1108 = vrot.lane.b32.xlu0 %v1101_v42, %s2642_s18  ;;  %v1103_v22 = vsub.f32 %v3309_v21, %v1101_v42 }
 0x998   :  { %v1123_v37 = vmul.f32 %v1103_v22, %v1103_v22 }
 0x99a   :  { %1116 = vrot.lane.b32.xlu0 %v1101_v42, %s2643_s19 }
 0x9d1   :  { %v1107_v62 = vpop.permute.xlu1 %1106 }
 0x9d2   :  { %v1112_v61 = vsub.f32 %v3288_v1, %v1107_v62 }
 0x9d4   :  { %v1124_v15 = vmul.f32 %v1112_v61, %v1112_v61 }
 0x9d5   :  { %v1115_v4 = vpop.permute.xlu1 %1114 }
 0x9d6   :  { %v1120_v43 = vsub.f32 %v3288_v1, %v1115_v4  ;;  %1128 = vrot.lane.b32.xlu1 %v1124_v15, %s2640_s16 }
 0x9d8   :  { %v1136_v55 = vmul.f32 %v1120_v43, %v1120_v43  ;;  %v1231_v43 = vrot.slane %v3334_v29, %v2702_v7 }
 0x9da   :  { %1140 = vrot.lane.b32.xlu1 %v1136_v55, %s2641_s17 }
 0x9de   :  { %1155 = vperm.xlu1 %2481, %v1100_v57  }
 0xa08   :  { %v1109_v14 = vpop.permute.xlu0 %1108 }
 0xa09   :  { %v1113_v5 = vsub.f32 %v3309_v21, %v1109_v14 }
 0xa0b   :  { %v1125_v19 = vmul.f32 %v1113_v5, %v1113_v5 }
 0xa0c   :  { %v1117_v23 = vpop.permute.xlu0 %1116 }
 0xa0d   :  { %v1121_v26 = vsub.f32 %v3309_v21, %v1117_v23  ;;  %1130 = vrot.lane.b32.xlu0 %v1125_v19, %s2640_s16 }
 0xa0f   :  { %v1137_v31 = vmul.f32 %v1121_v26, %v1121_v26 }
 0xa11   :  { %1142 = vrot.lane.b32.xlu0 %v1137_v31, %s2641_s17 }
 0xa15   :  { %1159 = vperm.xlu0 %2482, %v1101_v42   ;;  %v1201_v42 = vrot.slane %v3334_v29, %v2723_v17 }
 0xa48   :  { %v1129_v40 = vpop.permute.xlu1 %1128 }
 0xa49   :  { %v1134_v2 = vadd.f32 %v1129_v40, %v1122_v54 }
 0xa4c   :  { %v1141_v20 = vpop.permute.xlu1 %1140 }
 0xa4d   :  { %v1146_v28 = vadd.f32 %v1141_v20, %v1134_v2 }
 0xa4f   :  { %v1148_v12 = vmul.f32 0.33333334, %v1146_v28 }
 0xa51   :  { %v1150_v38 = vadd.f32 1e-05, %v1148_v12 }
 0xa53   :  { %2598 = vrsqrt.f32 %v1150_v38 }
 0xa5d   :  { %v2599_v34 = vpop.eup %2598  ;;  %v1156_v0 = vpop.permute.xlu1 %1155 }
 0xa5e   :  { %1166 = vperm.xlu1 %2481, %v2599_v34   ;;  %v1162_v32 = vsub.f32 %v3288_v1, %v1156_v0 }
 0xa7f   :  { %v1131_v33 = vpop.permute.xlu0 %1130 }
 0xa80   :  { %v1135_v9 = vadd.f32 %v1131_v33, %v1123_v37 }
 0xa83   :  { %v1143_v63 = vpop.permute.xlu0 %1142 }
 0xa84   :  { %v1147_v46 = vadd.f32 %v1143_v63, %v1135_v9 }
 0xa86   :  { %v1149_v16 = vmul.f32 0.33333334, %v1147_v46 }
 0xa88   :  { %v1151_v60 = vadd.f32 1e-05, %v1149_v16 }
 0xa8a   :  { %2600 = vrsqrt.f32 %v1151_v60 }
 0xa94   :  { %v2601_v44 = vpop.eup %2600  ;;  %v1160_v1 = vpop.permute.xlu0 %1159 }
 0xa95   :  { %1171 = vperm.xlu1 %2481, %v2601_v44   ;;  %v1163_v11 = vsub.f32 %v3309_v21, %v1160_v1 }
 0xadd   :  { %v1167_v47 = vpop.permute.xlu1 %1166 }
 0xade   :  { %v1174_v30 = vmul.f32 %v1167_v47, %v1162_v32 }
 0xae0   :  { %v1180_v41 = vmul.f32 %v1179_v3, %v1174_v30 }
 0xae2   :  { %v3341_v35 = vadd.f32 %v1185_v50, %v1180_v41 }
 0xae4   :  { %1190 = vperm.xlu0 %2482, %v3341_v35  }
 0xae8   :  { %2483 = vset.pattern.permute.xlu0 %v3963_v48 }
 0xae9   :  { %1205 = vperm.xlu0 %2483, %v3341_v35  }
 0xaed   :  { %2486 = vset.pattern.permute.xlu0 %v3964_v53 }
 0xb14   :  { %v1172_v59 = vpop.permute.xlu1 %1171 }
 0xb15   :  { %v1175_v36 = vmul.f32 %v1172_v59, %v1163_v11 }
 0xb17   :  { %v1181_v56 = vmul.f32 %v1179_v3, %v1175_v36 }
 0xb19   :  { %v3348_v57 = vadd.f32 %v1185_v50, %v1181_v56 }
 0xb1b   :  { %1225 = vperm.xlu0 %2486, %v3348_v57   ;;  %1195 = vperm.xlu1 %2481, %v3348_v57  }
 0xb1f   :  { %2484 = vset.pattern.permute.xlu1 %v3963_v48  ;;  %2487 = vset.pattern.permute.xlu0 %v3965_v39 }
 0xb20   :  { %1209 = vperm.xlu1 %2484, %v3348_v57  }
 0xb24   :  { %2485 = vset.pattern.permute.xlu1 %v3964_v53 }
 0xb25   :  { %1221 = vperm.xlu1 %2485, %v3341_v35  }
 0xb29   :  { %2488 = vset.pattern.permute.xlu1 %v3963_v48 }
 0xb63   :  { %v1191_v21 = vpop.permute.xlu0 %1190 }
 0xb64   :  { %v1202_v4 = vmul.f32 %v1201_v42, %v1191_v21 }
 0xb68   :  { %v1206_v27 = vpop.permute.xlu0 %1205 }
 0xb69   :  { %v1216_v61 = vmul.f32 %v1215_v25, %v1206_v27 }
 0xb6b   :  { %v1218_v19 = vadd.f32 %v1216_v61, %v1202_v4 }
 0xb9a   :  { %v1196_v13 = vpop.permute.xlu1 %1195  ;;  %v1226_v14 = vpop.permute.xlu0 %1225 }
 0xb9b   :  { %v1203_v55 = vmul.f32 %v1201_v42, %v1196_v13  ;;  %v1233_v31 = vmul.f32 %v1231_v43, %v1226_v14 }
 0xb9f   :  { %v1210_v62 = vpop.permute.xlu1 %1209 }
 0xba0   :  { %v1217_v15 = vmul.f32 %v1215_v25, %v1210_v62 }
 0xba2   :  { %v1219_v23 = vadd.f32 %v1217_v15, %v1203_v55 }
 0xba4   :  { %v1222_v5 = vpop.permute.xlu1 %1221  ;;  %v1235_v54 = vadd.f32 %v1233_v31, %v1219_v23 }
 0xba5   :  { %v1232_v26 = vmul.f32 %v1231_v43, %v1222_v5 }
 0xba6   :  { %v1241_v20 = vadd.f32 %v1239_v8, %v1235_v54 }
 0xba7   :  { %v1234_v40 = vadd.f32 %v1232_v26, %v1218_v19 }
 0xba9   :  { %v1240_v2 = vadd.f32 %v1239_v8, %v1234_v40 }
 0xbab   :  { %1279 = vperm.xlu0 %2487, %v1240_v2   ;;  %1243 = vrot.lane.b32.xlu1 %v1240_v2, %s2638_s0 }
 0xbaf   :  { %2491 = vset.pattern.permute.xlu0 %v3963_v48  ;;  %1365 = vrot.lane.b32.xlu1 %v1241_v20, %s2638_s0 }
 0xbb0   :  { %1410 = vperm.xlu0 %2491, %v1241_v20  }
 0xbb3   :  { %1288 = vperm.xlu1 %2488, %v1240_v2  }
 0xbb7   :  { %2489 = vset.pattern.permute.xlu1 %v3964_v53 }
 0xbb8   :  { %1297 = vperm.xlu1 %2489, %v1240_v2  }
 0xbbc   :  { %2490 = vset.pattern.permute.xlu1 %v3965_v39 }
 0xbbd   :  { %1401 = vperm.xlu1 %2490, %v1241_v20  }
 0xbc1   :  { %2492 = vset.pattern.permute.xlu1 %v3964_v53 }
 0xbc2   :  { %1419 = vperm.xlu1 %2492, %v1241_v20  }
 0xc1d   :  { %v1244_v28 = vpop.permute.xlu1 %1243 }
 0xc1e   :  { %1246 = vxpose.xlu0.b32.start.end [1/1] (short) (narrow) %v1244_v28, 8 }
 0xc21   :  { %v1366_v12 = vpop.permute.xlu1 %1365 }
 0xc22   :  { %1368 = vxpose.xlu1.b32.start.end [1/1] (short) (narrow) %v1366_v12, 8 }
 0xc2a   :  { %v1280_v22 = vpop.permute.xlu0 %1279 }
 0xc2f   :  { %v1411_v37 = vpop.permute.xlu0 %1410 }
 0xc32   :  { %v1289_v38 = vpop.permute.xlu1 %1288 }
 0xc37   :  { %v1298_v34 = vpop.permute.xlu1 %1297 }
 0xc3c   :  { %v1402_v33 = vpop.permute.xlu1 %1401 }
 0xc40   :  { %2493 = vset.pattern.permute.xlu1 %v3965_v39 }
 0xc41   :  { %v1420_v9 = vpop.permute.xlu1 %1419 }
 0xc47   :  { %2494 = vset.pattern.permute.xlu0 %v3965_v39 }
 0xc9e   :  { %v3374_v63 = vpop.trf.xlu0 }
 0xc9f   :  { %v1285_v46 = vrot.slane %v3374_v63, %v2726_v18  ;;  %v1294_v16 = vrot.slane %v3374_v63, %v2723_v17  ;;  %v1303_v60 = vrot.slane %v3374_v63, %v2738_v24 }
 0xca1   :  { %v1286_v44 = vmul.f32 %v1285_v46, %v1280_v22  ;;  %v1295_v0 = vmul.f32 %v1294_v16, %v1289_v38  ;;  %v1304_v50 = vmul.f32 %v1303_v60, %v1298_v34 }
 0xca2   :  { %v3382_v32 = vpop.trf.xlu1 }
 0xca3   :  { %v1305_v3 = vsel %vm160_vm0, %v1286_v44, -inf  ;;  %v1308_v47 = vsel %vm160_vm0, %v1295_v0, -inf  ;;  %v1407_v30 = vrot.slane %v3382_v32, %v2726_v18  ;;  %v1416_v41 = vrot.slane %v3382_v32, %v2723_v17 }
 0xca4   :  { %1306 = vmax.xlane.f32.xlu0 %v1305_v3  ;;  %1309 = vmax.xlane.f32.xlu1 %v1308_v47  ;;  %v1311_v11 = vsel %vm160_vm0, %v1304_v50, -inf  ;;  %v1425_v56 = vrot.slane %v3382_v32, %v2738_v24 }
 0xca5   :  { %v1408_v1 = vmul.f32 %v1407_v30, %v1402_v33  ;;  %v1417_v36 = vmul.f32 %v1416_v41, %v1411_v37 }
 0xca6   :  { %v1426_v13 = vmul.f32 %v1425_v56, %v1420_v9  ;;  %v1349_v56 = vrot.slane %v3374_v63, %v2699_v6 }
 0xca7   :  { %v1427_v59 = vsel %vm160_vm0, %v1408_v1, -inf  ;;  %v1430_v21 = vsel %vm160_vm0, %v1417_v36, -inf }
 0xca8   :  { %1312 = vmax.xlane.f32.xlu1 %v1311_v11  ;;  %1428 = vmax.xlane.f32.xlu0 %v1427_v59  ;;  %v1433_v25 = vsel %vm160_vm0, %v1426_v13, -inf  ;;  %v1341_v59 = vrot.slane %v3374_v63, %v2702_v7 }
 0xcac   :  { %1431 = vmax.xlane.f32.xlu0 %v1430_v21 }
 0xcb0   :  { %1434 = vmax.xlane.f32.xlu0 %v1433_v25 }
 0xd31   :  { %v1307_v27 = vpop.xlane.xlu0 %1306  ;;  %v1310_v42 = vpop.xlane.xlu1 %1309 }
 0xd32   :  { %v1314_v62 = vsub.f32 %v1286_v44, %v1307_v27  ;;  %v1315_v61 = vsub.f32 %v1295_v0, %v1310_v42 }
 0xd34   :  { %v1317_v15 = vmul.f32 1.442695, %v1314_v62  ;;  %v1319_v4 = vmul.f32 1.442695, %v1315_v61  ;;  %v1463_v62 = vrot.slane %v3382_v32, %v2702_v7 }
 0xd35   :  { %v1429_v43 = vpop.xlane.xlu0 %1428  ;;  %v1313_v55 = vpop.xlane.xlu1 %1312 }
 0xd36   :  { %2602 = vpow2.f32 %v1317_v15  ;;  %v1436_v14 = vsub.f32 %v1408_v1, %v1429_v43  ;;  %v1316_v5 = vsub.f32 %v1304_v50, %v1313_v55 }
 0xd37   :  { %2604 = vpow2.f32 %v1319_v4 }
 0xd38   :  { %v1439_v19 = vmul.f32 1.442695, %v1436_v14  ;;  %v1321_v23 = vmul.f32 1.442695, %v1316_v5  ;;  %v1471_v5 = vrot.slane %v3382_v32, %v2699_v6 }
 0xd39   :  { %v1432_v26 = vpop.xlane.xlu0 %1431 }
 0xd3a   :  { %2606 = vpow2.f32 %v1439_v19  ;;  %v1437_v31 = vsub.f32 %v1417_v36, %v1432_v26 }
 0xd3b   :  { %2608 = vpow2.f32 %v1321_v23  ;;  %v1357_v23 = vrot.slane %v3374_v63, %v2789_v10 }
 0xd3c   :  { %v1441_v8 = vmul.f32 1.442695, %v1437_v31 }
 0xd3d   :  { %v1435_v40 = vpop.xlane.xlu0 %1434 }
 0xd3e   :  { %2610 = vpow2.f32 %v1441_v8  ;;  %v1438_v54 = vsub.f32 %v1426_v13, %v1435_v40 }
 0xd40   :  { %v2603_v2 = vpop.eup %2602  ;;  %v1443_v20 = vmul.f32 1.442695, %v1438_v54 }
 0xd41   :  { %v2605_v28 = vpop.eup %2604  ;;  %v1323_v12 = vsel %vm160_vm0, %v2603_v2, 0.0 }
 0xd42   :  { %2612 = vpow2.f32 %v1443_v20  ;;  %1324 = vadd.xlane.f32.xlu1 %v1323_v12  ;;  %v1326_v38 = vsel %vm160_vm0, %v2605_v28, 0.0 }
 0xd43   :  { %1327 = vadd.xlane.f32.xlu0 %v1326_v38 }
 0xd44   :  { %v2607_v34 = vpop.eup %2606 }
 0xd45   :  { %v1445_v22 = vsel %vm160_vm0, %v2607_v34, 0.0  ;;  %v2609_v33 = vpop.eup %2608 }
 0xd46   :  { %1446 = vadd.xlane.f32.xlu1 %v1445_v22  ;;  %v1329_v46 = vsel %vm160_vm0, %v2609_v33, 0.0 }
 0xd48   :  { %v2611_v37 = vpop.eup %2610 }
 0xd49   :  { %v1448_v9 = vsel %vm160_vm0, %v2611_v37, 0.0 }
 0xd4a   :  { %1449 = vadd.xlane.f32.xlu0 %v1448_v9  ;;  %1330 = vadd.xlane.f32.xlu1 %v1329_v46 }
 0xd4c   :  { %v2613_v16 = vpop.eup %2612 }
 0xd4d   :  { %v1451_v60 = vsel %vm160_vm0, %v2613_v16, 0.0 }
 0xd4e   :  { %1452 = vadd.xlane.f32.xlu0 %v1451_v60 }
 0xdcf   :  { %v1325_v44 = vpop.xlane.xlu1 %1324 }
 0xdd0   :  { %v1328_v0 = vpop.xlane.xlu0 %1327  ;;  %2614 = vrcp.f32 %v1325_v44  ;;  %v1513_v44 = vrot.slane %v3334_v29, %v2813_v45 }
 0xdd1   :  { %2616 = vrcp.f32 %v1328_v0  ;;  %v1499_v0 = vrot.slane %v3334_v29, %v2789_v10 }
 0xdd3   :  { %v1447_v3 = vpop.xlane.xlu1 %1446 }
 0xdd4   :  { %2618 = vrcp.f32 %v1447_v3 }
 0xdd7   :  { %v1450_v47 = vpop.xlane.xlu0 %1449  ;;  %v1331_v50 = vpop.xlane.xlu1 %1330 }
 0xdd8   :  { %2620 = vrcp.f32 %v1450_v47 }
 0xdd9   :  { %2622 = vrcp.f32 %v1331_v50  ;;  %v1529_v50 = vrot.slane %v3334_v29, %v2820_v51 }
 0xdda   :  { %v2615_v30 = vpop.eup %2614 }
 0xddb   :  { %v2617_v41 = vpop.eup %2616  ;;  %v1453_v1 = vpop.xlane.xlu0 %1452  ;;  %v1333_v11 = vmul.f32 %v2615_v30, %v2603_v2  ;;  %v1479_v2 = vrot.slane %v3382_v32, %v2789_v10  ;;  %v3438_v30 = vld [vmem:[%s3876_s1 + $0x38] sm:$0xff] }
 0xddc   :  { %2624 = vrcp.f32 %v1453_v1  ;;  %v1335_v36 = vmul.f32 %v2617_v41, %v2605_v28 }
 0xddd   :  { %v1342_v21 = vmul.f32 %v1341_v59, %v1333_v11  ;;  %v1537_v59 = vrot.slane %v3438_v30, %v2726_v18 }
 0xdde   :  { %v2619_v13 = vpop.eup %2618  ;;  %v1350_v25 = vmul.f32 %v1349_v56, %v1335_v36 }
 0xddf   :  { %v1343_v27 = vsel %vm160_vm0, %v1342_v21, 0.0  ;;  %v1455_v42 = vmul.f32 %v2619_v13, %v2607_v34 }
 0xde0   :  { %v1351_v61 = vsel %vm160_vm0, %v1350_v25, 0.0  ;;  %1344 = vadd.xlane.f32.xlu1 %v1343_v27 }
 0xde1   :  { %1352 = vadd.xlane.f32.xlu0 %v1351_v61  ;;  %v1464_v15 = vmul.f32 %v1463_v62, %v1455_v42 }
 0xde2   :  { %v2621_v4 = vpop.eup %2620 }
 0xde3   :  { %v2623_v43 = vpop.eup %2622  ;;  %v1465_v55 = vsel %vm160_vm0, %v1464_v15, 0.0  ;;  %v1457_v14 = vmul.f32 %v2621_v4, %v2611_v37 }
 0xde4   :  { %1466 = vadd.xlane.f32.xlu1 %v1465_v55  ;;  %v1337_v19 = vmul.f32 %v2623_v43, %v2609_v33 }
 0xde5   :  { %v1472_v26 = vmul.f32 %v1471_v5, %v1457_v14 }
 0xde6   :  { %v2625_v31 = vpop.eup %2624  ;;  %v1358_v8 = vmul.f32 %v1357_v23, %v1337_v19 }
 0xde7   :  { %v1473_v40 = vsel %vm160_vm0, %v1472_v26, 0.0  ;;  %v1459_v54 = vmul.f32 %v2625_v31, %v2613_v16 }
 0xde8   :  { %1474 = vadd.xlane.f32.xlu0 %v1473_v40  ;;  %v1359_v20 = vsel %vm160_vm0, %v1358_v8, 0.0 }
 0xde9   :  { %1360 = vadd.xlane.f32.xlu1 %v1359_v20  ;;  %v1480_v28 = vmul.f32 %v1479_v2, %v1459_v54 }
 0xdeb   :  { %v1481_v12 = vsel %vm160_vm0, %v1480_v28, 0.0 }
 0xdec   :  { %1482 = vadd.xlane.f32.xlu0 %v1481_v12 }
 0xe6d   :  { %v1345_v38 = vpop.xlane.xlu1 %1344 }
 0xe6e   :  { %v1353_v34 = vpop.xlane.xlu0 %1352 }
 0xe6f   :  { %v1362_v33 = vsel %vm218_vm1, %v1345_v38, %v1353_v34 }
 0xe71   :  { %v1467_v63 = vpop.xlane.xlu1 %1466 }
 0xe75   :  { %v1475_v22 = vpop.xlane.xlu0 %1474 }
 0xe76   :  { %v1361_v37 = vpop.xlane.xlu1 %1360  ;;  %v1484_v32 = vsel %vm218_vm1, %v1467_v63, %v1475_v22 }
 0xe77   :  { %v1363_v9 = vsel %vm220_vm2, %v1362_v33, %v1361_v37 }
 0xe78   :  { %1488 = vperm.xlu1 %2493, %v1363_v9  }
 0xe79   :  { %v1483_v46 = vpop.xlane.xlu0 %1482 }
 0xe7a   :  { %v1485_v16 = vsel %vm220_vm2, %v1484_v32, %v1483_v46 }
 0xe7b   :  { %1493 = vperm.xlu0 %2494, %v1485_v16  }
 0xe7c   :  { %2495 = vset.pattern.permute.xlu1 %v3963_v48 }
 0xe7d   :  { %1503 = vperm.xlu1 %2495, %v1363_v9  }
 0xe81   :  { %2496 = vset.pattern.permute.xlu1 %v3964_v53 }
 0xe82   :  { %1519 = vperm.xlu1 %2496, %v1363_v9  }
 0xe86   :  { %2497 = vset.pattern.permute.xlu1 %v3963_v48 }
 0xe87   :  { %1507 = vperm.xlu1 %2497, %v1485_v16  }
 0xe8b   :  { %2498 = vset.pattern.permute.xlu1 %v3964_v53 }
 0xe8c   :  { %1523 = vperm.xlu1 %2498, %v1485_v16  }
 0xe90   :  { %2499 = vset.pattern.permute.xlu1 %v3965_v39 }
 0xef7   :  { %v1489_v60 = vpop.permute.xlu1 %1488 }
 0xef8   :  { %v1500_v41 = vmul.f32 %v1499_v0, %v1489_v60 }
 0xefa   :  { %v1494_v25 = vpop.permute.xlu0 %1493 }
 0xefb   :  { %v1501_v42 = vmul.f32 %v1499_v0, %v1494_v25 }
 0xefc   :  { %v1504_v3 = vpop.permute.xlu1 %1503 }
 0xefd   :  { %v1514_v47 = vmul.f32 %v1513_v44, %v1504_v3 }
 0xeff   :  { %v1516_v11 = vadd.f32 %v1514_v47, %v1500_v41 }
 0xf01   :  { %v1520_v1 = vpop.permute.xlu1 %1519 }
 0xf02   :  { %v1530_v36 = vmul.f32 %v1529_v50, %v1520_v1 }
 0xf04   :  { %v1532_v56 = vadd.f32 %v1530_v36, %v1516_v11 }
 0xf06   :  { %v1538_v21 = vadd.f32 %v1537_v59, %v1532_v56  ;;  %v1508_v13 = vpop.permute.xlu1 %1507 }
 0xf07   :  { %v1515_v29 = vmul.f32 %v1513_v44, %v1508_v13 }
 0xf08   :  { %v3443_v27 = vadd.f32 %v1538_v21, %v3341_v35 }
 0xf09   :  { %v1517_v61 = vadd.f32 %v1515_v29, %v1501_v42  ;;  %v3475_v42 = vld [vmem:[%s3876_s1 + $0x58] sm:$0xff] }
 0xf0a   :  { %1544 = vrot.lane.b32.xlu1 %v3443_v27, %s2640_s16 }
 0xf0b   :  { %v1524_v62 = vpop.permute.xlu1 %1523 }
 0xf0c   :  { %v1531_v15 = vmul.f32 %v1529_v50, %v1524_v62 }
 0xf0e   :  { %v1533_v4 = vadd.f32 %v1531_v15, %v1517_v61  ;;  %v1639_v15 = vrot.slane %v3475_v42, %v2813_v45 }
 0xf10   :  { %v1539_v43 = vadd.f32 %v1537_v59, %v1533_v4 }
 0xf12   :  { %v3448_v55 = vadd.f32 %v1539_v43, %v3348_v57 }
 0xf14   :  { %1554 = vrot.lane.b32.xlu0 %v3448_v55, %s2641_s17  ;;  %1546 = vrot.lane.b32.xlu1 %v3448_v55, %s2640_s16 }
 0xf18   :  { %1552 = vrot.lane.b32.xlu1 %v3443_v27, %s2641_s17 }
 0xf7c   :  { %v1545_v35 = vpop.permute.xlu1 %1544 }
 0xf7d   :  { %v1550_v23 = vadd.f32 %v1545_v35, %v3443_v27  ;;  %v1645_v35 = vrot.slane %v3475_v42, %v2820_v51 }
 0xf86   :  { %v1547_v14 = vpop.permute.xlu1 %1546  ;;  %v1555_v19 = vpop.permute.xlu0 %1554 }
 0xf87   :  { %v1551_v5 = vadd.f32 %v1547_v14, %v3448_v55 }
 0xf89   :  { %v1559_v26 = vadd.f32 %v1555_v19, %v1551_v5 }
 0xf8a   :  { %v1553_v31 = vpop.permute.xlu1 %1552 }
 0xf8b   :  { %v1561_v57 = vmul.f32 0.33333334, %v1559_v26  ;;  %v1558_v8 = vadd.f32 %v1553_v31, %v1550_v23 }
 0xf8d   :  { %v1560_v40 = vmul.f32 0.33333334, %v1558_v8  ;;  %1568 = vrot.lane.b32.xlu0 %v1561_v57, %s2642_s18  ;;  %v1563_v32 = vsub.f32 %v3448_v55, %v1561_v57  ;;  %v3499_v8 = vrot.slane %v3438_v30, %v2723_v17 }
 0xf8f   :  { %1566 = vrot.lane.b32.xlu1 %v1560_v40, %s2642_s18  ;;  %v1562_v46 = vsub.f32 %v3443_v27, %v1560_v40  ;;  %v1583_v60 = vmul.f32 %v1563_v32, %v1563_v32  ;;  %v3971_v32 = vmov 6  }
 0xf91   :  { %1576 = vrot.lane.b32.xlu0 %v1561_v57, %s2643_s19  ;;  %v1582_v3 = vmul.f32 %v1562_v46, %v1562_v46  ;;  %v3972_v46 = vmov 5  }
 0xf93   :  { %1574 = vrot.lane.b32.xlu1 %v1560_v40, %s2643_s19 }
 0xfff   :  { %v1569_v54 = vpop.permute.xlu0 %1568 }
0x1000   :  { %v1573_v2 = vsub.f32 %v3448_v55, %v1569_v54 }
0x1001   :  { %v1567_v20 = vpop.permute.xlu1 %1566 }
0x1002   :  { %v1585_v28 = vmul.f32 %v1573_v2, %v1573_v2  ;;  %v1572_v12 = vsub.f32 %v3443_v27, %v1567_v20  ;;  %v3504_v2 = vrot.slane %v3438_v30, %v2702_v7 }
0x1003   :  { %v1577_v38 = vpop.permute.xlu0 %1576 }
0x1004   :  { %v1584_v34 = vmul.f32 %v1572_v12, %v1572_v12  ;;  %v1581_v63 = vsub.f32 %v3448_v55, %v1577_v38  ;;  %1590 = vrot.lane.b32.xlu0 %v1585_v28, %s2640_s16  ;;  %v3509_v38 = vrot.slane %v3438_v30, %v2699_v6 }
0x1005   :  { %v1575_v22 = vpop.permute.xlu1 %1574 }
0x1006   :  { %v1597_v33 = vmul.f32 %v1581_v63, %v1581_v63  ;;  %v1580_v37 = vsub.f32 %v3443_v27, %v1575_v22  ;;  %1588 = vrot.lane.b32.xlu1 %v1584_v34, %s2640_s16 }
0x1008   :  { %v1596_v9 = vmul.f32 %v1580_v37, %v1580_v37  ;;  %1602 = vrot.lane.b32.xlu0 %v1597_v33, %s2641_s17  ;;  %v3969_v37 = vmov 3  }
0x100a   :  { %1600 = vrot.lane.b32.xlu1 %v1596_v9, %s2641_s17  ;;  %v3970_v9 = vmov 4  }
0x100c   :  { %1619 = vperm.xlu0 %2494, %v1561_v57  }
0x100e   :  { %1615 = vperm.xlu1 %2499, %v1560_v40  }
0x1076   :  { %v1591_v16 = vpop.permute.xlu0 %1590 }
0x1077   :  { %v1595_v0 = vadd.f32 %v1591_v16, %v1583_v60  ;;  %v3973_v16 = vmov 9   ;;  %v3974_v60 = vmov 7  }
0x1078   :  { %v1589_v44 = vpop.permute.xlu1 %1588 }
0x1079   :  { %v1594_v50 = vadd.f32 %v1589_v44, %v1582_v3  ;;  %v3975_v44 = vmov 12   ;;  %v3977_v3 = vmov 10  }
0x107a   :  { %v1603_v47 = vpop.permute.xlu0 %1602 }
0x107b   :  { %v1607_v41 = vadd.f32 %v1603_v47, %v1595_v0  ;;  %v3976_v0 = vmov 8   ;;  %v3978_v47 = vmov 11  }
0x107c   :  { %v1601_v1 = vpop.permute.xlu1 %1600 }
0x107d   :  { %v1609_v11 = vmul.f32 0.33333334, %v1607_v41  ;;  %v1606_v59 = vadd.f32 %v1601_v1, %v1594_v50  ;;  %v3979_v50 = vmov 15   ;;  %v3980_v41 = vmov 18  }
0x107e   :  { %v3981_v1 = vmov 13  }
0x107f   :  { %v1611_v36 = vadd.f32 1e-05, %v1609_v11  ;;  %v1608_v56 = vmul.f32 0.33333334, %v1606_v59  ;;  %v3982_v11 = vmov 21   ;;  %v3983_v59 = vmov 14  }
0x1081   :  { %2626 = vrsqrt.f32 %v1611_v36  ;;  %v1610_v21 = vadd.f32 1e-05, %v1608_v56  ;;  %v3984_v36 = vmov 16   ;;  %v3985_v56 = vmov 17  }
0x1083   :  { %2628 = vrsqrt.f32 %v1610_v21  ;;  %v3986_v21 = vmov 19  }
0x108b   :  { %v2627_v13 = vpop.eup %2626  ;;  %v1620_v29 = vpop.permute.xlu0 %1619 }
0x108c   :  { %1631 = vperm.xlu0 %2494, %v2627_v13   ;;  %v1623_v61 = vsub.f32 %v3448_v55, %v1620_v29  ;;  %v3495_v55 = vrot.slane %v3438_v30, %v2738_v24  ;;  %v3987_v13 = vmov 20   ;;  %v3989_v29 = vmov 23  }
0x108d   :  { %v2629_v25 = vpop.eup %2628  ;;  %v1616_v62 = vpop.permute.xlu1 %1615 }
0x108e   :  { %1626 = vperm.xlu1 %2499, %v2629_v25   ;;  %v1622_v43 = vsub.f32 %v3443_v27, %v1616_v62  ;;  %v3988_v25 = vmov 22   ;;  %v3990_v62 = vmov 25  }
0x110b   :  { %v1632_v4 = vpop.permute.xlu0 %1631 }
0x110c   :  { %v1635_v14 = vmul.f32 %v1632_v4, %v1623_v61  ;;  %v3991_v61 = vmov 26   ;;  %v3585_v4 = vrot.slane %v3438_v30, %v2813_v45 }
0x110d   :  { %v1627_v5 = vpop.permute.xlu1 %1626 }
0x110e   :  { %v1641_v19 = vmul.f32 %v1639_v15, %v1635_v14  ;;  %v1634_v23 = vmul.f32 %v1627_v5, %v1622_v43  ;;  %3994 = vst [vmem:[#allocation5_spill] sm:$0xff] %v3585_v4  ;;  %v3589_v43 = vrot.slane %v3438_v30, %v2789_v10  ;;  %v19_v5 = vld [vmem:[%s3876_s1 + $0x40] sm:$0xff] }
0x1110   :  { %v3483_v26 = vadd.f32 %v1645_v35, %v1641_v19  ;;  %v1640_v31 = vmul.f32 %v1639_v15, %v1634_v23  ;;  %v3993_v15 = vmov 29   ;;  %3995 = vst [vmem:[#allocation6_spill] sm:$0xff] %v3589_v43 }
0x1112   :  { %3966 = vst [vmem:[#allocation2_spill] sm:$0xff] %v3483_v26  ;;  %v3485_v57 = vadd.f32 %v1645_v35, %v1640_v31  ;;  %v3598_v31 = vrot.slane %v3438_v30, %v2820_v51 }
0x1114   :  { %3967 = vst [vmem:[#allocation3_spill] sm:$0xff] %v3485_v57  ;;  %1650 = vperm.xlu1 %2499, %v3485_v57   ;;  %3996 = vst [vmem:[#allocation7_spill] sm:$0xff] %v3598_v31 }
0x1118   :  { %2500 = vset.pattern.permute.xlu1 %v3963_v48 }
0x1119   :  { %1665 = vperm.xlu1 %2500, %v3485_v57  }
0x111d   :  { %2501 = vset.pattern.permute.xlu1 %v3964_v53 }
0x111e   :  { %1681 = vperm.xlu1 %2501, %v3485_v57   ;;  %v3613_v57 = vrot.slane %v19_v5, %v2702_v7 }
0x1120   :  { %4000 = vst [vmem:[#allocation11_spill] sm:$0xff] %v3613_v57 }
0x1122   :  { %2502 = vset.pattern.permute.xlu1 %v3963_v48 }
0x1193   :  { %v1651_v27 = vpop.permute.xlu1 %1650 }
0x1194   :  { %v1662_v20 = vmul.f32 %v3499_v8, %v1651_v27  ;;  %v3601_v27 = vrot.slane %v19_v5, %v2726_v18 }
0x1196   :  { %3997 = vst [vmem:[#allocation8_spill] sm:$0xff] %v3601_v27 }
0x1198   :  { %v1666_v40 = vpop.permute.xlu1 %1665 }
0x1199   :  { %v1676_v54 = vmul.f32 %v3495_v55, %v1666_v40 }
0x119b   :  { %v1678_v12 = vadd.f32 %v1676_v54, %v1662_v20 }
0x119d   :  { %v1682_v28 = vpop.permute.xlu1 %1681 }
0x119e   :  { %v1692_v34 = vmul.f32 %v3504_v2, %v1682_v28 }
0x11a0   :  { %v1694_v63 = vadd.f32 %v1692_v34, %v1678_v12 }
0x11a2   :  { %v1700_v22 = vadd.f32 %v3509_v38, %v1694_v63  ;;  %v3606_v63 = vrot.slane %v19_v5, %v2723_v17 }
0x11a4   :  { %v3513_v33 = vmax.f32 %v1700_v22, 0.0  ;;  %3998 = vst [vmem:[#allocation9_spill] sm:$0xff] %v3606_v63 }
0x11a6   :  { %3968 = vst [vmem:[#allocation4_spill] sm:$0xff] %v3513_v33  ;;  %1721 = vperm.xlu1 %2502, %v3513_v33   ;;  %1706 = vperm.xlu0 %2494, %v3513_v33  }
0x11aa   :  { %2503 = vset.pattern.permute.xlu1 %v3964_v53  ;;  %2504 = vset.pattern.permute.xlu0 %v3969_v37 }
0x11ab   :  { %1737 = vperm.xlu1 %2503, %v3513_v33   ;;  %1753 = vperm.xlu0 %2504, %v3513_v33  }
0x11af   :  { %2505 = vset.pattern.permute.xlu1 %v3970_v9  ;;  %2507 = vset.pattern.permute.xlu0 %v3971_v32 }
0x11b0   :  { %1769 = vperm.xlu1 %2505, %v3513_v33   ;;  %1801 = vperm.xlu0 %2507, %v3513_v33  }
0x11b4   :  { %2506 = vset.pattern.permute.xlu1 %v3972_v46  ;;  %2510 = vset.pattern.permute.xlu0 %v3973_v16 }
0x11b5   :  { %1785 = vperm.xlu1 %2506, %v3513_v33   ;;  %1849 = vperm.xlu0 %2510, %v3513_v33  }
0x11b9   :  { %2508 = vset.pattern.permute.xlu1 %v3974_v60  ;;  %2513 = vset.pattern.permute.xlu0 %v3975_v44 }
0x11ba   :  { %1817 = vperm.xlu1 %2508, %v3513_v33   ;;  %1897 = vperm.xlu0 %2513, %v3513_v33  }
0x11be   :  { %2509 = vset.pattern.permute.xlu1 %v3976_v0  ;;  %2514 = vset.pattern.permute.xlu0 %v3965_v39 }
0x11bf   :  { %1833 = vperm.xlu1 %2509, %v3513_v33   ;;  %1655 = vperm.xlu0 %2514, %v3483_v26  }
0x11c3   :  { %2511 = vset.pattern.permute.xlu1 %v3977_v3  ;;  %2515 = vset.pattern.permute.xlu0 %v3963_v48 }
0x11c4   :  { %1865 = vperm.xlu1 %2511, %v3513_v33   ;;  %1669 = vperm.xlu0 %2515, %v3483_v26  }
0x11c8   :  { %2512 = vset.pattern.permute.xlu1 %v3978_v47  ;;  %2519 = vset.pattern.permute.xlu0 %v3979_v50 }
0x11c9   :  { %1881 = vperm.xlu1 %2512, %v3513_v33   ;;  %1945 = vperm.xlu0 %2519, %v3513_v33  }
0x11cd   :  { %2516 = vset.pattern.permute.xlu1 %v3964_v53  ;;  %2522 = vset.pattern.permute.xlu0 %v3980_v41 }
0x11ce   :  { %1685 = vperm.xlu1 %2516, %v3483_v26   ;;  %1993 = vperm.xlu0 %2522, %v3513_v33   ;;  %v3610_v26 = vrot.slane %v19_v5, %v2738_v24 }
0x11d0   :  { %3999 = vst [vmem:[#allocation10_spill] sm:$0xff] %v3610_v26 }
0x11d2   :  { %2517 = vset.pattern.permute.xlu1 %v3981_v1  ;;  %2525 = vset.pattern.permute.xlu0 %v3982_v11 }
0x11d3   :  { %1913 = vperm.xlu1 %2517, %v3513_v33   ;;  %2041 = vperm.xlu0 %2525, %v3513_v33  }
0x11d7   :  { %2518 = vset.pattern.permute.xlu1 %v3983_v59  ;;  %2528 = vset.pattern.permute.xlu0 %v3958_v58 }
0x11d8   :  { %1929 = vperm.xlu1 %2518, %v3513_v33   ;;  %2089 = vperm.xlu0 %2528, %v3513_v33  }
0x11dc   :  { %2520 = vset.pattern.permute.xlu1 %v3984_v36  ;;  %2531 = vset.pattern.permute.xlu0 %v3960_v52 }
0x11dd   :  { %1961 = vperm.xlu1 %2520, %v3513_v33   ;;  %2137 = vperm.xlu0 %2531, %v3513_v33  }
0x11e1   :  { %2521 = vset.pattern.permute.xlu1 %v3985_v56  ;;  %2534 = vset.pattern.permute.xlu0 %v3962_v49 }
0x11e2   :  { %1977 = vperm.xlu1 %2521, %v3513_v33   ;;  %2185 = vperm.xlu0 %2534, %v3513_v33  }
0x11e6   :  { %2523 = vset.pattern.permute.xlu1 %v3986_v21  ;;  %2536 = vset.pattern.permute.xlu0 %v3963_v48  ;;  %v3992_v48 = vmov 28  }
0x11e7   :  { %2009 = vperm.xlu1 %2523, %v3513_v33  }
0x11eb   :  { %2524 = vset.pattern.permute.xlu1 %v3987_v13 }
0x11ec   :  { %2025 = vperm.xlu1 %2524, %v3513_v33  }
0x11f0   :  { %2526 = vset.pattern.permute.xlu1 %v3988_v25 }
0x11f1   :  { %2057 = vperm.xlu1 %2526, %v3513_v33  }
0x11f5   :  { %2527 = vset.pattern.permute.xlu1 %v3989_v29 }
0x11f6   :  { %2073 = vperm.xlu1 %2527, %v3513_v33  }
0x11fa   :  { %2529 = vset.pattern.permute.xlu1 %v3990_v62 }
0x11fb   :  { %2105 = vperm.xlu1 %2529, %v3513_v33  }
0x11ff   :  { %2530 = vset.pattern.permute.xlu1 %v3991_v61 }
0x1200   :  { %2121 = vperm.xlu1 %2530, %v3513_v33  }
0x1204   :  { %2532 = vset.pattern.permute.xlu1 %v3992_v48 }
0x1205   :  { %2153 = vperm.xlu1 %2532, %v3513_v33  }
0x1209   :  { %2533 = vset.pattern.permute.xlu1 %v3993_v15 }
0x120a   :  { %2169 = vperm.xlu1 %2533, %v3513_v33  }
0x120e   :  { %2535 = vset.pattern.permute.xlu1 %v3965_v39 }
0x1225   :  { %v1722_v35 = vpop.permute.xlu1 %1721  ;;  %v1707_v14 = vpop.permute.xlu0 %1706 }
0x1226   :  { %v1732_v19 = vmul.f32 %v3585_v4, %v1722_v35  ;;  %v1718_v23 = vmul.f32 %v3589_v43, %v1707_v14  ;;  %v3625_v4 = vrot.slane %v19_v5, %v2813_v45 }
0x1228   :  { %v1734_v20 = vadd.f32 %v1732_v19, %v1718_v23  ;;  %4003 = vst [vmem:[#allocation14_spill] sm:$0xff] %v3625_v4 }
0x122a   :  { %v1738_v40 = vpop.permute.xlu1 %1737  ;;  %v1754_v54 = vpop.permute.xlu0 %1753 }
0x122b   :  { %v1748_v28 = vmul.f32 %v3598_v31, %v1738_v40  ;;  %v1764_v34 = vmul.f32 %v3601_v27, %v1754_v54  ;;  %v3622_v31 = vrot.slane %v19_v5, %v2789_v10 }
0x122d   :  { %v1750_v12 = vadd.f32 %v1748_v28, %v1734_v20  ;;  %4002 = vst [vmem:[#allocation13_spill] sm:$0xff] %v3622_v31 }
0x122f   :  { %v1766_v22 = vadd.f32 %v1764_v34, %v1750_v12  ;;  %v1770_v35 = vpop.permute.xlu1 %1769  ;;  %v1802_v14 = vpop.permute.xlu0 %1801  ;;  %v3618_v12 = vrot.slane %v19_v5, %v2699_v6 }
0x1230   :  { %v1780_v30 = vmul.f32 %v3606_v63, %v1770_v35  ;;  %v1812_v54 = vmul.f32 %v3613_v57, %v1802_v14  ;;  %v3629_v14 = vrot.slane %v19_v5, %v2820_v51 }
0x1231   :  { %4001 = vst [vmem:[#allocation12_spill] sm:$0xff] %v3618_v12 }
0x1232   :  { %v1782_v23 = vadd.f32 %v1780_v30, %v1766_v22  ;;  %4004 = vst [vmem:[#allocation15_spill] sm:$0xff] %v3629_v14 }
0x1234   :  { %v1786_v19 = vpop.permute.xlu1 %1785  ;;  %v1850_v20 = vpop.permute.xlu0 %1849 }
0x1235   :  { %v1796_v40 = vmul.f32 %v3610_v26, %v1786_v19 }
0x1237   :  { %v1798_v28 = vadd.f32 %v1796_v40, %v1782_v23  ;;  %v1860_v23 = vmul.f32 %v3625_v4, %v1850_v20 }
0x1239   :  { %v1818_v34 = vpop.permute.xlu1 %1817  ;;  %v1814_v27 = vadd.f32 %v1812_v54, %v1798_v28  ;;  %v1898_v63 = vpop.permute.xlu0 %1897 }
0x123a   :  { %v1828_v35 = vmul.f32 %v3618_v12, %v1818_v34  ;;  %v20_v12 = vld [vmem:[%s3876_s1 + $0x48] sm:$0xff] }
0x123b   :  { %v3637_v26 = vrot.slane %v20_v12, %v2726_v18 }
0x123c   :  { %v1830_v30 = vadd.f32 %v1828_v35, %v1814_v27  ;;  %v3640_v35 = vrot.slane %v20_v12, %v2723_v17 }
0x123e   :  { %v1834_v22 = vpop.permute.xlu1 %1833  ;;  %v1656_v54 = vpop.permute.xlu0 %1655 }
0x123f   :  { %v1844_v19 = vmul.f32 %v3622_v31, %v1834_v22 }
0x1241   :  { %v1846_v40 = vadd.f32 %v1844_v19, %v1830_v30  ;;  %v1908_v19 = vmul.f32 %v3640_v35, %v1898_v63  ;;  %v3655_v63 = vrot.slane %v20_v12, %v2702_v7 }
0x1243   :  { %v1866_v28 = vpop.permute.xlu1 %1865  ;;  %v1862_v34 = vadd.f32 %v1860_v23, %v1846_v40  ;;  %v1670_v5 = vpop.permute.xlu0 %1669  ;;  %v1663_v40 = vmul.f32 %v3499_v8, %v1656_v54  ;;  %v3658_v54 = vrot.slane %v20_v12, %v2699_v6 }
0x1244   :  { %v1876_v57 = vmul.f32 %v3629_v14, %v1866_v28  ;;  %v1677_v30 = vmul.f32 %v3495_v55, %v1670_v5 }
0x1246   :  { %v1878_v27 = vadd.f32 %v1876_v57, %v1862_v34  ;;  %v1679_v14 = vadd.f32 %v1677_v30, %v1663_v40  ;;  %v3648_v57 = vrot.slane %v20_v12, %v2738_v24 }
0x1248   :  { %v1882_v22 = vpop.permute.xlu1 %1881 }
0x1249   :  { %v1892_v20 = vmul.f32 %v3637_v26, %v1882_v22 }
0x124b   :  { %v1894_v23 = vadd.f32 %v1892_v20, %v1878_v27  ;;  %v3673_v20 = vrot.slane %v20_v12, %v2813_v45 }
0x124d   :  { %v1686_v4 = vpop.permute.xlu1 %1685  ;;  %v1910_v28 = vadd.f32 %v1908_v19, %v1894_v23  ;;  %v21_v23 = vld [vmem:[%s3876_s1 + $0x50] sm:$0xff] }
0x124e   :  { %v1693_v31 = vmul.f32 %v3504_v2, %v1686_v4  ;;  %v1946_v2 = vpop.permute.xlu0 %1945 }
0x1250   :  { %v1695_v34 = vadd.f32 %v1693_v31, %v1679_v14  ;;  %v3664_v31 = vrot.slane %v20_v12, %v2789_v10 }
0x1252   :  { %v1701_v43 = vadd.f32 %v3509_v38, %v1695_v34  ;;  %v1914_v33 = vpop.permute.xlu1 %1913 }
0x1253   :  { %v1924_v22 = vmul.f32 %v3648_v57, %v1914_v33  ;;  %v1956_v33 = vmul.f32 %v3658_v54, %v1946_v2 }
0x1254   :  { %v3652_v55 = vmax.f32 %v1701_v43, 0.0 }
0x1255   :  { %v1926_v8 = vadd.f32 %v1924_v22, %v1910_v28  ;;  %v3687_v28 = vrot.slane %v21_v23, %v2726_v18 }
0x1256   :  { %1725 = vperm.xlu0 %2536, %v3652_v55   ;;  %1711 = vperm.xlu1 %2535, %v3652_v55  }
0x1257   :  { %v1930_v4 = vpop.permute.xlu1 %1929 }
0x1258   :  { %v1940_v38 = vmul.f32 %v3655_v63, %v1930_v4 }
0x125a   :  { %v1942_v43 = vadd.f32 %v1940_v38, %v1926_v8  ;;  %2539 = vset.pattern.permute.xlu0 %v3970_v9  ;;  %2537 = vset.pattern.permute.xlu1 %v3964_v53  ;;  %v3678_v9 = vrot.slane %v20_v12, %v2820_v51  ;;  %v1994_v53 = vpop.permute.xlu0 %1993  ;;  %v3696_v8 = vrot.slane %v21_v23, %v2723_v17 }
0x125b   :  { %1773 = vperm.xlu0 %2539, %v3652_v55   ;;  %1741 = vperm.xlu1 %2537, %v3652_v55  }
0x125c   :  { %v1962_v14 = vpop.permute.xlu1 %1961  ;;  %v1958_v27 = vadd.f32 %v1956_v33, %v1942_v43  ;;  %v3707_v33 = vrot.slane %v21_v23, %v2702_v7 }
0x125d   :  { %v1972_v5 = vmul.f32 %v3664_v31, %v1962_v14 }
0x125f   :  { %v1974_v30 = vadd.f32 %v1972_v5, %v1958_v27  ;;  %2542 = vset.pattern.permute.xlu0 %v3974_v60  ;;  %2538 = vset.pattern.permute.xlu1 %v3969_v37  ;;  %v2004_v37 = vmul.f32 %v3678_v9, %v1994_v53  ;;  %v3716_v5 = vrot.slane %v21_v23, %v2699_v6 }
0x1260   :  { %1821 = vperm.xlu0 %2542, %v3652_v55   ;;  %1757 = vperm.xlu1 %2538, %v3652_v55  }
0x1261   :  { %v1978_v19 = vpop.permute.xlu1 %1977 }
0x1262   :  { %v1988_v40 = vmul.f32 %v3673_v20, %v1978_v19 }
0x1264   :  { %v1990_v60 = vadd.f32 %v1988_v40, %v1974_v30  ;;  %2545 = vset.pattern.permute.xlu0 %v3977_v3  ;;  %2540 = vset.pattern.permute.xlu1 %v3972_v46  ;;  %v3701_v3 = vrot.slane %v21_v23, %v2738_v24  ;;  %v2042_v46 = vpop.permute.xlu0 %2041  ;;  %v3727_v40 = vrot.slane %v21_v23, %v2813_v45 }
0x1265   :  { %1869 = vperm.xlu0 %2545, %v3652_v55   ;;  %1789 = vperm.xlu1 %2540, %v3652_v55  }
0x1266   :  { %v2010_v12 = vpop.permute.xlu1 %2009  ;;  %v2006_v34 = vadd.f32 %v2004_v37, %v1990_v60  ;;  %v2052_v43 = vmul.f32 %v3701_v3, %v2042_v46 }
0x1267   :  { %v2020_v22 = vmul.f32 %v3687_v28, %v2010_v12 }
0x1269   :  { %v2022_v2 = vadd.f32 %v2020_v22, %v2006_v34  ;;  %2548 = vset.pattern.permute.xlu0 %v3981_v1  ;;  %2541 = vset.pattern.permute.xlu1 %v3971_v32  ;;  %v3736_v34 = vrot.slane %v21_v23, %v2820_v51  ;;  %v3749_v51 = vrot.slane %v3475_v42, %v2723_v17 }
0x126a   :  { %1917 = vperm.xlu0 %2548, %v3652_v55   ;;  %1805 = vperm.xlu1 %2541, %v3652_v55  }
0x126b   :  { %v2026_v4 = vpop.permute.xlu1 %2025 }
0x126c   :  { %v2036_v38 = vmul.f32 %v3696_v8, %v2026_v4 }
0x126e   :  { %v2038_v14 = vadd.f32 %v2036_v38, %v2022_v2  ;;  %2551 = vset.pattern.permute.xlu0 %v3984_v36  ;;  %2543 = vset.pattern.permute.xlu1 %v3976_v0  ;;  %v3721_v36 = vrot.slane %v21_v23, %v2789_v10  ;;  %v2090_v0 = vpop.permute.xlu0 %2089 }
0x126f   :  { %1965 = vperm.xlu0 %2551, %v3652_v55   ;;  %1837 = vperm.xlu1 %2543, %v3652_v55  }
0x1270   :  { %v2058_v32 = vpop.permute.xlu1 %2057  ;;  %v2054_v1 = vadd.f32 %v2052_v43, %v2038_v14  ;;  %v2100_v37 = vmul.f32 %v3721_v36, %v2090_v0  ;;  %v4005_v43 = vmov 31   ;;  %v4010_v14 = vld [vmem:[#allocation8_spill] sm:$0xff]  ;;  %v4011_v0 = vld [vmem:[#allocation9_spill] sm:$0xff] }
0x1271   :  { %v2068_v27 = vmul.f32 %v3707_v33, %v2058_v32 }
0x1273   :  { %v2070_v30 = vadd.f32 %v2068_v27, %v2054_v1  ;;  %2554 = vset.pattern.permute.xlu0 %v3986_v21  ;;  %2544 = vset.pattern.permute.xlu1 %v3973_v16 }
0x1274   :  { %2013 = vperm.xlu0 %2554, %v3652_v55   ;;  %1853 = vperm.xlu1 %2544, %v3652_v55  }
0x1275   :  { %v2074_v53 = vpop.permute.xlu1 %2073 }
0x1276   :  { %v2084_v19 = vmul.f32 %v3716_v5, %v2074_v53 }
0x1278   :  { %v2086_v60 = vadd.f32 %v2084_v19, %v2070_v30  ;;  %2557 = vset.pattern.permute.xlu0 %v3988_v25  ;;  %2546 = vset.pattern.permute.xlu1 %v3978_v47  ;;  %v3742_v25 = vrot.slane %v3475_v42, %v2726_v18  ;;  %v2138_v47 = vpop.permute.xlu0 %2137 }
0x1279   :  { %2061 = vperm.xlu0 %2557, %v3652_v55   ;;  %1885 = vperm.xlu1 %2546, %v3652_v55  }
0x127a   :  { %v2106_v16 = vpop.permute.xlu1 %2105  ;;  %v2102_v21 = vadd.f32 %v2100_v37, %v2086_v60  ;;  %v4012_v37 = vld [vmem:[#allocation10_spill] sm:$0xff] }
0x127b   :  { %v2116_v12 = vmul.f32 %v3727_v40, %v2106_v16 }
0x127d   :  { %v2118_v45 = vadd.f32 %v2116_v12, %v2102_v21  ;;  %2560 = vset.pattern.permute.xlu0 %v3990_v62  ;;  %2547 = vset.pattern.permute.xlu1 %v3975_v44  ;;  %v2148_v62 = vmul.f32 %v3742_v25, %v2138_v47  ;;  %v4013_v21 = vld [vmem:[#allocation11_spill] sm:$0xff] }
0x127e   :  { %2109 = vperm.xlu0 %2560, %v3652_v55   ;;  %1901 = vperm.xlu1 %2547, %v3652_v55  }
0x127f   :  { %v2122_v22 = vpop.permute.xlu1 %2121 }
0x1280   :  { %v2132_v2 = vmul.f32 %v3736_v34, %v2122_v22 }
0x1282   :  { %v2134_v23 = vadd.f32 %v2132_v2, %v2118_v45  ;;  %2563 = vset.pattern.permute.xlu0 %v3992_v48  ;;  %2549 = vset.pattern.permute.xlu1 %v3983_v59 }
0x1283   :  { %2157 = vperm.xlu0 %2563, %v3652_v55   ;;  %1933 = vperm.xlu1 %2549, %v3652_v55  }
0x1284   :  { %v2154_v44 = vpop.permute.xlu1 %2153  ;;  %v2150_v46 = vadd.f32 %v2148_v62, %v2134_v23  ;;  %v4014_v62 = vld [vmem:[#allocation12_spill] sm:$0xff] }
0x1285   :  { %v2164_v4 = vmul.f32 %v3749_v51, %v2154_v44 }
0x1287   :  { %v3757_v38 = vadd.f32 %v2164_v4, %v2150_v46  ;;  %2567 = vset.pattern.permute.xlu0 %v4005_v43  ;;  %2550 = vset.pattern.permute.xlu1 %v3979_v50  ;;  %v4015_v46 = vld [vmem:[#allocation13_spill] sm:$0xff] }
0x1288   :  { %2205 = vperm.xlu0 %2567, %v3652_v55   ;;  %1949 = vperm.xlu1 %2550, %v3652_v55  }
0x1289   :  { %v3787_v50 = vpop.permute.xlu1 %2169 }
0x128c   :  { %2552 = vset.pattern.permute.xlu1 %v3985_v56  ;;  %2568 = vset.pattern.permute.xlu0 %v3965_v39  ;;  %v4007_v56 = vld [vmem:[#allocation6_spill] sm:$0xff] }
0x128d   :  { %1981 = vperm.xlu1 %2552, %v3652_v55  }
0x1291   :  { %2553 = vset.pattern.permute.xlu1 %v3980_v41  ;;  %v3789_v41 = vpop.permute.xlu0 %2185 }
0x1292   :  { %1997 = vperm.xlu1 %2553, %v3652_v55  }
0x1296   :  { %2555 = vset.pattern.permute.xlu1 %v3987_v13 }
0x1297   :  { %2029 = vperm.xlu1 %2555, %v3652_v55  }
0x129b   :  { %2556 = vset.pattern.permute.xlu1 %v3982_v11 }
0x129c   :  { %2045 = vperm.xlu1 %2556, %v3652_v55  }
0x12a0   :  { %2558 = vset.pattern.permute.xlu1 %v3989_v29  ;;  %v4008_v29 = vld [vmem:[#allocation5_spill] sm:$0xff] }
0x12a1   :  { %2077 = vperm.xlu1 %2558, %v3652_v55  }
0x12a5   :  { %2559 = vset.pattern.permute.xlu1 %v3958_v58  ;;  %v4006_v58 = vld [vmem:[#allocation4_spill] sm:$0xff] }
0x12a6   :  { %2093 = vperm.xlu1 %2559, %v3652_v55  }
0x12aa   :  { %2561 = vset.pattern.permute.xlu1 %v3991_v61 }
0x12ab   :  { %2125 = vperm.xlu1 %2561, %v3652_v55  }
0x12af   :  { %2562 = vset.pattern.permute.xlu1 %v3960_v52 }
0x12b0   :  { %2141 = vperm.xlu1 %2562, %v3652_v55  }
0x12b4   :  { %2564 = vset.pattern.permute.xlu1 %v3993_v15 }
0x12b5   :  { %2173 = vperm.xlu1 %2564, %v3652_v55  }
0x12b9   :  { %2565 = vset.pattern.permute.xlu1 %v3962_v49  ;;  %v4009_v49 = vld [vmem:[#allocation7_spill] sm:$0xff] }
0x12ba   :  { %2189 = vperm.xlu1 %2565, %v3652_v55  }
0x12be   :  { %2566 = vset.pattern.permute.xlu1 %v4005_v43 }
0x12bf   :  { %2201 = vperm.xlu1 %2566, %v4006_v58   ;;  %v4016_v58 = vld [vmem:[#allocation14_spill] sm:$0xff] }
0x12c3   :  { %2569 = vset.pattern.permute.xlu1 %v3965_v39 }
0x12d5   :  { %v1712_v52 = vpop.permute.xlu1 %1711  ;;  %v1726_v11 = vpop.permute.xlu0 %1725 }
0x12d6   :  { %v1719_v13 = vmul.f32 %v4007_v56, %v1712_v52  ;;  %v1733_v61 = vmul.f32 %v4008_v29, %v1726_v11  ;;  %v4017_v29 = vld [vmem:[#allocation15_spill] sm:$0xff] }
0x12d8   :  { %v1735_v15 = vadd.f32 %v1733_v61, %v1719_v13 }
0x12da   :  { %v1742_v59 = vpop.permute.xlu1 %1741  ;;  %v1774_v27 = vpop.permute.xlu0 %1773 }
0x12db   :  { %v1749_v48 = vmul.f32 %v4009_v49, %v1742_v59  ;;  %v1781_v53 = vmul.f32 %v4011_v0, %v1774_v27 }
0x12dd   :  { %v1751_v1 = vadd.f32 %v1749_v48, %v1735_v15 }
0x12df   :  { %v1758_v55 = vpop.permute.xlu1 %1757  ;;  %v1822_v47 = vpop.permute.xlu0 %1821 }
0x12e0   :  { %v1765_v32 = vmul.f32 %v4010_v14, %v1758_v55  ;;  %v1829_v23 = vmul.f32 %v4014_v62, %v1822_v47 }
0x12e2   :  { %v1767_v39 = vadd.f32 %v1765_v32, %v1751_v1 }
0x12e4   :  { %v1790_v30 = vpop.permute.xlu1 %1789  ;;  %v1783_v19 = vadd.f32 %v1781_v53, %v1767_v39  ;;  %v1870_v59 = vpop.permute.xlu0 %1869 }
0x12e5   :  { %v1797_v60 = vmul.f32 %v4012_v37, %v1790_v30  ;;  %v1877_v61 = vmul.f32 %v4017_v29, %v1870_v59 }
0x12e7   :  { %v1799_v45 = vadd.f32 %v1797_v60, %v1783_v19 }
0x12e9   :  { %v1806_v16 = vpop.permute.xlu1 %1805  ;;  %v1918_v32 = vpop.permute.xlu0 %1917 }
0x12ea   :  { %v1813_v12 = vmul.f32 %v4013_v21, %v1806_v16  ;;  %v1925_v39 = vmul.f32 %v3648_v57, %v1918_v32 }
0x12ec   :  { %v1815_v22 = vadd.f32 %v1813_v12, %v1799_v45 }
0x12ee   :  { %v1838_v2 = vpop.permute.xlu1 %1837  ;;  %v1831_v44 = vadd.f32 %v1829_v23, %v1815_v22  ;;  %v1966_v60 = vpop.permute.xlu0 %1965 }
0x12ef   :  { %v1845_v4 = vmul.f32 %v4015_v46, %v1838_v2 }
0x12f1   :  { %v1847_v11 = vadd.f32 %v1845_v4, %v1831_v44 }
0x12f3   :  { %v1854_v43 = vpop.permute.xlu1 %1853  ;;  %v2014_v57 = vpop.permute.xlu0 %2013 }
0x12f4   :  { %v1861_v52 = vmul.f32 %v4016_v58, %v1854_v43 }
0x12f6   :  { %v1863_v56 = vadd.f32 %v1861_v52, %v1847_v11 }
0x12f8   :  { %v1886_v13 = vpop.permute.xlu1 %1885  ;;  %v1879_v49 = vadd.f32 %v1877_v61, %v1863_v56 }
0x12f9   :  { %v1893_v48 = vmul.f32 %v3637_v26, %v1886_v13  ;;  %v1973_v26 = vmul.f32 %v3664_v31, %v1966_v60  ;;  %v2062_v31 = vpop.permute.xlu0 %2061 }
0x12fb   :  { %v1895_v14 = vadd.f32 %v1893_v48, %v1879_v49 }
0x12fd   :  { %v1902_v15 = vpop.permute.xlu1 %1901 }
0x12fe   :  { %v1909_v55 = vmul.f32 %v3640_v35, %v1902_v15 }
0x1300   :  { %v1911_v1 = vadd.f32 %v1909_v55, %v1895_v14 }
0x1302   :  { %v1934_v27 = vpop.permute.xlu1 %1933  ;;  %v1927_v30 = vadd.f32 %v1925_v39, %v1911_v1 }
0x1303   :  { %v1941_v0 = vmul.f32 %v3655_v63, %v1934_v27  ;;  %v2021_v63 = vmul.f32 %v3687_v28, %v2014_v57  ;;  %v2110_v28 = vpop.permute.xlu0 %2109 }
0x1305   :  { %v1943_v37 = vadd.f32 %v1941_v0, %v1927_v30  ;;  %v2211_v30 = vrot.slane %v3475_v42, %v2699_v6  ;;  %v4019_v6 = vld [vmem:[#allocation2_spill] sm:$0xff] }
0x1307   :  { %v1950_v53 = vpop.permute.xlu1 %1949 }
0x1308   :  { %v1957_v19 = vmul.f32 %v3658_v54, %v1950_v53 }
0x130a   :  { %v1959_v16 = vadd.f32 %v1957_v19, %v1943_v37 }
0x130c   :  { %v1982_v21 = vpop.permute.xlu1 %1981  ;;  %v1975_v12 = vadd.f32 %v1973_v26, %v1959_v16 }
0x130d   :  { %v1989_v35 = vmul.f32 %v3673_v20, %v1982_v21  ;;  %v2069_v20 = vmul.f32 %v3707_v33, %v2062_v31  ;;  %v2158_v33 = vpop.permute.xlu0 %2157  ;;  %v2219_v21 = vrot.slane %v3475_v42, %v2789_v10 }
0x130f   :  { %v1991_v22 = vadd.f32 %v1989_v35, %v1975_v12 }
0x1311   :  { %v1998_v45 = vpop.permute.xlu1 %1997  ;;  %v2206_v53 = vpop.permute.xlu0 %2205 }
0x1312   :  { %v2005_v47 = vmul.f32 %v3678_v9, %v1998_v45  ;;  %v2213_v60 = vmul.f32 %v2211_v30, %v2206_v53 }
0x1314   :  { %v2007_v2 = vadd.f32 %v2005_v47, %v1991_v22 }
0x1316   :  { %v2030_v62 = vpop.permute.xlu1 %2029  ;;  %v2023_v23 = vadd.f32 %v2021_v63, %v2007_v2 }
0x1317   :  { %v2037_v54 = vmul.f32 %v3696_v8, %v2030_v62  ;;  %v2117_v8 = vmul.f32 %v3727_v40, %v2110_v28  ;;  %v2195_v40 = vrot.slane %v3475_v42, %v2702_v7 }
0x1319   :  { %v2039_v4 = vadd.f32 %v2037_v54, %v2023_v23  ;;  %v2196_v19 = vmul.f32 %v2195_v40, %v3789_v41 }
0x131b   :  { %v2046_v44 = vpop.permute.xlu1 %2045 }
0x131c   :  { %v2053_v46 = vmul.f32 %v3701_v3, %v2046_v44 }
0x131e   :  { %v2055_v43 = vadd.f32 %v2053_v46, %v2039_v4 }
0x1320   :  { %v2078_v58 = vpop.permute.xlu1 %2077  ;;  %v2071_v52 = vadd.f32 %v2069_v20, %v2055_v43 }
0x1321   :  { %v2085_v9 = vmul.f32 %v3716_v5, %v2078_v58  ;;  %v2179_v5 = vrot.slane %v3475_v42, %v2738_v24 }
0x1323   :  { %v2087_v56 = vadd.f32 %v2085_v9, %v2071_v52  ;;  %v2180_v32 = vmul.f32 %v2179_v5, %v3787_v50 }
0x1325   :  { %v2094_v11 = vpop.permute.xlu1 %2093 }
0x1326   :  { %v2101_v59 = vmul.f32 %v3721_v36, %v2094_v11  ;;  %v2165_v36 = vmul.f32 %v3749_v51, %v2158_v33 }
0x1328   :  { %v2103_v13 = vadd.f32 %v2101_v59, %v2087_v56 }
0x132a   :  { %v2126_v29 = vpop.permute.xlu1 %2125  ;;  %v2119_v61 = vadd.f32 %v2117_v8, %v2103_v13 }
0x132b   :  { %v2133_v3 = vmul.f32 %v3736_v34, %v2126_v29 }
0x132d   :  { %v2135_v15 = vadd.f32 %v2133_v3, %v2119_v61 }
0x132f   :  { %v2142_v49 = vpop.permute.xlu1 %2141 }
0x1330   :  { %v2149_v48 = vmul.f32 %v3742_v25, %v2142_v49  ;;  %v2182_v25 = vadd.f32 %v2180_v32, %v3757_v38  ;;  %v4018_v38 = vld [vmem:[#allocation3_spill] sm:$0xff] }
0x1332   :  { %v2151_v55 = vadd.f32 %v2149_v48, %v2135_v15  ;;  %v2198_v50 = vadd.f32 %v2196_v19, %v2182_v25 }
0x1334   :  { %v2174_v14 = vpop.permute.xlu1 %2173  ;;  %v2167_v1 = vadd.f32 %v2165_v36, %v2151_v55 }
0x1335   :  { %v2181_v27 = vmul.f32 %v2179_v5, %v2174_v14 }
0x1337   :  { %v2183_v0 = vadd.f32 %v2181_v27, %v2167_v1 }
0x1339   :  { %v2190_v34 = vpop.permute.xlu1 %2189 }
0x133a   :  { %v2197_v39 = vmul.f32 %v2195_v40, %v2190_v34 }
0x133c   :  { %v2199_v37 = vadd.f32 %v2197_v39, %v2183_v0  ;;  %v2634_v0 = vld [vmem:[%s3876_s1 + $0x60] sm:$0xff] }
0x133d   :  { %v2321_v53 = vrot.slane %v2634_v0, %v2726_v18 }
0x133e   :  { %v2202_v51 = vpop.permute.xlu1 %2201  ;;  %v2215_v7 = vadd.f32 %v2213_v60, %v2199_v37  ;;  %v2327_v60 = vrot.slane %v2634_v0, %v2723_v17 }
0x133f   :  { %v2212_v16 = vmul.f32 %v2211_v30, %v2202_v51 }
0x1340   :  { %v2221_v35 = vadd.f32 %v2219_v21, %v2215_v7 }
0x1341   :  { %v2214_v26 = vadd.f32 %v2212_v16, %v2198_v50 }
0x1342   :  { %v3839_v41 = vadd.f32 %v2221_v35, %v4019_v6  ;;  %v2335_v35 = vrot.slane %v2634_v0, %v2738_v24 }
0x1343   :  { %v2220_v12 = vadd.f32 %v2219_v21, %v2214_v26 }
0x1345   :  { %v3832_v45 = vadd.f32 %v2220_v12, %v4018_v38 }
0x1347   :  { %2234 = vrot.lane.b32.xlu0 %v3832_v45, %s2641_s17  ;;  %2226 = vrot.lane.b32.xlu1 %v3832_v45, %s2640_s16 }
0x134b   :  { %2228 = vrot.lane.b32.xlu1 %v3839_v41, %s2640_s16 }
0x134f   :  { %2236 = vrot.lane.b32.xlu1 %v3839_v41, %s2641_s17 }
0x13b9   :  { %v2227_v10 = vpop.permute.xlu1 %2226  ;;  %v2235_v47 = vpop.permute.xlu0 %2234 }
0x13ba   :  { %v2232_v42 = vadd.f32 %v2227_v10, %v3832_v45 }
0x13bc   :  { %v2240_v22 = vadd.f32 %v2235_v47, %v2232_v42 }
0x13bd   :  { %v2229_v57 = vpop.permute.xlu1 %2228 }
0x13be   :  { %v2242_v2 = vmul.f32 0.33333334, %v2240_v22  ;;  %v2233_v62 = vadd.f32 %v2229_v57, %v3839_v41 }
0x13c0   :  { %2248 = vrot.lane.b32.xlu0 %v2242_v2, %s2642_s18  ;;  %v2244_v28 = vsub.f32 %v3832_v45, %v2242_v2 }
0x13c1   :  { %v2237_v63 = vpop.permute.xlu1 %2236 }
0x13c2   :  { %v2241_v23 = vadd.f32 %v2237_v63, %v2233_v62  ;;  %v2264_v29 = vmul.f32 %v2244_v28, %v2244_v28 }
0x13c4   :  { %v2243_v54 = vmul.f32 0.33333334, %v2241_v23  ;;  %2256 = vrot.lane.b32.xlu0 %v2242_v2, %s2643_s19 }
0x13c6   :  { %2250 = vrot.lane.b32.xlu1 %v2243_v54, %s2642_s18  ;;  %v2245_v61 = vsub.f32 %v3839_v41, %v2243_v54 }
0x13c8   :  { %v2265_v33 = vmul.f32 %v2245_v61, %v2245_v61 }
0x13ca   :  { %2258 = vrot.lane.b32.xlu1 %v2243_v54, %s2643_s19 }
0x1432   :  { %v2249_v44 = vpop.permute.xlu0 %2248 }
0x1433   :  { %v2254_v46 = vsub.f32 %v3832_v45, %v2249_v44 }
0x1435   :  { %v2266_v4 = vmul.f32 %v2254_v46, %v2254_v46 }
0x1436   :  { %v2257_v31 = vpop.permute.xlu0 %2256 }
0x1437   :  { %v2262_v43 = vsub.f32 %v3832_v45, %v2257_v31  ;;  %2270 = vrot.lane.b32.xlu0 %v2266_v4, %s2640_s16 }
0x1438   :  { %v2251_v58 = vpop.permute.xlu1 %2250 }
0x1439   :  { %v2278_v20 = vmul.f32 %v2262_v43, %v2262_v43  ;;  %v2255_v52 = vsub.f32 %v3839_v41, %v2251_v58 }
0x143b   :  { %v2267_v9 = vmul.f32 %v2255_v52, %v2255_v52  ;;  %2282 = vrot.lane.b32.xlu0 %v2278_v20, %s2641_s17 }
0x143c   :  { %v2259_v11 = vpop.permute.xlu1 %2258 }
0x143d   :  { %v2263_v59 = vsub.f32 %v3839_v41, %v2259_v11  ;;  %2272 = vrot.lane.b32.xlu1 %v2267_v9, %s2640_s16 }
0x143f   :  { %v2279_v56 = vmul.f32 %v2263_v59, %v2263_v59  ;;  %2297 = vperm.xlu0 %2568, %v2242_v2  }
0x1441   :  { %2284 = vrot.lane.b32.xlu1 %v2279_v56, %s2641_s17 }
0x1445   :  { %2301 = vperm.xlu1 %2569, %v2243_v54  }
0x14a9   :  { %v2271_v13 = vpop.permute.xlu0 %2270 }
0x14aa   :  { %v2276_v8 = vadd.f32 %v2271_v13, %v2264_v29 }
0x14ad   :  { %v2283_v3 = vpop.permute.xlu0 %2282 }
0x14ae   :  { %v2288_v49 = vadd.f32 %v2283_v3, %v2276_v8 }
0x14af   :  { %v2273_v48 = vpop.permute.xlu1 %2272 }
0x14b0   :  { %v2290_v15 = vmul.f32 0.33333334, %v2288_v49  ;;  %v2277_v55 = vadd.f32 %v2273_v48, %v2265_v33 }
0x14b2   :  { %v2292_v5 = vadd.f32 1e-05, %v2290_v15 }
0x14b3   :  { %v2285_v14 = vpop.permute.xlu1 %2284 }
0x14b4   :  { %2630 = vrsqrt.f32 %v2292_v5  ;;  %v2289_v36 = vadd.f32 %v2285_v14, %v2277_v55 }
0x14b6   :  { %v2291_v32 = vmul.f32 0.33333334, %v2289_v36 }
0x14b8   :  { %v2293_v1 = vadd.f32 1e-05, %v2291_v32 }
0x14ba   :  { %2632 = vrsqrt.f32 %v2293_v1 }
0x14be   :  { %v2631_v27 = vpop.eup %2630  ;;  %v2298_v39 = vpop.permute.xlu0 %2297 }
0x14bf   :  { %2308 = vperm.xlu1 %2569, %v2631_v27   ;;  %v2304_v30 = vsub.f32 %v3832_v45, %v2298_v39 }
0x14c4   :  { %v2633_v40 = vpop.eup %2632  ;;  %v2302_v34 = vpop.permute.xlu1 %2301 }
0x14c5   :  { %2313 = vperm.xlu0 %2568, %v2633_v40   ;;  %v2305_v37 = vsub.f32 %v3839_v41, %v2302_v34 }
0x153e   :  { %v2309_v25 = vpop.permute.xlu1 %2308 }
0x153f   :  { %v2316_v19 = vmul.f32 %v2309_v25, %v2304_v30 }
0x1541   :  { %v2322_v50 = vmul.f32 %v2321_v53, %v2316_v19 }
0x1543   :  { %v2328_v7 = vadd.f32 %v2327_v60, %v2322_v50 }
0x1544   :  { %v2314_v51 = vpop.permute.xlu0 %2313 }
0x1545   :  { %v2317_v16 = vmul.f32 %v2314_v51, %v2305_v37 }
0x1547   :  { %v2323_v21 = vmul.f32 %v2321_v53, %v2317_v16 }
0x1549   :  { %v2329_v26 = vadd.f32 %v2327_v60, %v2323_v21 }
0x154b   :  { %v2330_v12 = vadd.f32 %v2329_v26, %v2328_v7 }
0x154d   :  { %v2331_v38 = vmul.f32 0.5, %v2330_v12 }
0x154f   :  { %v2336_v45 = vmul.f32 %v2335_v35, %v2331_v38 }
0x1551   :  { %2342 = vrot.lane.b32.xlu0 %v2336_v45, %s2641_s17  ;;  %2338 = vrot.lane.b32.xlu1 %v2336_v45, %s2640_s16 }
0x1555   :  { %2347 = vrot.lane.b32.xlu1 %v2335_v35, %s2638_s0 }
0x15c3   :  { %v2339_v18 = vpop.permute.xlu1 %2338  ;;  %v2343_v41 = vpop.permute.xlu0 %2342 }
0x15c4   :  { %v2341_v6 = vadd.f32 %v2339_v18, %v2336_v45 }
0x15c6   :  { %v2345_v17 = vadd.f32 %v2343_v41, %v2341_v6 }
0x15c7   :  { %v2348_v10 = vpop.permute.xlu1 %2347 }
0x15c8   :  { %v2350_v42 = vadd.f32 %v2348_v10, %v2345_v17 }
0x15ca   :  { %2351 = vst.msk [vmem:[%s3878_s2] sm:$0xff] %vm218_vm1, %v2350_v42 }

</bundles_post_ra>
